<compile_context>
chip_gen: v5e
topology: v5e:2x2
jax: 0.10.0
libtpu: 0.0.40
codegen_flags: <defaults>
</compile_context>

<pallas_src>
import math
import jax
import jax.numpy as jnp
from jax import lax
from jax.experimental import pallas as pl
from jax.experimental.pallas import tpu as pltpu

# ---- model hyper-parameters (small, consistent with the module) -------------
B, S, D = 2, 16, 64          # batch, seq len, encoder_dim
H = 4                        # num attention heads
HD = D // H                  # head dim
FF = 4 * D                   # feed-forward expansion (factor 4)
K = 7                        # depthwise conv kernel size (odd)
P = (K - 1) // 2
LN_EPS = 1e-5
BN_EPS = 1e-5
NEG_INF = float(jnp.finfo(jnp.float32).min)

# rows of the packed width-D parameter array (pvec_d)
(I_SCALE_MHSA, I_BIAS_MHSA,
 I_LN_MHSA_G, I_LN_MHSA_B, I_SCALE_FF_MHSA, I_BIAS_FF_MHSA,
 I_FF_MHSA_B2, I_LN_FF_MHSA_G, I_LN_FF_MHSA_B,
 I_SCALE_CONV, I_BIAS_CONV,
 I_BN_G, I_BN_B, I_BN_M, I_BN_V, I_PW2_B,
 I_LN_CONV_G, I_LN_CONV_B, I_SCALE_FF_CONV, I_BIAS_FF_CONV,
 I_FF_CONV_B2, I_LN_FF_CONV_G, I_LN_FF_CONV_B,
 I_DW0) = range(24)
N_PD = I_DW0 + K             # 30 rows

# rows of the packed width-FF parameter array (pvec_w)
I_W_FFM_B1, I_W_FFC_B1, I_W_PW1_B = 0, 1, 2


def _pick_matmul_dtype():
    # bf16 matmul operands ~2x MXU throughput and halve weight DMA on v6e/v7x;
    # keep f32 on v5e (no bf16 VPU -> per-call activation casts are not paid back
    # at these shapes).
    try:
        kind = jax.devices()[0].device_kind.lower()
    except Exception:
        return jnp.float32
    if "v5 lite" in kind or "v5lite" in kind or "v5e" in kind:
        return jnp.float32
    return jnp.bfloat16


MM_DTYPE = _pick_matmul_dtype()


def _mosaic_params(**kw):
    cls = getattr(pltpu, "CompilerParams", None)
    if cls is None:                      # older jax fallback
        cls = getattr(pltpu, "TPUCompilerParams")
    return cls(**kw)


# ------------------------------ kernel helpers --------------------------------
def _layernorm(x, g, b):
    mu = jnp.mean(x, axis=-1, keepdims=True)
    var = jnp.mean((x - mu) ** 2, axis=-1, keepdims=True)
    return (x - mu) * lax.rsqrt(var + LN_EPS) * g + b


def _mm(a, w):
    # matmul with operands in the (possibly bf16) weight dtype, f32 accumulation
    return jnp.dot(a.astype(w.dtype), w, preferred_element_type=jnp.float32)


def _ffn_block(x, valid, ln1_g, ln1_b, sc, bi, w1, b1, w2, b2, ln2_g, ln2_b):
    # y = LN1(x); out = LN2(y + FFN(y*scale+bias)); padded rows keep x.
    # (Equivalent to the torch gather/scatter over valid tokens: all ops per-token.)
    y = _layernorm(x, ln1_g, ln1_b)
    h = _mm(y * sc + bi, w1) + b1
    h = h * jax.nn.sigmoid(h)                          # Swish (dropout = identity)
    out = _layernorm(y + _mm(h, w2) + b2, ln2_g, ln2_b)
    return jnp.where(valid, out, x)


# ------------------------------ fused kernel ----------------------------------
def block_kernel(x_ref, mcol_ref, mrow_ref, cos_ref, sin_ref,
                 wqkv_ref, wo_ref, ffm_w1_ref, ffm_w2_ref,
                 ffc_w1_ref, ffc_w2_ref, pw1_ref, pw2_ref,
                 pd_ref, pwide_ref, o_ref):
    x = x_ref[...]                       # (S, D) residual stream for this batch
    mcol = mcol_ref[...]                 # (S, 1)  1.0 = valid token
    mrow = mrow_ref[...]                 # (1, S)
    valid = mcol > 0.5
    cos = cos_ref[...]                   # (S, D)  rotary cos (tiled over heads)
    sin = sin_ref[...]

    def row(i):                          # one packed width-D parameter row
        return pd_ref[i:i + 1, :]        # (1, D)

    # ------------------------------ MHSA --------------------------------
    xs = x * row(I_SCALE_MHSA) + row(I_BIAS_MHSA)
    qkv = _mm(xs, wqkv_ref[...])         # (S, 5D): [q | k | v | rot(q) | rot(k)]
    q = qkv[:, 0 * D:1 * D] * cos + qkv[:, 3 * D:4 * D] * sin
    k = qkv[:, 1 * D:2 * D] * cos + qkv[:, 4 * D:5 * D] * sin
    v = qkv[:, 2 * D:3 * D]

    pair_bad = jnp.logical_or(mcol < 0.5, mrow < 0.5)   # (S, S) pad-pair mask
    inv_sqrt = 1.0 / math.sqrt(HD)
    ctx = []
    for hh in range(H):                                 # unrolled over heads
        lo = hh * HD
        qh = q[:, lo:lo + HD].astype(MM_DTYPE)
        kh = k[:, lo:lo + HD].astype(MM_DTYPE)
        vh = v[:, lo:lo + HD].astype(MM_DTYPE)
        s = lax.dot_general(qh, kh, (((1,), (1,)), ((), ())),
                            preferred_element_type=jnp.float32) * inv_sqrt
        s = jnp.where(pair_bad, NEG_INF, s)
        p_ = jnp.exp(s - jnp.max(s, axis=-1, keepdims=True))
        denom = jnp.sum(p_, axis=-1, keepdims=True)
        p_ = p_ * pl.reciprocal(denom, approx=True)
        ctx.append(jnp.dot(p_.astype(MM_DTYPE), vh,
                           preferred_element_type=jnp.float32))   # (S, HD)
    ctx = jnp.concatenate(ctx, axis=-1)                 # (S, D)
    x = x + _mm(ctx, wo_ref[...])                       # single W_o matmul

    # -------------------------- FFN (post-MHSA) -------------------------
    x = _ffn_block(x, valid,
                   row(I_LN_MHSA_G), row(I_LN_MHSA_B),
                   row(I_SCALE_FF_MHSA), row(I_BIAS_FF_MHSA),
                   ffm_w1_ref[...], pwide_ref[I_W_FFM_B1:I_W_FFM_B1 + 1, :],
                   ffm_w2_ref[...], row(I_FF_MHSA_B2),
                   row(I_LN_FF_MHSA_G), row(I_LN_FF_MHSA_B))

    # ------------------------------ Conv --------------------------------
    xs = x * row(I_SCALE_CONV) + row(I_BIAS_CONV)
    xm = jnp.where(valid, xs, 0.0)                      # masked_fill(~mask, 0)
    y = _mm(xm, pw1_ref[...]) + pwide_ref[I_W_PW1_B:I_W_PW1_B + 1, :2 * D]
    y = y[:, :D] * jax.nn.sigmoid(y[:, D:])             # GLU over channels
    # depthwise 1-D conv along time, 'SAME' zero padding: each tap is an exact
    # {0,1} time-shift-matrix matmul (MXU) -> no padded concat, no misaligned
    # sublane slices, OOB taps are implicitly zero.
    rr = lax.broadcasted_iota(jnp.int32, (S, S), 0)
    cc = lax.broadcasted_iota(jnp.int32, (S, S), 1)
    acc = jnp.zeros((S, D), jnp.float32)
    for j in range(K):                                  # unrolled taps
        shift = (cc == rr + (j - P)).astype(jnp.float32)
        acc = acc + jnp.dot(shift, y,
                            preferred_element_type=jnp.float32) * row(I_DW0 + j)
    # TODO(synk): BatchNorm implemented in eval (running-stats) mode; train-mode
    # batch statistics over valid tokens are not implemented.
    xbn = (acc - row(I_BN_M)) * lax.rsqrt(row(I_BN_V) + BN_EPS) \
        * row(I_BN_G) + row(I_BN_B)
    yc = jnp.where(valid, xbn, acc)                     # BN only on valid rows
    yc = yc * jax.nn.sigmoid(yc)                        # Swish
    yc = _mm(yc, pw2_ref[...]) + row(I_PW2_B)
    yc = jnp.where(valid, yc, 0.0)                      # final masked_fill
    x = x + yc

    # -------------------------- FFN (post-Conv) -------------------------
    x = _ffn_block(x, valid,
                   row(I_LN_CONV_G), row(I_LN_CONV_B),
                   row(I_SCALE_FF_CONV), row(I_BIAS_FF_CONV),
                   ffc_w1_ref[...], pwide_ref[I_W_FFC_B1:I_W_FFC_B1 + 1, :],
                   ffc_w2_ref[...], row(I_FF_CONV_B2),
                   row(I_LN_FF_CONV_G), row(I_LN_FF_CONV_B))

    o_ref[...] = x


# ------------------------------ wrapper ---------------------------------------
def _rotate_half_matrix():
    # (D, D) matrix R with q @ R == per-head rotate_half(q)  (exact, entries +/-1)
    idx = jnp.arange(D)
    pos = idx % HD
    src = jnp.where(pos < HD // 2, idx + HD // 2, idx - HD // 2)
    sign = jnp.where(pos < HD // 2, -1.0, 1.0).astype(jnp.float32)
    return jnp.zeros((D, D), jnp.float32).at[src, idx].set(sign)


def _pack_params(p):
    rows = [p['scale_mhsa'], p['bias_mhsa'],
            p['ln_mhsa_g'], p['ln_mhsa_b'], p['scale_ff_mhsa'], p['bias_ff_mhsa'],
            p['ff_mhsa_b2'], p['ln_ff_mhsa_g'], p['ln_ff_mhsa_b'],
            p['scale_conv'], p['bias_conv'],
            p['bn_g'], p['bn_b'], p['bn_m'], p['bn_v'], p['pw2_b'],
            p['ln_conv_g'], p['ln_conv_b'], p['scale_ff_conv'], p['bias_ff_conv'],
            p['ff_conv_b2'], p['ln_ff_conv_g'], p['ln_ff_conv_b'],
            p['dw_w']]                                   # dw_w is (K, D)
    pvec_d = jnp.concatenate([r.reshape(-1, D) for r in rows],
                             axis=0).astype(jnp.float32)           # (N_PD, D)
    pw1_b_pad = jnp.pad(p['pw1_b'], ((0, 0), (0, FF - 2 * D)))
    pvec_w = jnp.concatenate([p['ff_mhsa_b1'], p['ff_conv_b1'], pw1_b_pad],
                             axis=0).astype(jnp.float32)           # (3, FF)
    return pvec_d, pvec_w


@jax.jit
def squeezeformer_block(x, cos, sin, mask, p):
    bsz, slen, dim = x.shape
    assert (bsz, slen, dim) == (B, S, D)
    mcol = mask.astype(jnp.float32).reshape(bsz, slen, 1)
    mrow = mask.astype(jnp.float32).reshape(bsz, 1, slen)
    cos_full = jnp.tile(cos.astype(jnp.float32), (1, H))           # (S, D)
    sin_full = jnp.tile(sin.astype(jnp.float32), (1, H))

    rot = _rotate_half_matrix()
    wqkv = jnp.concatenate([p['wq'], p['wk'], p['wv'],
                            p['wq'] @ rot, p['wk'] @ rot], axis=1)  # (D, 5D)
    pvec_d, pvec_w = _pack_params(p)
    weights = [wqkv, p['wo'],
               p['ff_mhsa_w1'], p['ff_mhsa_w2'],
               p['ff_conv_w1'], p['ff_conv_w2'],
               p['pw1_w'], p['pw2_w']]
    weights = [w.astype(MM_DTYPE) for w in weights]

    def resident(shape):       # full-array block, constant index -> loaded once
        zeros = (0,) * len(shape)
        return pl.BlockSpec(shape, lambda b: zeros)

    in_specs = [
        pl.BlockSpec((None, S, D), lambda b: (b, 0, 0)),   # x (per-batch slab)
        pl.BlockSpec((None, S, 1), lambda b: (b, 0, 0)),   # mask column
        pl.BlockSpec((None, 1, S), lambda b: (b, 0, 0)),   # mask row
        resident((S, D)), resident((S, D)),                # cos, sin
        resident((D, 5 * D)), resident((D, D)),            # wqkv, wo
        resident((D, FF)), resident((FF, D)),              # ff_mhsa w1 / w2
        resident((D, FF)), resident((FF, D)),              # ff_conv w1 / w2
        resident((D, 2 * D)), resident((D, D)),            # pw1, pw2
        resident((N_PD, D)), resident((3, FF)),            # packed param vectors
    ]
    out = pl.pallas_call(
        block_kernel,
        out_shape=jax.ShapeDtypeStruct((bsz, slen, dim), jnp.float32),
        grid_spec=pltpu.PrefetchScalarGridSpec(
            num_scalar_prefetch=0,
            grid=(bsz,),
            in_specs=in_specs,
            out_specs=pl.BlockSpec((None, S, D), lambda b: (b, 0, 0)),
        ),
        compiler_params=_mosaic_params(dimension_semantics=("parallel",)),
    )(x, mcol, mrow, cos_full, sin_full, *weights, pvec_d, pvec_w)
    return out


# ------------------------------ parameters ------------------------------------
def init_params(key):
    ks = jax.random.split(key, 20)

    def w(k, shape, scale=0.05):
        return jax.random.normal(k, shape, jnp.float32) * scale

    ones = jnp.ones((1, D), jnp.float32)
    zeros = jnp.zeros((1, D), jnp.float32)
    p = {}
    for name in ['mhsa', 'ff_mhsa', 'conv', 'ff_conv']:      # make_scale params
        p['scale_' + name] = ones
        p['bias_' + name] = zeros
    # LlamaAttention projections (bias=False); weights stored pre-transposed (in, out)
    p['wq'] = w(ks[0], (D, D)); p['wk'] = w(ks[1], (D, D))
    p['wv'] = w(ks[2], (D, D)); p['wo'] = w(ks[3], (D, D))
    for name in ['ln_mhsa', 'ln_ff_mhsa', 'ln_conv', 'ln_ff_conv']:
        p[name + '_g'] = ones
        p[name + '_b'] = zeros
    p['ff_mhsa_w1'] = w(ks[4], (D, FF)); p['ff_mhsa_b1'] = w(ks[5], (1, FF))
    p['ff_mhsa_w2'] = w(ks[6], (FF, D)); p['ff_mhsa_b2'] = w(ks[7], (1, D))
    p['ff_conv_w1'] = w(ks[8], (D, FF)); p['ff_conv_b1'] = w(ks[9], (1, FF))
    p['ff_conv_w2'] = w(ks[10], (FF, D)); p['ff_conv_b2'] = w(ks[11], (1, D))
    p['pw1_w'] = w(ks[12], (D, 2 * D)); p['pw1_b'] = w(ks[13], (1, 2 * D))
    p['dw_w'] = w(ks[14], (K, D))
    p['bn_g'] = ones; p['bn_b'] = zeros
    p['bn_m'] = zeros; p['bn_v'] = jnp.ones((1, D), jnp.float32)
    p['pw2_w'] = w(ks[15], (D, D)); p['pw2_b'] = w(ks[16], (1, D))
    return p


# ---------------------------- pure-JAX reference -------------------------------
def reference(x, cos, sin, mask, p):
    amask = 1.0 - mask[:, :, None] * mask[:, None, :]
    m = mask[:, :, None]

    def ln(t, g, b):
        mu = t.mean(-1, keepdims=True)
        var = ((t - mu) ** 2).mean(-1, keepdims=True)
        return (t - mu) / jnp.sqrt(var + LN_EPS) * g + b

    def rot_half(t):
        h = t.shape[-1] // 2
        return jnp.concatenate([-t[..., h:], t[..., :h]], -1)

    # attention
    xs = x * p['scale_mhsa'] + p['bias_mhsa']

    def heads(t):
        return t.reshape(B, S, H, HD).transpose(0, 2, 1, 3)

    q = heads(xs @ p['wq']); k = heads(xs @ p['wk']); v = heads(xs @ p['wv'])
    cq, sq = cos[None, None], sin[None, None]
    q = q * cq + rot_half(q) * sq
    k = k * cq + rot_half(k) * sq
    aw = jnp.einsum('bhqd,bhkd->bhqk', q, k) / math.sqrt(HD)
    aw = jnp.where(amask[:, None] > 0.5, NEG_INF, aw)
    aw = jax.nn.softmax(aw, -1)
    ctx = jnp.einsum('bhqk,bhkd->bhqd', aw, v).transpose(0, 2, 1, 3).reshape(B, S, D)
    x = x + ctx @ p['wo']

    def ffn_block(x, ln1g, ln1b, sc, bi, w1, b1, w2, b2, ln2g, ln2b):
        y = ln(x, ln1g, ln1b)
        h = (y * sc + bi) @ w1 + b1
        h = h * jax.nn.sigmoid(h)
        out = ln(y + (h @ w2 + b2), ln2g, ln2b)
        return jnp.where(m > 0.5, out, x)

    x = ffn_block(x, p['ln_mhsa_g'], p['ln_mhsa_b'], p['scale_ff_mhsa'], p['bias_ff_mhsa'],
                  p['ff_mhsa_w1'], p['ff_mhsa_b1'], p['ff_mhsa_w2'], p['ff_mhsa_b2'],
                  p['ln_ff_mhsa_g'], p['ln_ff_mhsa_b'])

    # conv module
    xs = x * p['scale_conv'] + p['bias_conv']
    xm = jnp.where(m > 0.5, xs, 0.0)
    y = xm @ p['pw1_w'] + p['pw1_b']
    y = y[..., :D] * jax.nn.sigmoid(y[..., D:])
    ypad = jnp.pad(y, ((0, 0), (P, P), (0, 0)))
    acc = sum(ypad[:, j:j + S, :] * p['dw_w'][j] for j in range(K))
    xbn = (acc - p['bn_m']) / jnp.sqrt(p['bn_v'] + BN_EPS) * p['bn_g'] + p['bn_b']
    y = jnp.where(m > 0.5, xbn, acc)
    y = y * jax.nn.sigmoid(y)
    y = y @ p['pw2_w'] + p['pw2_b']
    y = jnp.where(m > 0.5, y, 0.0)
    x = x + y

    x = ffn_block(x, p['ln_conv_g'], p['ln_conv_b'], p['scale_ff_conv'], p['bias_ff_conv'],
                  p['ff_conv_w1'], p['ff_conv_b1'], p['ff_conv_w2'], p['ff_conv_b2'],
                  p['ln_ff_conv_g'], p['ln_ff_conv_b'])
    return x


# ---------------------------------- main ---------------------------------------
if __name__ == "__main__":
    key = jax.random.PRNGKey(0)
    kx, kp = jax.random.split(key)
    x = jax.random.normal(kx, (B, S, D), jnp.float32)

    # rotary cos/sin (seq_len, head_dim)
    inv_freq = 1.0 / (10000.0 ** (jnp.arange(0, HD, 2, dtype=jnp.float32) / HD))
    pos = jnp.arange(S, dtype=jnp.float32)
    freqs = pos[:, None] * inv_freq[None, :]
    emb = jnp.concatenate([freqs, freqs], axis=-1)
    cos = jnp.cos(emb)
    sin = jnp.sin(emb)

    # padding mask: 1.0 = valid token, 0.0 = padded
    lengths = jnp.array([S, S - 6], dtype=jnp.int32)
    mask = (jnp.arange(S)[None, :] < lengths[:, None]).astype(jnp.float32)

    params = init_params(kp)

    out = jax.block_until_ready(squeezeformer_block(x, cos, sin, mask, params))
    assert out.shape == (B, S, D)

    ref = reference(x, cos, sin, mask, params)
    err = float(jnp.max(jnp.abs(out - ref)))
    # looser tolerance when matmul operands run in bf16 (v6e/v7x path)
    tol = 2e-2 if MM_DTYPE == jnp.float32 else 5e-2
    if err > tol:
        raise AssertionError(f"kernel / reference mismatch: max abs err = {err}")

    print("KERNEL_OK")
</pallas_src>

<mosaic_0001>
module attributes {stable_mosaic.version = 11 : i64} {
  func.func @block_kernel(%arg0: i32, %arg1: memref<1x16x64xf32, #tpu.memory_space<vmem>>, %arg2: memref<1x16x1xf32, #tpu.memory_space<vmem>>, %arg3: memref<1x1x16xf32, #tpu.memory_space<vmem>>, %arg4: memref<16x64xf32, #tpu.memory_space<vmem>>, %arg5: memref<16x64xf32, #tpu.memory_space<vmem>>, %arg6: memref<64x320xbf16, #tpu.memory_space<vmem>>, %arg7: memref<64x64xbf16, #tpu.memory_space<vmem>>, %arg8: memref<64x256xbf16, #tpu.memory_space<vmem>>, %arg9: memref<256x64xbf16, #tpu.memory_space<vmem>>, %arg10: memref<64x256xbf16, #tpu.memory_space<vmem>>, %arg11: memref<256x64xbf16, #tpu.memory_space<vmem>>, %arg12: memref<64x128xbf16, #tpu.memory_space<vmem>>, %arg13: memref<64x64xbf16, #tpu.memory_space<vmem>>, %arg14: memref<30x64xf32, #tpu.memory_space<vmem>>, %arg15: memref<3x256xf32, #tpu.memory_space<vmem>>, %arg16: memref<1x16x64xf32, #tpu.memory_space<vmem>>) attributes {dimension_semantics = [#tpu.dimension_semantics<parallel>], iteration_bounds = array<i64: 2>, scalar_prefetch = 0 : i64, scratch_operands = 0 : i64, tpu.core_type = #tpu.core_type<tc>, window_params = [{transform_indices = @transform_0, window_bounds = array<i64: 1, 16, 64>}, {transform_indices = @transform_1, window_bounds = array<i64: 1, 16, 1>}, {transform_indices = @transform_2, window_bounds = array<i64: 1, 1, 16>}, {pipeline_mode = #tpu.pipeline_mode<synchronous>, transform_indices = @transform_3, window_bounds = array<i64: 16, 64>}, {pipeline_mode = #tpu.pipeline_mode<synchronous>, transform_indices = @transform_4, window_bounds = array<i64: 16, 64>}, {pipeline_mode = #tpu.pipeline_mode<synchronous>, transform_indices = @transform_5, window_bounds = array<i64: 64, 320>}, {pipeline_mode = #tpu.pipeline_mode<synchronous>, transform_indices = @transform_6, window_bounds = array<i64: 64, 64>}, {pipeline_mode = #tpu.pipeline_mode<synchronous>, transform_indices = @transform_7, window_bounds = array<i64: 64, 256>}, {pipeline_mode = #tpu.pipeline_mode<synchronous>, transform_indices = @transform_8, window_bounds = array<i64: 256, 64>}, {pipeline_mode = #tpu.pipeline_mode<synchronous>, transform_indices = @transform_9, window_bounds = array<i64: 64, 256>}, {pipeline_mode = #tpu.pipeline_mode<synchronous>, transform_indices = @transform_10, window_bounds = array<i64: 256, 64>}, {pipeline_mode = #tpu.pipeline_mode<synchronous>, transform_indices = @transform_11, window_bounds = array<i64: 64, 128>}, {pipeline_mode = #tpu.pipeline_mode<synchronous>, transform_indices = @transform_12, window_bounds = array<i64: 64, 64>}, {pipeline_mode = #tpu.pipeline_mode<synchronous>, transform_indices = @transform_13, window_bounds = array<i64: 30, 64>}, {pipeline_mode = #tpu.pipeline_mode<synchronous>, transform_indices = @transform_14, window_bounds = array<i64: 3, 256>}, {transform_indices = @transform_15, window_bounds = array<i64: 1, 16, 64>}]} {
    %c0 = arith.constant 0 : index
    %c0_0 = arith.constant 0 : index
    %c0_1 = arith.constant 0 : index
    %0 = vector.load %arg1[%c0, %c0_0, %c0_1] : memref<1x16x64xf32, #tpu.memory_space<vmem>>, vector<1x16x64xf32>
    %1 = vector.shape_cast %0 : vector<1x16x64xf32> to vector<16x64xf32>
    %c0_2 = arith.constant 0 : index
    %c0_3 = arith.constant 0 : index
    %c0_4 = arith.constant 0 : index
    %2 = vector.load %arg2[%c0_2, %c0_3, %c0_4] : memref<1x16x1xf32, #tpu.memory_space<vmem>>, vector<1x16x1xf32>
    %3 = vector.shape_cast %2 : vector<1x16x1xf32> to vector<16x1xf32>
    %c0_5 = arith.constant 0 : index
    %c0_6 = arith.constant 0 : index
    %c0_7 = arith.constant 0 : index
    %4 = vector.load %arg3[%c0_5, %c0_6, %c0_7] : memref<1x1x16xf32, #tpu.memory_space<vmem>>, vector<1x1x16xf32>
    %5 = vector.shape_cast %4 : vector<1x1x16xf32> to vector<1x16xf32>
    %cst = arith.constant 5.000000e-01 : f32
    %6 = vector.broadcast %cst : f32 to vector<16x1xf32>
    %7 = arith.cmpf ogt, %3, %6 : vector<16x1xf32>
    %c0_8 = arith.constant 0 : index
    %c0_9 = arith.constant 0 : index
    %8 = vector.load %arg4[%c0_8, %c0_9] : memref<16x64xf32, #tpu.memory_space<vmem>>, vector<16x64xf32>
    %c0_10 = arith.constant 0 : index
    %c0_11 = arith.constant 0 : index
    %9 = vector.load %arg5[%c0_10, %c0_11] : memref<16x64xf32, #tpu.memory_space<vmem>>, vector<16x64xf32>
    %c0_12 = arith.constant 0 : index
    %c0_13 = arith.constant 0 : index
    %10 = vector.load %arg14[%c0_12, %c0_13] : memref<30x64xf32, #tpu.memory_space<vmem>>, vector<1x64xf32>
    %11 = vector.broadcast %10 : vector<1x64xf32> to vector<16x64xf32>
    %12 = arith.mulf %1, %11 : vector<16x64xf32>
    %c1 = arith.constant 1 : index
    %c0_14 = arith.constant 0 : index
    %13 = vector.load %arg14[%c1, %c0_14] : memref<30x64xf32, #tpu.memory_space<vmem>>, vector<1x64xf32>
    %14 = vector.broadcast %13 : vector<1x64xf32> to vector<16x64xf32>
    %15 = arith.addf %12, %14 : vector<16x64xf32>
    %c0_15 = arith.constant 0 : index
    %c0_16 = arith.constant 0 : index
    %16 = vector.load %arg6[%c0_15, %c0_16] : memref<64x320xbf16, #tpu.memory_space<vmem>>, vector<64x320xbf16>
    %17 = arith.truncf %15 : vector<16x64xf32> to vector<16x64xbf16>
    %cst_17 = arith.constant dense<0.000000e+00> : vector<16x320xf32>
    %18 = tpu.matmul %17, %16, %cst_17 {dimension_numbers = #tpu.dot_dimension_numbers<[1], [0], [0], [1], [0, 0, 1, 1], [], []>} : vector<16x64xbf16>, vector<64x320xbf16>, vector<16x320xf32> -> vector<16x320xf32>
    %19 = vector.extract_strided_slice %18 {offsets = [0, 0], sizes = [16, 64], strides = [1, 1]} : vector<16x320xf32> to vector<16x64xf32>
    %20 = arith.mulf %19, %8 : vector<16x64xf32>
    %21 = vector.extract_strided_slice %18 {offsets = [0, 192], sizes = [16, 64], strides = [1, 1]} : vector<16x320xf32> to vector<16x64xf32>
    %22 = arith.mulf %21, %9 : vector<16x64xf32>
    %23 = arith.addf %20, %22 : vector<16x64xf32>
    %24 = vector.extract_strided_slice %18 {offsets = [0, 64], sizes = [16, 64], strides = [1, 1]} : vector<16x320xf32> to vector<16x64xf32>
    %25 = arith.mulf %24, %8 : vector<16x64xf32>
    %26 = vector.extract_strided_slice %18 {offsets = [0, 256], sizes = [16, 64], strides = [1, 1]} : vector<16x320xf32> to vector<16x64xf32>
    %27 = arith.mulf %26, %9 : vector<16x64xf32>
    %28 = arith.addf %25, %27 : vector<16x64xf32>
    %29 = vector.extract_strided_slice %18 {offsets = [0, 128], sizes = [16, 64], strides = [1, 1]} : vector<16x320xf32> to vector<16x64xf32>
    %cst_18 = arith.constant 5.000000e-01 : f32
    %30 = vector.broadcast %cst_18 : f32 to vector<16x1xf32>
    %31 = arith.cmpf olt, %3, %30 : vector<16x1xf32>
    %cst_19 = arith.constant 5.000000e-01 : f32
    %32 = vector.broadcast %cst_19 : f32 to vector<1x16xf32>
    %33 = arith.cmpf olt, %5, %32 : vector<1x16xf32>
    %34 = vector.broadcast %31 : vector<16x1xi1> to vector<16x16xi1>
    %35 = vector.broadcast %33 : vector<1x16xi1> to vector<16x16xi1>
    %36 = arith.ori %34, %35 : vector<16x16xi1>
    %37 = vector.extract_strided_slice %23 {offsets = [0, 0], sizes = [16, 16], strides = [1, 1]} : vector<16x64xf32> to vector<16x16xf32>
    %38 = arith.truncf %37 : vector<16x16xf32> to vector<16x16xbf16>
    %39 = vector.extract_strided_slice %28 {offsets = [0, 0], sizes = [16, 16], strides = [1, 1]} : vector<16x64xf32> to vector<16x16xf32>
    %40 = arith.truncf %39 : vector<16x16xf32> to vector<16x16xbf16>
    %41 = vector.extract_strided_slice %29 {offsets = [0, 0], sizes = [16, 16], strides = [1, 1]} : vector<16x64xf32> to vector<16x16xf32>
    %42 = arith.truncf %41 : vector<16x16xf32> to vector<16x16xbf16>
    %cst_20 = arith.constant dense<0.000000e+00> : vector<16x16xf32>
    %43 = tpu.matmul %38, %40, %cst_20 {dimension_numbers = #tpu.dot_dimension_numbers<[1], [1], [0], [0], [0, 0, 1, 0], [], []>} : vector<16x16xbf16>, vector<16x16xbf16>, vector<16x16xf32> -> vector<16x16xf32>
    %cst_21 = arith.constant 2.500000e-01 : f32
    %44 = vector.broadcast %cst_21 : f32 to vector<16x16xf32>
    %45 = arith.mulf %43, %44 : vector<16x16xf32>
    %cst_22 = arith.constant -3.40282347E+38 : f32
    %46 = vector.broadcast %cst_22 : f32 to vector<16x16xf32>
    %47 = arith.select %36, %46, %45 : vector<16x16xi1>, vector<16x16xf32>
    %cst_23 = arith.constant dense<0xFF800000> : vector<16xf32>
    %48 = vector.multi_reduction <maximumf>, %47, %cst_23 [1] : vector<16x16xf32> to vector<16xf32>
    %49 = vector.shape_cast %48 : vector<16xf32> to vector<16x1xf32>
    %50 = vector.broadcast %49 : vector<16x1xf32> to vector<16x16xf32>
    %51 = arith.subf %47, %50 : vector<16x16xf32>
    %52 = math.exp %51 : vector<16x16xf32>
    %cst_24 = arith.constant dense<0.000000e+00> : vector<16xf32>
    %53 = vector.multi_reduction <add>, %52, %cst_24 [1] : vector<16x16xf32> to vector<16xf32>
    %54 = vector.shape_cast %53 : vector<16xf32> to vector<16x1xf32>
    %55 = tpu.reciprocal %54 {approx = true} : vector<16x1xf32> -> vector<16x1xf32>
    %56 = vector.broadcast %55 : vector<16x1xf32> to vector<16x16xf32>
    %57 = arith.mulf %52, %56 : vector<16x16xf32>
    %58 = arith.truncf %57 : vector<16x16xf32> to vector<16x16xbf16>
    %cst_25 = arith.constant dense<0.000000e+00> : vector<16x16xf32>
    %59 = tpu.matmul %58, %42, %cst_25 {dimension_numbers = #tpu.dot_dimension_numbers<[1], [0], [0], [1], [0, 0, 1, 1], [], []>} : vector<16x16xbf16>, vector<16x16xbf16>, vector<16x16xf32> -> vector<16x16xf32>
    %60 = vector.extract_strided_slice %23 {offsets = [0, 16], sizes = [16, 16], strides = [1, 1]} : vector<16x64xf32> to vector<16x16xf32>
    %61 = arith.truncf %60 : vector<16x16xf32> to vector<16x16xbf16>
    %62 = vector.extract_strided_slice %28 {offsets = [0, 16], sizes = [16, 16], strides = [1, 1]} : vector<16x64xf32> to vector<16x16xf32>
    %63 = arith.truncf %62 : vector<16x16xf32> to vector<16x16xbf16>
    %64 = vector.extract_strided_slice %29 {offsets = [0, 16], sizes = [16, 16], strides = [1, 1]} : vector<16x64xf32> to vector<16x16xf32>
    %65 = arith.truncf %64 : vector<16x16xf32> to vector<16x16xbf16>
    %cst_26 = arith.constant dense<0.000000e+00> : vector<16x16xf32>
    %66 = tpu.matmul %61, %63, %cst_26 {dimension_numbers = #tpu.dot_dimension_numbers<[1], [1], [0], [0], [0, 0, 1, 0], [], []>} : vector<16x16xbf16>, vector<16x16xbf16>, vector<16x16xf32> -> vector<16x16xf32>
    %cst_27 = arith.constant 2.500000e-01 : f32
    %67 = vector.broadcast %cst_27 : f32 to vector<16x16xf32>
    %68 = arith.mulf %66, %67 : vector<16x16xf32>
    %cst_28 = arith.constant -3.40282347E+38 : f32
    %69 = vector.broadcast %cst_28 : f32 to vector<16x16xf32>
    %70 = arith.select %36, %69, %68 : vector<16x16xi1>, vector<16x16xf32>
    %cst_29 = arith.constant dense<0xFF800000> : vector<16xf32>
    %71 = vector.multi_reduction <maximumf>, %70, %cst_29 [1] : vector<16x16xf32> to vector<16xf32>
    %72 = vector.shape_cast %71 : vector<16xf32> to vector<16x1xf32>
    %73 = vector.broadcast %72 : vector<16x1xf32> to vector<16x16xf32>
    %74 = arith.subf %70, %73 : vector<16x16xf32>
    %75 = math.exp %74 : vector<16x16xf32>
    %cst_30 = arith.constant dense<0.000000e+00> : vector<16xf32>
    %76 = vector.multi_reduction <add>, %75, %cst_30 [1] : vector<16x16xf32> to vector<16xf32>
    %77 = vector.shape_cast %76 : vector<16xf32> to vector<16x1xf32>
    %78 = tpu.reciprocal %77 {approx = true} : vector<16x1xf32> -> vector<16x1xf32>
    %79 = vector.broadcast %78 : vector<16x1xf32> to vector<16x16xf32>
    %80 = arith.mulf %75, %79 : vector<16x16xf32>
    %81 = arith.truncf %80 : vector<16x16xf32> to vector<16x16xbf16>
    %cst_31 = arith.constant dense<0.000000e+00> : vector<16x16xf32>
    %82 = tpu.matmul %81, %65, %cst_31 {dimension_numbers = #tpu.dot_dimension_numbers<[1], [0], [0], [1], [0, 0, 1, 1], [], []>} : vector<16x16xbf16>, vector<16x16xbf16>, vector<16x16xf32> -> vector<16x16xf32>
    %83 = vector.extract_strided_slice %23 {offsets = [0, 32], sizes = [16, 16], strides = [1, 1]} : vector<16x64xf32> to vector<16x16xf32>
    %84 = arith.truncf %83 : vector<16x16xf32> to vector<16x16xbf16>
    %85 = vector.extract_strided_slice %28 {offsets = [0, 32], sizes = [16, 16], strides = [1, 1]} : vector<16x64xf32> to vector<16x16xf32>
    %86 = arith.truncf %85 : vector<16x16xf32> to vector<16x16xbf16>
    %87 = vector.extract_strided_slice %29 {offsets = [0, 32], sizes = [16, 16], strides = [1, 1]} : vector<16x64xf32> to vector<16x16xf32>
    %88 = arith.truncf %87 : vector<16x16xf32> to vector<16x16xbf16>
    %cst_32 = arith.constant dense<0.000000e+00> : vector<16x16xf32>
    %89 = tpu.matmul %84, %86, %cst_32 {dimension_numbers = #tpu.dot_dimension_numbers<[1], [1], [0], [0], [0, 0, 1, 0], [], []>} : vector<16x16xbf16>, vector<16x16xbf16>, vector<16x16xf32> -> vector<16x16xf32>
    %cst_33 = arith.constant 2.500000e-01 : f32
    %90 = vector.broadcast %cst_33 : f32 to vector<16x16xf32>
    %91 = arith.mulf %89, %90 : vector<16x16xf32>
    %cst_34 = arith.constant -3.40282347E+38 : f32
    %92 = vector.broadcast %cst_34 : f32 to vector<16x16xf32>
    %93 = arith.select %36, %92, %91 : vector<16x16xi1>, vector<16x16xf32>
    %cst_35 = arith.constant dense<0xFF800000> : vector<16xf32>
    %94 = vector.multi_reduction <maximumf>, %93, %cst_35 [1] : vector<16x16xf32> to vector<16xf32>
    %95 = vector.shape_cast %94 : vector<16xf32> to vector<16x1xf32>
    %96 = vector.broadcast %95 : vector<16x1xf32> to vector<16x16xf32>
    %97 = arith.subf %93, %96 : vector<16x16xf32>
    %98 = math.exp %97 : vector<16x16xf32>
    %cst_36 = arith.constant dense<0.000000e+00> : vector<16xf32>
    %99 = vector.multi_reduction <add>, %98, %cst_36 [1] : vector<16x16xf32> to vector<16xf32>
    %100 = vector.shape_cast %99 : vector<16xf32> to vector<16x1xf32>
    %101 = tpu.reciprocal %100 {approx = true} : vector<16x1xf32> -> vector<16x1xf32>
    %102 = vector.broadcast %101 : vector<16x1xf32> to vector<16x16xf32>
    %103 = arith.mulf %98, %102 : vector<16x16xf32>
    %104 = arith.truncf %103 : vector<16x16xf32> to vector<16x16xbf16>
    %cst_37 = arith.constant dense<0.000000e+00> : vector<16x16xf32>
    %105 = tpu.matmul %104, %88, %cst_37 {dimension_numbers = #tpu.dot_dimension_numbers<[1], [0], [0], [1], [0, 0, 1, 1], [], []>} : vector<16x16xbf16>, vector<16x16xbf16>, vector<16x16xf32> -> vector<16x16xf32>
    %106 = vector.extract_strided_slice %23 {offsets = [0, 48], sizes = [16, 16], strides = [1, 1]} : vector<16x64xf32> to vector<16x16xf32>
    %107 = arith.truncf %106 : vector<16x16xf32> to vector<16x16xbf16>
    %108 = vector.extract_strided_slice %28 {offsets = [0, 48], sizes = [16, 16], strides = [1, 1]} : vector<16x64xf32> to vector<16x16xf32>
    %109 = arith.truncf %108 : vector<16x16xf32> to vector<16x16xbf16>
    %110 = vector.extract_strided_slice %29 {offsets = [0, 48], sizes = [16, 16], strides = [1, 1]} : vector<16x64xf32> to vector<16x16xf32>
    %111 = arith.truncf %110 : vector<16x16xf32> to vector<16x16xbf16>
    %cst_38 = arith.constant dense<0.000000e+00> : vector<16x16xf32>
    %112 = tpu.matmul %107, %109, %cst_38 {dimension_numbers = #tpu.dot_dimension_numbers<[1], [1], [0], [0], [0, 0, 1, 0], [], []>} : vector<16x16xbf16>, vector<16x16xbf16>, vector<16x16xf32> -> vector<16x16xf32>
    %cst_39 = arith.constant 2.500000e-01 : f32
    %113 = vector.broadcast %cst_39 : f32 to vector<16x16xf32>
    %114 = arith.mulf %112, %113 : vector<16x16xf32>
    %cst_40 = arith.constant -3.40282347E+38 : f32
    %115 = vector.broadcast %cst_40 : f32 to vector<16x16xf32>
    %116 = arith.select %36, %115, %114 : vector<16x16xi1>, vector<16x16xf32>
    %cst_41 = arith.constant dense<0xFF800000> : vector<16xf32>
    %117 = vector.multi_reduction <maximumf>, %116, %cst_41 [1] : vector<16x16xf32> to vector<16xf32>
    %118 = vector.shape_cast %117 : vector<16xf32> to vector<16x1xf32>
    %119 = vector.broadcast %118 : vector<16x1xf32> to vector<16x16xf32>
    %120 = arith.subf %116, %119 : vector<16x16xf32>
    %121 = math.exp %120 : vector<16x16xf32>
    %cst_42 = arith.constant dense<0.000000e+00> : vector<16xf32>
    %122 = vector.multi_reduction <add>, %121, %cst_42 [1] : vector<16x16xf32> to vector<16xf32>
    %123 = vector.shape_cast %122 : vector<16xf32> to vector<16x1xf32>
    %124 = tpu.reciprocal %123 {approx = true} : vector<16x1xf32> -> vector<16x1xf32>
    %125 = vector.broadcast %124 : vector<16x1xf32> to vector<16x16xf32>
    %126 = arith.mulf %121, %125 : vector<16x16xf32>
    %127 = arith.truncf %126 : vector<16x16xf32> to vector<16x16xbf16>
    %cst_43 = arith.constant dense<0.000000e+00> : vector<16x16xf32>
    %128 = tpu.matmul %127, %111, %cst_43 {dimension_numbers = #tpu.dot_dimension_numbers<[1], [0], [0], [1], [0, 0, 1, 1], [], []>} : vector<16x16xbf16>, vector<16x16xbf16>, vector<16x16xf32> -> vector<16x16xf32>
    %129 = tpu.concatenate %59, %82, %105, %128 in 1 : vector<16x16xf32>, vector<16x16xf32>, vector<16x16xf32>, vector<16x16xf32> -> vector<16x64xf32>
    %c0_44 = arith.constant 0 : index
    %c0_45 = arith.constant 0 : index
    %130 = vector.load %arg7[%c0_44, %c0_45] : memref<64x64xbf16, #tpu.memory_space<vmem>>, vector<64x64xbf16>
    %131 = arith.truncf %129 : vector<16x64xf32> to vector<16x64xbf16>
    %cst_46 = arith.constant dense<0.000000e+00> : vector<16x64xf32>
    %132 = tpu.matmul %131, %130, %cst_46 {dimension_numbers = #tpu.dot_dimension_numbers<[1], [0], [0], [1], [0, 0, 1, 1], [], []>} : vector<16x64xbf16>, vector<64x64xbf16>, vector<16x64xf32> -> vector<16x64xf32>
    %133 = arith.addf %1, %132 : vector<16x64xf32>
    %c2 = arith.constant 2 : index
    %c0_47 = arith.constant 0 : index
    %134 = vector.load %arg14[%c2, %c0_47] : memref<30x64xf32, #tpu.memory_space<vmem>>, vector<1x64xf32>
    %c3 = arith.constant 3 : index
    %c0_48 = arith.constant 0 : index
    %135 = vector.load %arg14[%c3, %c0_48] : memref<30x64xf32, #tpu.memory_space<vmem>>, vector<1x64xf32>
    %c4 = arith.constant 4 : index
    %c0_49 = arith.constant 0 : index
    %136 = vector.load %arg14[%c4, %c0_49] : memref<30x64xf32, #tpu.memory_space<vmem>>, vector<1x64xf32>
    %c5 = arith.constant 5 : index
    %c0_50 = arith.constant 0 : index
    %137 = vector.load %arg14[%c5, %c0_50] : memref<30x64xf32, #tpu.memory_space<vmem>>, vector<1x64xf32>
    %c0_51 = arith.constant 0 : index
    %c0_52 = arith.constant 0 : index
    %138 = vector.load %arg8[%c0_51, %c0_52] : memref<64x256xbf16, #tpu.memory_space<vmem>>, vector<64x256xbf16>
    %c0_53 = arith.constant 0 : index
    %c0_54 = arith.constant 0 : index
    %139 = vector.load %arg15[%c0_53, %c0_54] : memref<3x256xf32, #tpu.memory_space<vmem>>, vector<1x256xf32>
    %c0_55 = arith.constant 0 : index
    %c0_56 = arith.constant 0 : index
    %140 = vector.load %arg9[%c0_55, %c0_56] : memref<256x64xbf16, #tpu.memory_space<vmem>>, vector<256x64xbf16>
    %c6 = arith.constant 6 : index
    %c0_57 = arith.constant 0 : index
    %141 = vector.load %arg14[%c6, %c0_57] : memref<30x64xf32, #tpu.memory_space<vmem>>, vector<1x64xf32>
    %c7 = arith.constant 7 : index
    %c0_58 = arith.constant 0 : index
    %142 = vector.load %arg14[%c7, %c0_58] : memref<30x64xf32, #tpu.memory_space<vmem>>, vector<1x64xf32>
    %c8 = arith.constant 8 : index
    %c0_59 = arith.constant 0 : index
    %143 = vector.load %arg14[%c8, %c0_59] : memref<30x64xf32, #tpu.memory_space<vmem>>, vector<1x64xf32>
    %cst_60 = arith.constant dense<0.000000e+00> : vector<16xf32>
    %144 = vector.multi_reduction <add>, %133, %cst_60 [1] : vector<16x64xf32> to vector<16xf32>
    %145 = vector.shape_cast %144 : vector<16xf32> to vector<16x1xf32>
    %cst_61 = arith.constant 6.400000e+01 : f32
    %146 = vector.broadcast %cst_61 : f32 to vector<16x1xf32>
    %147 = arith.divf %145, %146 : vector<16x1xf32>
    %148 = vector.broadcast %147 : vector<16x1xf32> to vector<16x64xf32>
    %149 = arith.subf %133, %148 : vector<16x64xf32>
    %150 = arith.mulf %149, %149 : vector<16x64xf32>
    %cst_62 = arith.constant dense<0.000000e+00> : vector<16xf32>
    %151 = vector.multi_reduction <add>, %150, %cst_62 [1] : vector<16x64xf32> to vector<16xf32>
    %152 = vector.shape_cast %151 : vector<16xf32> to vector<16x1xf32>
    %cst_63 = arith.constant 6.400000e+01 : f32
    %153 = vector.broadcast %cst_63 : f32 to vector<16x1xf32>
    %154 = arith.divf %152, %153 : vector<16x1xf32>
    %155 = vector.broadcast %147 : vector<16x1xf32> to vector<16x64xf32>
    %156 = arith.subf %133, %155 : vector<16x64xf32>
    %cst_64 = arith.constant 9.99999974E-6 : f32
    %157 = vector.broadcast %cst_64 : f32 to vector<16x1xf32>
    %158 = arith.addf %154, %157 : vector<16x1xf32>
    %159 = math.rsqrt %158 : vector<16x1xf32>
    %160 = vector.broadcast %159 : vector<16x1xf32> to vector<16x64xf32>
    %161 = arith.mulf %156, %160 : vector<16x64xf32>
    %162 = vector.broadcast %134 : vector<1x64xf32> to vector<16x64xf32>
    %163 = arith.mulf %161, %162 : vector<16x64xf32>
    %164 = vector.broadcast %135 : vector<1x64xf32> to vector<16x64xf32>
    %165 = arith.addf %163, %164 : vector<16x64xf32>
    %166 = vector.broadcast %136 : vector<1x64xf32> to vector<16x64xf32>
    %167 = arith.mulf %165, %166 : vector<16x64xf32>
    %168 = vector.broadcast %137 : vector<1x64xf32> to vector<16x64xf32>
    %169 = arith.addf %167, %168 : vector<16x64xf32>
    %170 = arith.truncf %169 : vector<16x64xf32> to vector<16x64xbf16>
    %cst_65 = arith.constant dense<0.000000e+00> : vector<16x256xf32>
    %171 = tpu.matmul %170, %138, %cst_65 {dimension_numbers = #tpu.dot_dimension_numbers<[1], [0], [0], [1], [0, 0, 1, 1], [], []>} : vector<16x64xbf16>, vector<64x256xbf16>, vector<16x256xf32> -> vector<16x256xf32>
    %172 = vector.broadcast %139 : vector<1x256xf32> to vector<16x256xf32>
    %173 = arith.addf %171, %172 : vector<16x256xf32>
    %174 = arith.negf %173 : vector<16x256xf32>
    %175 = math.exp %174 : vector<16x256xf32>
    %cst_66 = arith.constant 1.000000e+00 : f32
    %176 = vector.broadcast %cst_66 : f32 to vector<16x256xf32>
    %177 = arith.addf %176, %175 : vector<16x256xf32>
    %178 = arith.divf %176, %177 : vector<16x256xf32>
    %179 = arith.mulf %173, %178 : vector<16x256xf32>
    %180 = arith.truncf %179 : vector<16x256xf32> to vector<16x256xbf16>
    %cst_67 = arith.constant dense<0.000000e+00> : vector<16x64xf32>
    %181 = tpu.matmul %180, %140, %cst_67 {dimension_numbers = #tpu.dot_dimension_numbers<[1], [0], [0], [1], [0, 0, 1, 1], [], []>} : vector<16x256xbf16>, vector<256x64xbf16>, vector<16x64xf32> -> vector<16x64xf32>
    %182 = arith.addf %165, %181 : vector<16x64xf32>
    %183 = vector.broadcast %141 : vector<1x64xf32> to vector<16x64xf32>
    %184 = arith.addf %182, %183 : vector<16x64xf32>
    %cst_68 = arith.constant dense<0.000000e+00> : vector<16xf32>
    %185 = vector.multi_reduction <add>, %184, %cst_68 [1] : vector<16x64xf32> to vector<16xf32>
    %186 = vector.shape_cast %185 : vector<16xf32> to vector<16x1xf32>
    %cst_69 = arith.constant 6.400000e+01 : f32
    %187 = vector.broadcast %cst_69 : f32 to vector<16x1xf32>
    %188 = arith.divf %186, %187 : vector<16x1xf32>
    %189 = vector.broadcast %188 : vector<16x1xf32> to vector<16x64xf32>
    %190 = arith.subf %184, %189 : vector<16x64xf32>
    %191 = arith.mulf %190, %190 : vector<16x64xf32>
    %cst_70 = arith.constant dense<0.000000e+00> : vector<16xf32>
    %192 = vector.multi_reduction <add>, %191, %cst_70 [1] : vector<16x64xf32> to vector<16xf32>
    %193 = vector.shape_cast %192 : vector<16xf32> to vector<16x1xf32>
    %cst_71 = arith.constant 6.400000e+01 : f32
    %194 = vector.broadcast %cst_71 : f32 to vector<16x1xf32>
    %195 = arith.divf %193, %194 : vector<16x1xf32>
    %196 = vector.broadcast %188 : vector<16x1xf32> to vector<16x64xf32>
    %197 = arith.subf %184, %196 : vector<16x64xf32>
    %cst_72 = arith.constant 9.99999974E-6 : f32
    %198 = vector.broadcast %cst_72 : f32 to vector<16x1xf32>
    %199 = arith.addf %195, %198 : vector<16x1xf32>
    %200 = math.rsqrt %199 : vector<16x1xf32>
    %201 = vector.broadcast %200 : vector<16x1xf32> to vector<16x64xf32>
    %202 = arith.mulf %197, %201 : vector<16x64xf32>
    %203 = vector.broadcast %142 : vector<1x64xf32> to vector<16x64xf32>
    %204 = arith.mulf %202, %203 : vector<16x64xf32>
    %205 = vector.broadcast %143 : vector<1x64xf32> to vector<16x64xf32>
    %206 = arith.addf %204, %205 : vector<16x64xf32>
    %207 = vector.shape_cast %7 : vector<16x1xi1> to vector<16x1xi1>
    %208 = vector.broadcast %207 : vector<16x1xi1> to vector<16x64xi1>
    %209 = arith.select %208, %206, %133 : vector<16x64xi1>, vector<16x64xf32>
    %c9 = arith.constant 9 : index
    %c0_73 = arith.constant 0 : index
    %210 = vector.load %arg14[%c9, %c0_73] : memref<30x64xf32, #tpu.memory_space<vmem>>, vector<1x64xf32>
    %211 = vector.broadcast %210 : vector<1x64xf32> to vector<16x64xf32>
    %212 = arith.mulf %209, %211 : vector<16x64xf32>
    %c10 = arith.constant 10 : index
    %c0_74 = arith.constant 0 : index
    %213 = vector.load %arg14[%c10, %c0_74] : memref<30x64xf32, #tpu.memory_space<vmem>>, vector<1x64xf32>
    %214 = vector.broadcast %213 : vector<1x64xf32> to vector<16x64xf32>
    %215 = arith.addf %212, %214 : vector<16x64xf32>
    %cst_75 = arith.constant 0.000000e+00 : f32
    %216 = vector.shape_cast %7 : vector<16x1xi1> to vector<16x1xi1>
    %217 = vector.broadcast %216 : vector<16x1xi1> to vector<16x64xi1>
    %218 = vector.broadcast %cst_75 : f32 to vector<16x64xf32>
    %219 = arith.select %217, %215, %218 : vector<16x64xi1>, vector<16x64xf32>
    %c0_76 = arith.constant 0 : index
    %c0_77 = arith.constant 0 : index
    %220 = vector.load %arg12[%c0_76, %c0_77] : memref<64x128xbf16, #tpu.memory_space<vmem>>, vector<64x128xbf16>
    %221 = arith.truncf %219 : vector<16x64xf32> to vector<16x64xbf16>
    %cst_78 = arith.constant dense<0.000000e+00> : vector<16x128xf32>
    %222 = tpu.matmul %221, %220, %cst_78 {dimension_numbers = #tpu.dot_dimension_numbers<[1], [0], [0], [1], [0, 0, 1, 1], [], []>} : vector<16x64xbf16>, vector<64x128xbf16>, vector<16x128xf32> -> vector<16x128xf32>
    %c2_79 = arith.constant 2 : index
    %c0_80 = arith.constant 0 : index
    %223 = vector.load %arg15[%c2_79, %c0_80] : memref<3x256xf32, #tpu.memory_space<vmem>>, vector<1x128xf32>
    %224 = vector.broadcast %223 : vector<1x128xf32> to vector<16x128xf32>
    %225 = arith.addf %222, %224 : vector<16x128xf32>
    %226 = vector.extract_strided_slice %225 {offsets = [0, 0], sizes = [16, 64], strides = [1, 1]} : vector<16x128xf32> to vector<16x64xf32>
    %227 = vector.extract_strided_slice %225 {offsets = [0, 64], sizes = [16, 64], strides = [1, 1]} : vector<16x128xf32> to vector<16x64xf32>
    %228 = arith.negf %227 : vector<16x64xf32>
    %229 = math.exp %228 : vector<16x64xf32>
    %cst_81 = arith.constant 1.000000e+00 : f32
    %230 = vector.broadcast %cst_81 : f32 to vector<16x64xf32>
    %231 = arith.addf %230, %229 : vector<16x64xf32>
    %232 = arith.divf %230, %231 : vector<16x64xf32>
    %233 = arith.mulf %226, %232 : vector<16x64xf32>
    %234 = tpu.iota {dimensions = array<i32: 0>} : vector<16x16xi32>
    %235 = tpu.iota {dimensions = array<i32: 1>} : vector<16x16xi32>
    %cst_82 = arith.constant 0.000000e+00 : f32
    %236 = vector.broadcast %cst_82 : f32 to vector<16x64xf32>
    %c-3_i32 = arith.constant -3 : i32
    %237 = vector.broadcast %c-3_i32 : i32 to vector<16x16xi32>
    %238 = arith.addi %234, %237 : vector<16x16xi32>
    %239 = arith.cmpi eq, %235, %238 : vector<16x16xi32>
    %240 = arith.extui %239 : vector<16x16xi1> to vector<16x16xi32>
    %241 = arith.sitofp %240 : vector<16x16xi32> to vector<16x16xf32>
    %cst_83 = arith.constant dense<0.000000e+00> : vector<16x64xf32>
    %242 = tpu.matmul %241, %233, %cst_83 {dimension_numbers = #tpu.dot_dimension_numbers<[1], [0], [0], [1], [0, 0, 1, 1], [], []>} : vector<16x16xf32>, vector<16x64xf32>, vector<16x64xf32> -> vector<16x64xf32>
    %c23 = arith.constant 23 : index
    %c0_84 = arith.constant 0 : index
    %243 = vector.load %arg14[%c23, %c0_84] : memref<30x64xf32, #tpu.memory_space<vmem>>, vector<1x64xf32>
    %244 = vector.broadcast %243 : vector<1x64xf32> to vector<16x64xf32>
    %245 = arith.mulf %242, %244 : vector<16x64xf32>
    %246 = arith.addf %236, %245 : vector<16x64xf32>
    %c-2_i32 = arith.constant -2 : i32
    %247 = vector.broadcast %c-2_i32 : i32 to vector<16x16xi32>
    %248 = arith.addi %234, %247 : vector<16x16xi32>
    %249 = arith.cmpi eq, %235, %248 : vector<16x16xi32>
    %250 = arith.extui %249 : vector<16x16xi1> to vector<16x16xi32>
    %251 = arith.sitofp %250 : vector<16x16xi32> to vector<16x16xf32>
    %cst_85 = arith.constant dense<0.000000e+00> : vector<16x64xf32>
    %252 = tpu.matmul %251, %233, %cst_85 {dimension_numbers = #tpu.dot_dimension_numbers<[1], [0], [0], [1], [0, 0, 1, 1], [], []>} : vector<16x16xf32>, vector<16x64xf32>, vector<16x64xf32> -> vector<16x64xf32>
    %c24 = arith.constant 24 : index
    %c0_86 = arith.constant 0 : index
    %253 = vector.load %arg14[%c24, %c0_86] : memref<30x64xf32, #tpu.memory_space<vmem>>, vector<1x64xf32>
    %254 = vector.broadcast %253 : vector<1x64xf32> to vector<16x64xf32>
    %255 = arith.mulf %252, %254 : vector<16x64xf32>
    %256 = arith.addf %246, %255 : vector<16x64xf32>
    %c-1_i32 = arith.constant -1 : i32
    %257 = vector.broadcast %c-1_i32 : i32 to vector<16x16xi32>
    %258 = arith.addi %234, %257 : vector<16x16xi32>
    %259 = arith.cmpi eq, %235, %258 : vector<16x16xi32>
    %260 = arith.extui %259 : vector<16x16xi1> to vector<16x16xi32>
    %261 = arith.sitofp %260 : vector<16x16xi32> to vector<16x16xf32>
    %cst_87 = arith.constant dense<0.000000e+00> : vector<16x64xf32>
    %262 = tpu.matmul %261, %233, %cst_87 {dimension_numbers = #tpu.dot_dimension_numbers<[1], [0], [0], [1], [0, 0, 1, 1], [], []>} : vector<16x16xf32>, vector<16x64xf32>, vector<16x64xf32> -> vector<16x64xf32>
    %c25 = arith.constant 25 : index
    %c0_88 = arith.constant 0 : index
    %263 = vector.load %arg14[%c25, %c0_88] : memref<30x64xf32, #tpu.memory_space<vmem>>, vector<1x64xf32>
    %264 = vector.broadcast %263 : vector<1x64xf32> to vector<16x64xf32>
    %265 = arith.mulf %262, %264 : vector<16x64xf32>
    %266 = arith.addf %256, %265 : vector<16x64xf32>
    %c0_i32 = arith.constant 0 : i32
    %267 = vector.broadcast %c0_i32 : i32 to vector<16x16xi32>
    %268 = arith.addi %234, %267 : vector<16x16xi32>
    %269 = arith.cmpi eq, %235, %268 : vector<16x16xi32>
    %270 = arith.extui %269 : vector<16x16xi1> to vector<16x16xi32>
    %271 = arith.sitofp %270 : vector<16x16xi32> to vector<16x16xf32>
    %cst_89 = arith.constant dense<0.000000e+00> : vector<16x64xf32>
    %272 = tpu.matmul %271, %233, %cst_89 {dimension_numbers = #tpu.dot_dimension_numbers<[1], [0], [0], [1], [0, 0, 1, 1], [], []>} : vector<16x16xf32>, vector<16x64xf32>, vector<16x64xf32> -> vector<16x64xf32>
    %c26 = arith.constant 26 : index
    %c0_90 = arith.constant 0 : index
    %273 = vector.load %arg14[%c26, %c0_90] : memref<30x64xf32, #tpu.memory_space<vmem>>, vector<1x64xf32>
    %274 = vector.broadcast %273 : vector<1x64xf32> to vector<16x64xf32>
    %275 = arith.mulf %272, %274 : vector<16x64xf32>
    %276 = arith.addf %266, %275 : vector<16x64xf32>
    %c1_i32 = arith.constant 1 : i32
    %277 = vector.broadcast %c1_i32 : i32 to vector<16x16xi32>
    %278 = arith.addi %234, %277 : vector<16x16xi32>
    %279 = arith.cmpi eq, %235, %278 : vector<16x16xi32>
    %280 = arith.extui %279 : vector<16x16xi1> to vector<16x16xi32>
    %281 = arith.sitofp %280 : vector<16x16xi32> to vector<16x16xf32>
    %cst_91 = arith.constant dense<0.000000e+00> : vector<16x64xf32>
    %282 = tpu.matmul %281, %233, %cst_91 {dimension_numbers = #tpu.dot_dimension_numbers<[1], [0], [0], [1], [0, 0, 1, 1], [], []>} : vector<16x16xf32>, vector<16x64xf32>, vector<16x64xf32> -> vector<16x64xf32>
    %c27 = arith.constant 27 : index
    %c0_92 = arith.constant 0 : index
    %283 = vector.load %arg14[%c27, %c0_92] : memref<30x64xf32, #tpu.memory_space<vmem>>, vector<1x64xf32>
    %284 = vector.broadcast %283 : vector<1x64xf32> to vector<16x64xf32>
    %285 = arith.mulf %282, %284 : vector<16x64xf32>
    %286 = arith.addf %276, %285 : vector<16x64xf32>
    %c2_i32 = arith.constant 2 : i32
    %287 = vector.broadcast %c2_i32 : i32 to vector<16x16xi32>
    %288 = arith.addi %234, %287 : vector<16x16xi32>
    %289 = arith.cmpi eq, %235, %288 : vector<16x16xi32>
    %290 = arith.extui %289 : vector<16x16xi1> to vector<16x16xi32>
    %291 = arith.sitofp %290 : vector<16x16xi32> to vector<16x16xf32>
    %cst_93 = arith.constant dense<0.000000e+00> : vector<16x64xf32>
    %292 = tpu.matmul %291, %233, %cst_93 {dimension_numbers = #tpu.dot_dimension_numbers<[1], [0], [0], [1], [0, 0, 1, 1], [], []>} : vector<16x16xf32>, vector<16x64xf32>, vector<16x64xf32> -> vector<16x64xf32>
    %c28 = arith.constant 28 : index
    %c0_94 = arith.constant 0 : index
    %293 = vector.load %arg14[%c28, %c0_94] : memref<30x64xf32, #tpu.memory_space<vmem>>, vector<1x64xf32>
    %294 = vector.broadcast %293 : vector<1x64xf32> to vector<16x64xf32>
    %295 = arith.mulf %292, %294 : vector<16x64xf32>
    %296 = arith.addf %286, %295 : vector<16x64xf32>
    %c3_i32 = arith.constant 3 : i32
    %297 = vector.broadcast %c3_i32 : i32 to vector<16x16xi32>
    %298 = arith.addi %234, %297 : vector<16x16xi32>
    %299 = arith.cmpi eq, %235, %298 : vector<16x16xi32>
    %300 = arith.extui %299 : vector<16x16xi1> to vector<16x16xi32>
    %301 = arith.sitofp %300 : vector<16x16xi32> to vector<16x16xf32>
    %cst_95 = arith.constant dense<0.000000e+00> : vector<16x64xf32>
    %302 = tpu.matmul %301, %233, %cst_95 {dimension_numbers = #tpu.dot_dimension_numbers<[1], [0], [0], [1], [0, 0, 1, 1], [], []>} : vector<16x16xf32>, vector<16x64xf32>, vector<16x64xf32> -> vector<16x64xf32>
    %c29 = arith.constant 29 : index
    %c0_96 = arith.constant 0 : index
    %303 = vector.load %arg14[%c29, %c0_96] : memref<30x64xf32, #tpu.memory_space<vmem>>, vector<1x64xf32>
    %304 = vector.broadcast %303 : vector<1x64xf32> to vector<16x64xf32>
    %305 = arith.mulf %302, %304 : vector<16x64xf32>
    %306 = arith.addf %296, %305 : vector<16x64xf32>
    %c13 = arith.constant 13 : index
    %c0_97 = arith.constant 0 : index
    %307 = vector.load %arg14[%c13, %c0_97] : memref<30x64xf32, #tpu.memory_space<vmem>>, vector<1x64xf32>
    %308 = vector.broadcast %307 : vector<1x64xf32> to vector<16x64xf32>
    %309 = arith.subf %306, %308 : vector<16x64xf32>
    %c14 = arith.constant 14 : index
    %c0_98 = arith.constant 0 : index
    %310 = vector.load %arg14[%c14, %c0_98] : memref<30x64xf32, #tpu.memory_space<vmem>>, vector<1x64xf32>
    %cst_99 = arith.constant 9.99999974E-6 : f32
    %311 = vector.broadcast %cst_99 : f32 to vector<1x64xf32>
    %312 = arith.addf %310, %311 : vector<1x64xf32>
    %313 = math.rsqrt %312 : vector<1x64xf32>
    %314 = vector.broadcast %313 : vector<1x64xf32> to vector<16x64xf32>
    %315 = arith.mulf %309, %314 : vector<16x64xf32>
    %c11 = arith.constant 11 : index
    %c0_100 = arith.constant 0 : index
    %316 = vector.load %arg14[%c11, %c0_100] : memref<30x64xf32, #tpu.memory_space<vmem>>, vector<1x64xf32>
    %317 = vector.broadcast %316 : vector<1x64xf32> to vector<16x64xf32>
    %318 = arith.mulf %315, %317 : vector<16x64xf32>
    %c12 = arith.constant 12 : index
    %c0_101 = arith.constant 0 : index
    %319 = vector.load %arg14[%c12, %c0_101] : memref<30x64xf32, #tpu.memory_space<vmem>>, vector<1x64xf32>
    %320 = vector.broadcast %319 : vector<1x64xf32> to vector<16x64xf32>
    %321 = arith.addf %318, %320 : vector<16x64xf32>
    %322 = vector.shape_cast %7 : vector<16x1xi1> to vector<16x1xi1>
    %323 = vector.broadcast %322 : vector<16x1xi1> to vector<16x64xi1>
    %324 = arith.select %323, %321, %306 : vector<16x64xi1>, vector<16x64xf32>
    %325 = arith.negf %324 : vector<16x64xf32>
    %326 = math.exp %325 : vector<16x64xf32>
    %cst_102 = arith.constant 1.000000e+00 : f32
    %327 = vector.broadcast %cst_102 : f32 to vector<16x64xf32>
    %328 = arith.addf %327, %326 : vector<16x64xf32>
    %329 = arith.divf %327, %328 : vector<16x64xf32>
    %330 = arith.mulf %324, %329 : vector<16x64xf32>
    %c0_103 = arith.constant 0 : index
    %c0_104 = arith.constant 0 : index
    %331 = vector.load %arg13[%c0_103, %c0_104] : memref<64x64xbf16, #tpu.memory_space<vmem>>, vector<64x64xbf16>
    %332 = arith.truncf %330 : vector<16x64xf32> to vector<16x64xbf16>
    %cst_105 = arith.constant dense<0.000000e+00> : vector<16x64xf32>
    %333 = tpu.matmul %332, %331, %cst_105 {dimension_numbers = #tpu.dot_dimension_numbers<[1], [0], [0], [1], [0, 0, 1, 1], [], []>} : vector<16x64xbf16>, vector<64x64xbf16>, vector<16x64xf32> -> vector<16x64xf32>
    %c15 = arith.constant 15 : index
    %c0_106 = arith.constant 0 : index
    %334 = vector.load %arg14[%c15, %c0_106] : memref<30x64xf32, #tpu.memory_space<vmem>>, vector<1x64xf32>
    %335 = vector.broadcast %334 : vector<1x64xf32> to vector<16x64xf32>
    %336 = arith.addf %333, %335 : vector<16x64xf32>
    %cst_107 = arith.constant 0.000000e+00 : f32
    %337 = vector.shape_cast %7 : vector<16x1xi1> to vector<16x1xi1>
    %338 = vector.broadcast %337 : vector<16x1xi1> to vector<16x64xi1>
    %339 = vector.broadcast %cst_107 : f32 to vector<16x64xf32>
    %340 = arith.select %338, %336, %339 : vector<16x64xi1>, vector<16x64xf32>
    %341 = arith.addf %209, %340 : vector<16x64xf32>
    %c16 = arith.constant 16 : index
    %c0_108 = arith.constant 0 : index
    %342 = vector.load %arg14[%c16, %c0_108] : memref<30x64xf32, #tpu.memory_space<vmem>>, vector<1x64xf32>
    %c17 = arith.constant 17 : index
    %c0_109 = arith.constant 0 : index
    %343 = vector.load %arg14[%c17, %c0_109] : memref<30x64xf32, #tpu.memory_space<vmem>>, vector<1x64xf32>
    %c18 = arith.constant 18 : index
    %c0_110 = arith.constant 0 : index
    %344 = vector.load %arg14[%c18, %c0_110] : memref<30x64xf32, #tpu.memory_space<vmem>>, vector<1x64xf32>
    %c19 = arith.constant 19 : index
    %c0_111 = arith.constant 0 : index
    %345 = vector.load %arg14[%c19, %c0_111] : memref<30x64xf32, #tpu.memory_space<vmem>>, vector<1x64xf32>
    %c0_112 = arith.constant 0 : index
    %c0_113 = arith.constant 0 : index
    %346 = vector.load %arg10[%c0_112, %c0_113] : memref<64x256xbf16, #tpu.memory_space<vmem>>, vector<64x256xbf16>
    %c1_114 = arith.constant 1 : index
    %c0_115 = arith.constant 0 : index
    %347 = vector.load %arg15[%c1_114, %c0_115] : memref<3x256xf32, #tpu.memory_space<vmem>>, vector<1x256xf32>
    %c0_116 = arith.constant 0 : index
    %c0_117 = arith.constant 0 : index
    %348 = vector.load %arg11[%c0_116, %c0_117] : memref<256x64xbf16, #tpu.memory_space<vmem>>, vector<256x64xbf16>
    %c20 = arith.constant 20 : index
    %c0_118 = arith.constant 0 : index
    %349 = vector.load %arg14[%c20, %c0_118] : memref<30x64xf32, #tpu.memory_space<vmem>>, vector<1x64xf32>
    %c21 = arith.constant 21 : index
    %c0_119 = arith.constant 0 : index
    %350 = vector.load %arg14[%c21, %c0_119] : memref<30x64xf32, #tpu.memory_space<vmem>>, vector<1x64xf32>
    %c22 = arith.constant 22 : index
    %c0_120 = arith.constant 0 : index
    %351 = vector.load %arg14[%c22, %c0_120] : memref<30x64xf32, #tpu.memory_space<vmem>>, vector<1x64xf32>
    %cst_121 = arith.constant dense<0.000000e+00> : vector<16xf32>
    %352 = vector.multi_reduction <add>, %341, %cst_121 [1] : vector<16x64xf32> to vector<16xf32>
    %353 = vector.shape_cast %352 : vector<16xf32> to vector<16x1xf32>
    %cst_122 = arith.constant 6.400000e+01 : f32
    %354 = vector.broadcast %cst_122 : f32 to vector<16x1xf32>
    %355 = arith.divf %353, %354 : vector<16x1xf32>
    %356 = vector.broadcast %355 : vector<16x1xf32> to vector<16x64xf32>
    %357 = arith.subf %341, %356 : vector<16x64xf32>
    %358 = arith.mulf %357, %357 : vector<16x64xf32>
    %cst_123 = arith.constant dense<0.000000e+00> : vector<16xf32>
    %359 = vector.multi_reduction <add>, %358, %cst_123 [1] : vector<16x64xf32> to vector<16xf32>
    %360 = vector.shape_cast %359 : vector<16xf32> to vector<16x1xf32>
    %cst_124 = arith.constant 6.400000e+01 : f32
    %361 = vector.broadcast %cst_124 : f32 to vector<16x1xf32>
    %362 = arith.divf %360, %361 : vector<16x1xf32>
    %363 = vector.broadcast %355 : vector<16x1xf32> to vector<16x64xf32>
    %364 = arith.subf %341, %363 : vector<16x64xf32>
    %cst_125 = arith.constant 9.99999974E-6 : f32
    %365 = vector.broadcast %cst_125 : f32 to vector<16x1xf32>
    %366 = arith.addf %362, %365 : vector<16x1xf32>
    %367 = math.rsqrt %366 : vector<16x1xf32>
    %368 = vector.broadcast %367 : vector<16x1xf32> to vector<16x64xf32>
    %369 = arith.mulf %364, %368 : vector<16x64xf32>
    %370 = vector.broadcast %342 : vector<1x64xf32> to vector<16x64xf32>
    %371 = arith.mulf %369, %370 : vector<16x64xf32>
    %372 = vector.broadcast %343 : vector<1x64xf32> to vector<16x64xf32>
    %373 = arith.addf %371, %372 : vector<16x64xf32>
    %374 = vector.broadcast %344 : vector<1x64xf32> to vector<16x64xf32>
    %375 = arith.mulf %373, %374 : vector<16x64xf32>
    %376 = vector.broadcast %345 : vector<1x64xf32> to vector<16x64xf32>
    %377 = arith.addf %375, %376 : vector<16x64xf32>
    %378 = arith.truncf %377 : vector<16x64xf32> to vector<16x64xbf16>
    %cst_126 = arith.constant dense<0.000000e+00> : vector<16x256xf32>
    %379 = tpu.matmul %378, %346, %cst_126 {dimension_numbers = #tpu.dot_dimension_numbers<[1], [0], [0], [1], [0, 0, 1, 1], [], []>} : vector<16x64xbf16>, vector<64x256xbf16>, vector<16x256xf32> -> vector<16x256xf32>
    %380 = vector.broadcast %347 : vector<1x256xf32> to vector<16x256xf32>
    %381 = arith.addf %379, %380 : vector<16x256xf32>
    %382 = arith.negf %381 : vector<16x256xf32>
    %383 = math.exp %382 : vector<16x256xf32>
    %cst_127 = arith.constant 1.000000e+00 : f32
    %384 = vector.broadcast %cst_127 : f32 to vector<16x256xf32>
    %385 = arith.addf %384, %383 : vector<16x256xf32>
    %386 = arith.divf %384, %385 : vector<16x256xf32>
    %387 = arith.mulf %381, %386 : vector<16x256xf32>
    %388 = arith.truncf %387 : vector<16x256xf32> to vector<16x256xbf16>
    %cst_128 = arith.constant dense<0.000000e+00> : vector<16x64xf32>
    %389 = tpu.matmul %388, %348, %cst_128 {dimension_numbers = #tpu.dot_dimension_numbers<[1], [0], [0], [1], [0, 0, 1, 1], [], []>} : vector<16x256xbf16>, vector<256x64xbf16>, vector<16x64xf32> -> vector<16x64xf32>
    %390 = arith.addf %373, %389 : vector<16x64xf32>
    %391 = vector.broadcast %349 : vector<1x64xf32> to vector<16x64xf32>
    %392 = arith.addf %390, %391 : vector<16x64xf32>
    %cst_129 = arith.constant dense<0.000000e+00> : vector<16xf32>
    %393 = vector.multi_reduction <add>, %392, %cst_129 [1] : vector<16x64xf32> to vector<16xf32>
    %394 = vector.shape_cast %393 : vector<16xf32> to vector<16x1xf32>
    %cst_130 = arith.constant 6.400000e+01 : f32
    %395 = vector.broadcast %cst_130 : f32 to vector<16x1xf32>
    %396 = arith.divf %394, %395 : vector<16x1xf32>
    %397 = vector.broadcast %396 : vector<16x1xf32> to vector<16x64xf32>
    %398 = arith.subf %392, %397 : vector<16x64xf32>
    %399 = arith.mulf %398, %398 : vector<16x64xf32>
    %cst_131 = arith.constant dense<0.000000e+00> : vector<16xf32>
    %400 = vector.multi_reduction <add>, %399, %cst_131 [1] : vector<16x64xf32> to vector<16xf32>
    %401 = vector.shape_cast %400 : vector<16xf32> to vector<16x1xf32>
    %cst_132 = arith.constant 6.400000e+01 : f32
    %402 = vector.broadcast %cst_132 : f32 to vector<16x1xf32>
    %403 = arith.divf %401, %402 : vector<16x1xf32>
    %404 = vector.broadcast %396 : vector<16x1xf32> to vector<16x64xf32>
    %405 = arith.subf %392, %404 : vector<16x64xf32>
    %cst_133 = arith.constant 9.99999974E-6 : f32
    %406 = vector.broadcast %cst_133 : f32 to vector<16x1xf32>
    %407 = arith.addf %403, %406 : vector<16x1xf32>
    %408 = math.rsqrt %407 : vector<16x1xf32>
    %409 = vector.broadcast %408 : vector<16x1xf32> to vector<16x64xf32>
    %410 = arith.mulf %405, %409 : vector<16x64xf32>
    %411 = vector.broadcast %350 : vector<1x64xf32> to vector<16x64xf32>
    %412 = arith.mulf %410, %411 : vector<16x64xf32>
    %413 = vector.broadcast %351 : vector<1x64xf32> to vector<16x64xf32>
    %414 = arith.addf %412, %413 : vector<16x64xf32>
    %415 = vector.shape_cast %7 : vector<16x1xi1> to vector<16x1xi1>
    %416 = vector.broadcast %415 : vector<16x1xi1> to vector<16x64xi1>
    %417 = arith.select %416, %414, %341 : vector<16x64xi1>, vector<16x64xf32>
    %c0_134 = arith.constant 0 : index
    %c0_135 = arith.constant 0 : index
    %c0_136 = arith.constant 0 : index
    %418 = vector.load %arg16[%c0_134, %c0_135, %c0_136] : memref<1x16x64xf32, #tpu.memory_space<vmem>>, vector<1x16x64xf32>
    %419 = vector.shape_cast %418 : vector<1x16x64xf32> to vector<16x64xf32>
    %420 = vector.shape_cast %417 : vector<16x64xf32> to vector<1x16x64xf32>
    tpu.vector_store %arg16[%c0_134, %c0_135, %c0_136], %420 {strides = array<i32>} : memref<1x16x64xf32, #tpu.memory_space<vmem>>, vector<1x16x64xf32>,
    return
  }
  func.func @transform_0(%arg0: i32) -> (i32, i32, i32) {
    %c0_i32 = arith.constant 0 : i32
    %c0_i32_0 = arith.constant 0 : i32
    %c0_i32_1 = arith.constant 0 : i32
    return %arg0, %c0_i32, %c0_i32_0 : i32, i32, i32
  }
  func.func @transform_1(%arg0: i32) -> (i32, i32, i32) {
    %c0_i32 = arith.constant 0 : i32
    %c0_i32_0 = arith.constant 0 : i32
    %c0_i32_1 = arith.constant 0 : i32
    return %arg0, %c0_i32, %c0_i32_0 : i32, i32, i32
  }
  func.func @transform_2(%arg0: i32) -> (i32, i32, i32) {
    %c0_i32 = arith.constant 0 : i32
    %c0_i32_0 = arith.constant 0 : i32
    %c0_i32_1 = arith.constant 0 : i32
    return %arg0, %c0_i32, %c0_i32_0 : i32, i32, i32
  }
  func.func @transform_3(%arg0: i32) -> (i32, i32) {
    %c0_i32 = arith.constant 0 : i32
    %c0_i32_0 = arith.constant 0 : i32
    %c0_i32_1 = arith.constant 0 : i32
    return %c0_i32, %c0_i32_0 : i32, i32
  }
  func.func @transform_4(%arg0: i32) -> (i32, i32) {
    %c0_i32 = arith.constant 0 : i32
    %c0_i32_0 = arith.constant 0 : i32
    %c0_i32_1 = arith.constant 0 : i32
    return %c0_i32, %c0_i32_0 : i32, i32
  }
  func.func @transform_5(%arg0: i32) -> (i32, i32) {
    %c0_i32 = arith.constant 0 : i32
    %c0_i32_0 = arith.constant 0 : i32
    %c0_i32_1 = arith.constant 0 : i32
    return %c0_i32, %c0_i32_0 : i32, i32
  }
  func.func @transform_6(%arg0: i32) -> (i32, i32) {
    %c0_i32 = arith.constant 0 : i32
    %c0_i32_0 = arith.constant 0 : i32
    %c0_i32_1 = arith.constant 0 : i32
    return %c0_i32, %c0_i32_0 : i32, i32
  }
  func.func @transform_7(%arg0: i32) -> (i32, i32) {
    %c0_i32 = arith.constant 0 : i32
    %c0_i32_0 = arith.constant 0 : i32
    %c0_i32_1 = arith.constant 0 : i32
    return %c0_i32, %c0_i32_0 : i32, i32
  }
  func.func @transform_8(%arg0: i32) -> (i32, i32) {
    %c0_i32 = arith.constant 0 : i32
    %c0_i32_0 = arith.constant 0 : i32
    %c0_i32_1 = arith.constant 0 : i32
    return %c0_i32, %c0_i32_0 : i32, i32
  }
  func.func @transform_9(%arg0: i32) -> (i32, i32) {
    %c0_i32 = arith.constant 0 : i32
    %c0_i32_0 = arith.constant 0 : i32
    %c0_i32_1 = arith.constant 0 : i32
    return %c0_i32, %c0_i32_0 : i32, i32
  }
  func.func @transform_10(%arg0: i32) -> (i32, i32) {
    %c0_i32 = arith.constant 0 : i32
    %c0_i32_0 = arith.constant 0 : i32
    %c0_i32_1 = arith.constant 0 : i32
    return %c0_i32, %c0_i32_0 : i32, i32
  }
  func.func @transform_11(%arg0: i32) -> (i32, i32) {
    %c0_i32 = arith.constant 0 : i32
    %c0_i32_0 = arith.constant 0 : i32
    %c0_i32_1 = arith.constant 0 : i32
    return %c0_i32, %c0_i32_0 : i32, i32
  }
  func.func @transform_12(%arg0: i32) -> (i32, i32) {
    %c0_i32 = arith.constant 0 : i32
    %c0_i32_0 = arith.constant 0 : i32
    %c0_i32_1 = arith.constant 0 : i32
    return %c0_i32, %c0_i32_0 : i32, i32
  }
  func.func @transform_13(%arg0: i32) -> (i32, i32) {
    %c0_i32 = arith.constant 0 : i32
    %c0_i32_0 = arith.constant 0 : i32
    %c0_i32_1 = arith.constant 0 : i32
    return %c0_i32, %c0_i32_0 : i32, i32
  }
  func.func @transform_14(%arg0: i32) -> (i32, i32) {
    %c0_i32 = arith.constant 0 : i32
    %c0_i32_0 = arith.constant 0 : i32
    %c0_i32_1 = arith.constant 0 : i32
    return %c0_i32, %c0_i32_0 : i32, i32
  }
  func.func @transform_15(%arg0: i32) -> (i32, i32, i32) {
    %c0_i32 = arith.constant 0 : i32
    %c0_i32_0 = arith.constant 0 : i32
    %c0_i32_1 = arith.constant 0 : i32
    return %arg0, %c0_i32, %c0_i32_0 : i32, i32, i32
  }
}

</mosaic_0001>

<bundles_post_ra>
// kernel: tile.14
= control target key start
LH: loop header
LB: loop body
LE: loop exit
PB: predicated region body
PF: predicated region fallthrough
CT: control target
= control target key end

     0   :  { %vm68_vm0 = vcmask 1047556   ;;  %s167_s9 = smov 32   ;;  %s168_s10 = smov 16   ;;  %vm70_vm1 = vcmask 130048   ;;  %vm89_vm2 = vcmask 523648   ;;  %vm110_vm3 = vcmask 392448   ;;  %s259_s0 = inlined_call_operand.vmem [shape: f32[16,4,16], index: 0, kind: input, shape index: {}]   ;;  %s260_s1 = inlined_call_operand.vmem [shape: f32[16,64], index: 1, kind: output, shape index: {}]  }
   0x1   :  { %v152_v0 = vld [vmem:[%s259_s0 + $0x1c] sm:$0xf]  ;;  %v153_v1 = vld [vmem:[%s259_s0 + $0x18] sm:$0xf]  ;;  %v154_v2 = vld [vmem:[%s259_s0 + $0x14] sm:$0xf] }
   0x2   :  { %39 = vst [vmem:[#allocation0 + $0x38] sm:$0xf] %v152_v0  ;;  %v155_v3 = vld [vmem:[%s259_s0 + $0x10] sm:$0xf]  ;;  %v156_v4 = vld [vmem:[%s259_s0 + $0xc] sm:$0xf] }
   0x3   :  { %43 = vst [vmem:[#allocation0 + $0x30] sm:$0xf] %v153_v1  ;;  %v157_v5 = vld [vmem:[%s259_s0 + $0x8] sm:$0xf]  ;;  %v158_v6 = vld [vmem:[%s259_s0 + $0x4] sm:$0xf] }
   0x4   :  { %47 = vst [vmem:[#allocation0 + $0x28] sm:$0xf] %v154_v2  ;;  %v64_v7 = vld [vmem:[%s259_s0] sm:$0xf]  ;;  %v144_v8 = vld [vmem:[%s259_s0 + $0x3c] sm:$0xf] }
   0x5   :  { %51 = vst [vmem:[#allocation0 + $0x20] sm:$0xf] %v155_v3  ;;  %v145_v9 = vld [vmem:[%s259_s0 + $0x38] sm:$0xf]  ;;  %v146_v10 = vld [vmem:[%s259_s0 + $0x34] sm:$0xf] }
   0x6   :  { %55 = vst [vmem:[#allocation0 + $0x18] sm:$0xf] %v156_v4  ;;  %v147_v11 = vld [vmem:[%s259_s0 + $0x30] sm:$0xf]  ;;  %v148_v12 = vld [vmem:[%s259_s0 + $0x2c] sm:$0xf] }
   0x7   :  { %59 = vst [vmem:[#allocation0 + $0x10] sm:$0xf] %v157_v5  ;;  %v149_v13 = vld [vmem:[%s259_s0 + $0x28] sm:$0xf]  ;;  %v150_v15 = vld [vmem:[%s259_s0 + $0x24] sm:$0xf] }
   0x8   :  { %63 = vst [vmem:[#allocation0 + $0x8] sm:$0xf] %v158_v6  ;;  %v151_v17 = vld [vmem:[%s259_s0 + $0x20] sm:$0xf]  ;;  %s166_s0 = smov 48   ;;  %vm131_vm4 = vcmask 261248  }
   0x9   :  { %65 = vst [vmem:[#allocation0] sm:$0xf] %v64_v7 }
   0xa   :  { %7 = vst [vmem:[#allocation0 + $0x78] sm:$0xf] %v144_v8 }
   0xb   :  { %11 = vst [vmem:[#allocation0 + $0x70] sm:$0xf] %v145_v9 }
   0xc   :  { %v84_v14 = vld [vmem:[#allocation0 + $0x3] ss:$8 sm:$0xf0]   ;;  %15 = vst [vmem:[#allocation0 + $0x68] sm:$0xf] %v146_v10 }
   0xd   :  { %v105_v16 = vld [vmem:[#allocation0 + $0x2] ss:$8 sm:$0xf0]   ;;  %19 = vst [vmem:[#allocation0 + $0x60] sm:$0xf] %v147_v11 }
   0xe   :  { %23 = vst [vmem:[#allocation0 + $0x58] sm:$0xf] %v148_v12  ;;  %v126_v18 = vld [vmem:[#allocation0 + $0x1] ss:$8 sm:$0xf0]  }
   0xf   :  { %27 = vst [vmem:[#allocation0 + $0x50] sm:$0xf] %v149_v13  ;;  %v67_v35 = vld [vmem:[#allocation0] ss:$8 sm:$0xf0]  }
  0x10   :  { %v82_v19 = vld [vmem:[#allocation0 + $0x3] ss:$8 sm:$0xf]   ;;  %v103_v20 = vld [vmem:[#allocation0 + $0x2] ss:$8 sm:$0xf]  }
  0x11   :  { %v86_v21 = vsel %vm68_vm0, %v84_v14, %v82_v19  ;;  %v107_v22 = vsel %vm68_vm0, %v105_v16, %v103_v20  ;;  %v124_v23 = vld [vmem:[#allocation0 + $0x1] ss:$8 sm:$0xf]   ;;  %31 = vst [vmem:[#allocation0 + $0x48] sm:$0xf] %v150_v15 }
  0x12   :  { %87 = vrot.lane.b32.xlu0 %v86_v21, %s166_s0  ;;  %108 = vrot.lane.b32.xlu1 %v107_v22, %s167_s9  ;;  %v128_v24 = vsel %vm68_vm0, %v126_v18, %v124_v23  ;;  %35 = vst [vmem:[#allocation0 + $0x40] sm:$0xf] %v151_v17  ;;  %v66_v34 = vld [vmem:[#allocation0] ss:$8 sm:$0xf]  }
  0x13   :  { %129 = vrot.lane.b32.xlu2 %v128_v24, %s168_s10  ;;  %v69_v36 = vsel %vm68_vm0, %v67_v35, %v66_v34 }
  0x14   :  { %v94_v25 = vld [vmem:[#allocation0 + $0x43] ss:$8 sm:$0xf0]   ;;  %v115_v26 = vld [vmem:[#allocation0 + $0x42] ss:$8 sm:$0xf0]  }
  0x15   :  { %v136_v27 = vld [vmem:[#allocation0 + $0x41] ss:$8 sm:$0xf0]   ;;  %71 = vst.msk [vmem:[%s260_s1] sm:$0xff] %vm70_vm1, %v69_v36  }
  0x16   :  { %v75_v38 = vld [vmem:[#allocation0 + $0x40] ss:$8 sm:$0xf0]  }
  0x19   :  { %v92_v28 = vld [vmem:[#allocation0 + $0x43] ss:$8 sm:$0xf]   ;;  %v113_v29 = vld [vmem:[#allocation0 + $0x42] ss:$8 sm:$0xf]  }
  0x1a   :  { %v96_v30 = vsel %vm68_vm0, %v94_v25, %v92_v28  ;;  %v117_v31 = vsel %vm68_vm0, %v115_v26, %v113_v29  ;;  %v134_v32 = vld [vmem:[#allocation0 + $0x41] ss:$8 sm:$0xf]   ;;  %v73_v37 = vld [vmem:[#allocation0 + $0x40] ss:$8 sm:$0xf]  }
  0x1b   :  { %97 = vrot.lane.b32.xlu0 %v96_v30, %s166_s0  ;;  %118 = vrot.lane.b32.xlu1 %v117_v31, %s167_s9  ;;  %v138_v33 = vsel %vm68_vm0, %v136_v27, %v134_v32  ;;  %v77_v40 = vsel %vm68_vm0, %v75_v38, %v73_v37 }
  0x1c   :  { %139 = vrot.lane.b32.xlu2 %v138_v33, %s168_s10  ;;  %159 = vst.msk [vmem:[%s260_s1 + $0x8] sm:$0xff] %vm70_vm1, %v77_v40  }
  0x6d   :  { %v130_v39 = vpop.permute.xlu2 %129  }
  0x76   :  { %v140_v41 = vpop.permute.xlu2 %139  }
  0x84   :  { %v88_v42 = vpop.permute.xlu0 %87   ;;  %v109_v43 = vpop.permute.xlu1 %108  }
  0x85   :  { %90 = vst.msk [vmem:[%s260_s1] sm:$0xff] %vm89_vm2, %v88_v42  }
  0x86   :  { %111 = vst.msk [vmem:[%s260_s1] sm:$0xff] %vm110_vm3, %v109_v43  }
  0x87   :  { %132 = vst.msk [vmem:[%s260_s1] sm:$0xff] %vm131_vm4, %v130_v39  }
  0x8d   :  { %v98_v44 = vpop.permute.xlu0 %97   ;;  %v119_v45 = vpop.permute.xlu1 %118  }
  0x8e   :  { %160 = vst.msk [vmem:[%s260_s1 + $0x8] sm:$0xff] %vm89_vm2, %v98_v44  }
  0x8f   :  { %161 = vst.msk [vmem:[%s260_s1 + $0x8] sm:$0xff] %vm110_vm3, %v119_v45  }
  0x90   :  { %162 = vst.msk [vmem:[%s260_s1 + $0x8] sm:$0xff] %vm131_vm4, %v140_v41  }

// kernel: squeezeformer_block.1
= control target key start
LH: loop header
LB: loop body
LE: loop exit
PB: predicated region body
PF: predicated region fallthrough
CT: control target
= control target key end

     0   :  { %s4308_s0 = inlined_call_operand.vmem [shape: f32[2,16,64], index: 0, kind: input, shape index: {}]   ;;  %s4309_s1 = inlined_call_operand.vmem [shape: f32[2,16,1], index: 1, kind: input, shape index: {}]   ;;  %s4310_s2 = inlined_call_operand.vmem [shape: f32[2,1,16], index: 2, kind: input, shape index: {}]   ;;  %s4311_s3 = inlined_call_operand.vmem [shape: f32[16,64], index: 3, kind: input, shape index: {}]   ;;  %s4312_s4 = inlined_call_operand.vmem [shape: f32[16,64], index: 4, kind: input, shape index: {}]   ;;  %s4313_s5 = inlined_call_operand.vmem [shape: bf16[64,320], index: 5, kind: input, shape index: {}]   ;;  %s4314_s6 = inlined_call_operand.vmem [shape: bf16[64,64], index: 6, kind: input, shape index: {}]   ;;  %s4315_s7 = inlined_call_operand.vmem [shape: bf16[64,256], index: 7, kind: input, shape index: {}]   ;;  %s4316_s8 = inlined_call_operand.vmem [shape: bf16[256,64], index: 8, kind: input, shape index: {}]   ;;  %s4317_s9 = inlined_call_operand.vmem [shape: bf16[64,256], index: 9, kind: input, shape index: {}]   ;;  %s4318_s10 = inlined_call_operand.vmem [shape: bf16[256,64], index: 10, kind: input, shape index: {}]   ;;  %s4319_s11 = inlined_call_operand.vmem [shape: bf16[64,128], index: 11, kind: input, shape index: {}]   ;;  %s4320_s12 = inlined_call_operand.vmem [shape: bf16[64,64], index: 12, kind: input, shape index: {}]   ;;  %s4321_s13 = inlined_call_operand.vmem [shape: f32[30,64], index: 13, kind: input, shape index: {}]   ;;  %s4322_s14 = inlined_call_operand.vmem [shape: f32[3,256], index: 14, kind: input, shape index: {}]   ;;  %s4323_s15 = inlined_call_operand.hbm [shape: f32[2,16,64], index: 15, kind: output, shape index: {}]  }
   0x1   :  { %4333 = sst [smem:[#allocation12_spill]] %s4308_s0 }
   0x2   :  { %4334 = sst [smem:[#allocation13_spill]] %s4309_s1 }
   0x3   :  { %4335 = sst [smem:[#allocation14_spill]] %s4323_s15 }
   0x4   :  { %20 = vsyncpa [#allocation3], 0 }
   0x5   :  { %22 = vsyncpa [#allocation3 + $0x1], 0  ;;  %s3445_s18 = smov 0   ;;  %s3447_s19 = smov 0  }
   0x6   :  { %s3449_s20 = smov 0   ;;  %s3451_s21 = smov 0  }
   0x7 LB: > { %4336 = sst [smem:[#allocation5_spill]] %s3339_s18  ;;  %s3466_s22 = sadd.s32 4294967295, %s3351_s21   ;;  %s3351_s21 = sphi %s3451_s21, %s4364_s21   ;;  %s3347_s20 = sphi %s3449_s20, %s4366_s20   ;;  %s3343_s19 = sphi %s3447_s19, %s4368_s19   ;;  %s3339_s18 = sphi %s3445_s18, %s4367_s18  }
   0x8   : > { %4337 = sst [smem:[#allocation6_spill]] %s3347_s20  ;;  %s2652_s23 = sadd.s32 4294967294, %s3351_s21  }
   0x9   : > { %4338 = sst [smem:[#allocation7_spill]] %s3351_s21  ;;  %s3470_s24 = sadd.s32 1, %s3351_s21  }
   0xa   : > { %4339 = sst [smem:[#allocation8_spill]] %s3470_s24  ;;  %s365_s25 = sadd.s32 1, %s3347_s20 }
   0xb   : > { %s362_s26 = ssub.s32 %s3351_s21, %s3470_s24  ;;  %p375_p0 = scmp.ne.s32.totalorder %s3347_s20, %s3343_s19 }
   0xc   : > { %p363_p1 = scmp.eq.s32.totalorder %s362_s26, 0  ;;  %p376_p2 = scmp.eq.s32.totalorder %s3466_s22, 1 }
   0xd   : > { %p381_p3 = scmp.ne.s32.totalorder %s3343_s19, %s3339_s18  ;;  %p382_p4 = scmp.eq.s32.totalorder %s2652_s23, 1 }
   0xe   : > { %s3481_s27 = scalar_select %p363_p1, %s3347_s20, %s365_s25  }
   0xf   : > { %p3483_p5 = por %p376_p2, %p375_p0  ;;  %p3487_p6 = por %p382_p4, %p381_p3 }
  0x10   : > { %4340 = sst [smem:[#allocation9_spill]] %s3481_s27  ;;  %p2655_p7 = scmp.ge.s32.totalorder %s3351_s21, 1 }
  0x11   : > { %s4341_s28 = scalar_select %p3483_p5, 1, 0 }
  0x12   : > { %s4343_s29 = scalar_select %p3487_p6, 1, 0 }
  0x13   : > { %4342 = sst [smem:[#allocation10_spill]] %s4341_s28  ;;  %p458_p8 = scmp.lt.s32.totalorder %s3351_s21, 3 }
  0x14   : > { %4344 = sst [smem:[#allocation11_spill]] %s4343_s29 }
  0x15   : > { %p459_p9 = pnand %p2655_p7, %p458_p8 }
  0x16   : > { %p514_p10 = scmp.lt.s32.totalorder (!%p459_p9), %s3466_s22, 1  ;;  %s4345_s0 = sld [smem:[#allocation12_spill]] (!%p459_p9) }
  0x17   : > { %462 = sbr.rel (%p459_p9) target bundleno = 3984 (0xf90), region = 80  ;;  %s3353_s26 = smov (!%p459_p9), 64  }
  0x18   : > { %s4346_s1 = sld [smem:[#allocation13_spill]] (!%p459_p9)  ;;  %s3355_s23 = smov (!%p459_p9), 48  }
  0x19   : > { %s3356_s25 = smov (!%p459_p9), 112   ;;  %s3358_s21 = smov (!%p459_p9), 32  }
  0x1a   : > { %s3359_s29 = smov (!%p459_p9), 16   ;;  %s3360_s30 = smov (!%p459_p9), 80  }
  0x1b   : > { %s4359_s16 = sld [smem:[#allocation14_spill]] (!%p459_p9) }
  0x1c   : > { %v2699_v0 = vld [vmem:[%s4313_s5 + $0x48] sm:$0xf]  ;;  %v3025_v1 = vld [vmem:[%s4313_s5 + $0x50] sm:$0xf0]  ;;  %v3024_v2 = vld [vmem:[%s4313_s5 + $0x4c] sm:$0xf] }
  0x1d   : > { %v2700_v3 = vor.u32 %v3025_v1, %v2699_v0  ;;  %v2701_v4 = vld [vmem:[%s4313_s5 + $0x54] sm:$0xf0]  ;;  %v2687_v5 = vld [vmem:[%s4313_s5 + $0x30] sm:$0xf]  ;;  %v3022_v6 = vld [vmem:[%s4313_s5 + $0x38] sm:$0xf0] }
  0x1e   : > { %v2704_v7 = vor.u32 %v3024_v2, %v2701_v4  ;;  %v3021_v8 = vld [vmem:[%s4313_s5 + $0x34] sm:$0xf]  ;;  %v2689_v9 = vld [vmem:[%s4313_s5 + $0x3c] sm:$0xf0]  ;;  %v2688_v10 = vor.u32 %v3022_v6, %v2687_v5  ;;  %v2675_v12 = vld [vmem:[%s4313_s5 + $0x18] sm:$0xf] }
  0x1f   : > { %636 = vmatpush.bf16.msra.mxu2 %v2700_v3  ;;  %v2692_v11 = vor.u32 %v3021_v8, %v2689_v9  ;;  %v3019_v13 = vld [vmem:[%s4313_s5 + $0x20] sm:$0xf0]  ;;  %v3018_v14 = vld [vmem:[%s4313_s5 + $0x1c] sm:$0xf]  ;;  %v2677_v15 = vld [vmem:[%s4313_s5 + $0x24] sm:$0xf0] }
  0x20   : > { %650 = vmatpush.bf16.msra.mxu1 %v2704_v7  ;;  %v2676_v16 = vor.u32 %v3019_v13, %v2675_v12  ;;  %v2663_v17 = vld [vmem:[%s4313_s5] sm:$0xf]  ;;  %v3016_v18 = vld [vmem:[%s4313_s5 + $0x8] sm:$0xf0]  ;;  %s3537_s27 = scalar_select %p514_p10, %s3466_s22, 1  ;;  %v2680_v20 = vor.u32 %v3018_v14, %v2677_v15  ;;  %vm628_vm0 = vcmask 523264  }
  0x21   : > { %v537_v19 = vld [vmem:[%s4312_s4] sm:$0xff]  ;;  %v2665_v22 = vld [vmem:[%s4313_s5 + $0xc] sm:$0xf0]  ;;  %v3026_v25 = vld [vmem:[%s4313_s5 + $0x58] sm:$0xf0]  ;;  %v2664_v28 = vor.u32 %v3016_v18, %v2663_v17  ;;  %v3354_v61 = vmov 0  }
  0x22   : > { %v3015_v21 = vld [vmem:[%s4313_s5 + $0x4] sm:$0xf]  ;;  %v3159_v23 = vld [vmem:[%s4321_s13] ss:$0 sm:$0xff]  ;;  %s3013_s24 = sshll.u32 %s3537_s27, 4  ;;  %678 = vrot.lane.b32.xlu0 %v537_v19, %s3353_s26  ;;  %v538_v37 = vld [vmem:[%s4312_s4 + $0x8] sm:$0xff]  ;;  %3142 = vset.pattern.permute.xlu2 %v3354_v61  ;;  %s526_s18 = scalar_lea.vmem %s4310_s2, %s3537_s27 }
  0x23   : > { %637 = vmatpush.bf16.msra.mxu2 %v2688_v10  ;;  %v2707_v24 = vld [vmem:[%s4313_s5 + $0x50] sm:$0xf]  ;;  %s518_s28 = scalar_lea.vmem %s4345_s0, %s3013_s24  ;;  %v3160_v26 = vld [vmem:[%s4321_s13 + $0x1] ss:$0 sm:$0xff]  ;;  %v2695_v31 = vld [vmem:[%s4313_s5 + $0x38] sm:$0xf]  ;;  %v2668_v33 = vor.u32 %v3015_v21, %v2665_v22  ;;  %3141 = vset.pattern.permute.xlu1 %v3354_v61  ;;  %s523_s17 = scalar_lea.vmem %s4346_s1, %s3013_s24 }
  0x24   : > { %651 = vmatpush.bf16.msra.mxu1 %v2692_v11  ;;  %v3570_v27 = vld [vmem:[%s4311_s3] sm:$0xff]  ;;  %v3574_v30 = vld [vmem:[%s518_s28 + $0x8] sm:$0xff]  ;;  %v2708_v36 = vor.u32 %v3026_v25, %v2707_v24  ;;  %v3017_v47 = vld [vmem:[%s4313_s5 + $0x10] sm:$0xf0]  ;;  %3158 = vset.pattern.permute.xlu0 %v3354_v61  ;;  %vm742_vm3 = vcmask 130048   ;;  %s3357_s27 = smov 96  }
  0x25   : > { %v3572_v29 = vld [vmem:[%s518_s28] sm:$0xff]  ;;  %698 = vrot.lane.b32.xlu1 %v3570_v27, %s3353_s26  ;;  %v542_v35 = vmul.f32 %v3159_v23, %v3574_v30  ;;  %v536_v40 = vld [vmem:[%s4311_s3 + $0x8] sm:$0xff]  ;;  %vm1048_vm10 = vcmask 261120   ;;  %vm1051_vm11 = vcmask 392192  }
  0x26   : > { %v3023_v32 = vld [vmem:[%s4313_s5 + $0x40] sm:$0xf0]  ;;  %v541_v34 = vmul.f32 %v3159_v23, %v3572_v29  ;;  %v2683_v41 = vld [vmem:[%s4313_s5 + $0x20] sm:$0xf]  ;;  %v3020_v42 = vld [vmem:[%s4313_s5 + $0x28] sm:$0xf0] }
  0x27   : > { %638 = vmatpush.bf16.msra.mxu2 %v2676_v16  ;;  %v546_v39 = vadd.f32 %v3160_v26, %v542_v35  ;;  %v2696_v44 = vor.u32 %v3023_v32, %v2695_v31  ;;  %v2684_v45 = vor.u32 %v3020_v42, %v2683_v41  ;;  %v2671_v46 = vld [vmem:[%s4313_s5 + $0x8] sm:$0xf]  ;;  %v3632_v16 = vld [vmem:[%s523_s17] sm:$0xff] }
  0x28   : > { %652 = vmatpush.bf16.msra.mxu1 %v2680_v20  ;;  %v545_v38 = vadd.f32 %v3160_v26, %v541_v34  ;;  %v2672_v48 = vor.u32 %v3017_v47, %v2671_v46  ;;  %v3622_v13 = vld [vmem:[%s523_s17 + $0x8] sm:$0xff]  ;;  %vm718_vm2 = vcmp.lt.f32.partialorder %v3632_v16, 0.5  ;;  %v532_v25 = vld [vmem:[%s526_s18] sm:$0x1] }
  0x29   : > { %vm719_vm1 = vcmp.lt.f32.partialorder %v3622_v13, 0.5  ;;  %v721_v17 = vsel %vm718_vm2, 1, %v3354_v61  ;;  %vm720_vm4 = vcmp.lt.f32.partialorder %v532_v25, 0.5 }
  0x2a   : > { %v563_v43 = vpack.c.bf16 %v546_v39, %v545_v38  ;;  %680 = vrot.lane.b32.xlu0 %v538_v37, %s3353_s26  ;;  %v722_v15 = vsel %vm719_vm1, 1, %v3354_v61  ;;  %v731_v26 = vsel %vm720_vm4, 1, %v3354_v61 }
  0x2b   : > { %639 = vmatpush.bf16.msra.mxu2 %v2664_v28 }
  0x2c   : > { %653 = vmatpush.bf16.msra.mxu1 %v2668_v33 }
  0x2d   : > { %700 = vrot.lane.b32.xlu1 %v536_v40, %s3353_s26 }
  0x2e   : > { %2709 = vmatmul.msk.bf16.vlgmr.msra.gmra.mxu2 %vm628_vm0, %v563_v43 }
  0x2f   : > { %664 = vmatpush.bf16.msrb.mxu2 %v2708_v36  ;;  %2710 = vmatmul.msk.bf16.vlgmr.msra.gmra.mxu1 %vm628_vm0, %v563_v43 }
  0x33   : > { %665 = vmatpush.bf16.msrb.mxu2 %v2696_v44 }
  0x37   : > { %666 = vmatpush.bf16.msrb.mxu2 %v2684_v45 }
  0x3b   : > { %667 = vmatpush.bf16.msrb.mxu2 %v2672_v48 }
  0x3e   : > { %2711 = vmatmul.msk.bf16.vlgmr.msrb.gmra.mxu2 %vm628_vm0, %v563_v43 }
  0x94   : > { %v679_v49 = vpop.permute.xlu0 %678 }
  0x97   : > { %v699_v62 = vpop.permute.xlu1 %698 }
  0x9c   : > { %v681_v53 = vpop.permute.xlu0 %680 }
  0x9f   : > { %v701_v0 = vpop.permute.xlu1 %700 }
  0xac   : > { %v655_v50 = vpop.f32.mrf.mxu1 }
  0xad   : > { %v684_v51 = vmul.f32 %v679_v49, %v655_v50 }
  0xaf   : > { %688 = vrot.lane.b32.xlu0 %v684_v51, %s3353_s26 }
  0xb1   : > { %v641_v52 = vpop.f32.mrf.mxu2 }
  0xb2   : > { %v704_v1 = vmul.f32 %v699_v62, %v641_v52  ;;  %v674_v7 = vmul.f32 %v641_v52, %v3570_v27  ;;  %v732_v27 = vperm.slane %v731_v26, 0 }
  0xb4   : > { %v657_v54 = vpop.f32.mrf.mxu1  ;;  %vm733_vm5 = vcmp.eq.s32.totalorder %v732_v27, 1 }
  0xb5   : > { %v685_v55 = vmul.f32 %v681_v53, %v657_v54  ;;  %v3637_v22 = vpack.c.bf16 %v657_v54, %v655_v50 }
  0xb7   : > { %690 = vrot.lane.b32.xlu1 %v685_v55, %s3353_s26 }
  0xb9   : > { %v643_v56 = vpop.f32.mrf.mxu2 }
  0xba   : > { %v705_v2 = vmul.f32 %v701_v0, %v643_v56  ;;  %v675_v8 = vmul.f32 %v643_v56, %v536_v40 }
  0xbf   : > { %724 = vperm.xlu1 %3141, %v721_v17  }
  0xc1   : > { %v669_v57 = vpop.f32.mrf.mxu2 }
  0xc2   : > { %v706_v58 = vmul.f32 %v669_v57, %v537_v19 }
  0xc4   : > { %710 = vrot.lane.b32.xlu2 %v706_v58, %s3353_s26 }
  0xc9   : > { %v671_v59 = vpop.f32.mrf.mxu2 }
  0xca   : > { %v707_v60 = vmul.f32 %v671_v59, %v538_v37 }
  0xcc   : > { %712 = vrot.lane.b32.xlu2 %v707_v60, %s3353_s26 }
 0x11e   : > { %v711_v63 = vpop.permute.xlu2 %710 }
 0x11f   : > { %v716_v4 = vadd.f32 %v711_v63, %v704_v1 }
 0x121   : > { %v689_v5 = vpop.permute.xlu0 %688 }
 0x122   : > { %v694_v11 = vadd.f32 %v689_v5, %v674_v7 }
 0x126   : > { %v713_v3 = vpop.permute.xlu2 %712 }
 0x127   : > { %v717_v6 = vadd.f32 %v713_v3, %v705_v2 }
 0x129   : > { %v737_v9 = vpack.c.bf16 %v717_v6, %v716_v4  ;;  %v691_v10 = vpop.permute.xlu1 %690 }
 0x12a   : > { %v695_v12 = vadd.f32 %v691_v10, %v675_v8 }
 0x12b   : > { %810 = vrot.lane.b32.xlu2 %v737_v9, %s3355_s23 }
 0x12c   : > { %v3625_v14 = vpack.c.bf16 %v695_v12, %v694_v11 }
 0x12e   : > { %808 = vrot.lane.b32.xlu0 %v3625_v14, %s3356_s25 }
 0x131   : > { %v725_v28 = vpop.permute.xlu1 %724 }
 0x132   : > { %vm729_vm6 = vcmp.eq.s32.totalorder %v725_v28, 1 }
 0x133   : > { %727 = vperm.xlu2 %3142, %v722_v15   ;;  %vm3649_vm7 = vmor %vm729_vm6, %vm733_vm5 }
 0x13b   : > { %740 = vrot.lane.b32.xlu2 %v737_v9, %s3353_s26 }
 0x185   : > { %v811_v18 = vpop.permute.xlu2 %810 }
 0x186   : > { %v816_v19 = vsel %vm742_vm3, %v811_v18, 0 }
 0x187   : > { %825 = vmatpush.bf16.xpose.msra.mxu0 %v816_v19 }
 0x18d   : > { %v728_v20 = vpop.permute.xlu2 %727 }
 0x18e   : > { %vm730_vm8 = vcmp.eq.s32.totalorder %v728_v20, 1 }
 0x18f   : > { %vm3656_vm9 = vmor %vm730_vm8, %vm733_vm5 }
 0x195   : > { %v741_v21 = vpop.permute.xlu2 %740 }
 0x196   : > { %v747_v23 = vsel %vm742_vm3, %v741_v21, 0 }
 0x197   : > { %756 = vmatpush.bf16.xpose.msra.mxu3 %v747_v23 }
 0x19e   : > { %2712 = vmatmul.msk.bf16.vlgmr.msra.gmra.mxu3 %vm742_vm3, %v3625_v14 }
 0x19f   : > { %800 = vmatpush.bf16.msrb.mxu3 %v3637_v22 }
 0x1a0   : > { %v809_v24 = vpop.permute.xlu0 %808 }
 0x1a1   : > { %2714 = vmatmul.msk.bf16.vlgmr.msra.gmra.mxu0 %vm742_vm3, %v809_v24 }
 0x21e   : > { %v827_v32 = vpop.f32.mrf.mxu0 }
 0x21f   : > { %v832_v33 = vmul.f32 0.25, %v827_v32 }
 0x221   : > { %v834_v34 = vsel %vm3649_vm7, -3.4028235e+38, %v832_v33  ;;  %v758_v41 = vpop.f32.mrf.mxu3 }
 0x222   : > { %v836_v35 = vsel %vm742_vm3, %v834_v34, -inf  ;;  %v763_v59 = vmul.f32 0.25, %v758_v41 }
 0x223   : > { %837 = vmax.xlane.f32.xlu0 %v836_v35 }
 0x224   : > { %v765_v60 = vsel %vm3649_vm7, -3.4028235e+38, %v763_v59 }
 0x225   : > { %v767_v62 = vsel %vm742_vm3, %v765_v60, -inf }
 0x226   : > { %v829_v37 = vpop.f32.mrf.mxu0 }
 0x227   : > { %v833_v38 = vmul.f32 0.25, %v829_v37 }
 0x229   : > { %v835_v39 = vsel %vm3656_vm9, -3.4028235e+38, %v833_v38  ;;  %v760_v42 = vpop.f32.mrf.mxu3 }
 0x22a   : > { %v839_v40 = vsel %vm742_vm3, %v835_v39, -inf  ;;  %v764_v43 = vmul.f32 0.25, %v760_v42 }
 0x22b   : > { %840 = vmax.xlane.f32.xlu1 %v839_v40 }
 0x22c   : > { %v3669_v44 = vsel %vm3656_vm9, -3.4028235e+38, %v764_v43 }
 0x22d   : > { %v770_v45 = vsel %vm742_vm3, %v3669_v44, -inf }
 0x237   : > { %880 = vrot.lane.b32.xlu0 %v3625_v14, %s3357_s27 }
 0x244   : > { %882 = vrot.lane.b32.xlu1 %v737_v9, %s3358_s21 }
 0x24c   : > { %953 = vrot.lane.b32.xlu1 %v737_v9, %s3359_s29 }
 0x276   : > { %771 = vmax.xlane.f32.xlu1 %v770_v45 }
 0x296   : > { %v838_v46 = vpop.xlane.xlu0 %837 }
 0x297   : > { %v842_v47 = vsub.f32 %v834_v34, %v838_v46 }
 0x299   : > { %v844_v48 = vmul.f32 1.442695, %v842_v47 }
 0x29b   : > { %3189 = vpow2.f32 %v844_v48 }
 0x29e   : > { %v841_v49 = vpop.xlane.xlu1 %840 }
 0x29f   : > { %v843_v50 = vsub.f32 %v835_v39, %v841_v49 }
 0x2a1   : > { %v3190_v51 = vpop.eup %3189  ;;  %v846_v52 = vmul.f32 1.442695, %v843_v50 }
 0x2a2   : > { %v848_v53 = vsel %vm742_vm3, %v3190_v51, 0.0 }
 0x2a3   : > { %3191 = vpow2.f32 %v846_v52  ;;  %849 = vadd.xlane.f32.xlu2 %v848_v53 }
 0x2a9   : > { %v3192_v54 = vpop.eup %3191  ;;  %v881_v58 = vpop.permute.xlu0 %880 }
 0x2aa   : > { %v851_v55 = vsel %vm742_vm3, %v3192_v54, 0.0 }
 0x2ab   : > { %852 = vadd.xlane.f32.xlu0 %v851_v55 }
 0x2b6   : > { %v883_v56 = vpop.permute.xlu1 %882 }
 0x2b7   : > { %v888_v57 = vsel %vm742_vm3, %v883_v56, 0 }
 0x2b8   : > { %897 = vmatpush.bf16.xpose.msra.mxu2 %v888_v57 }
 0x2bb   : > { %860 = vrot.lane.b32.xlu2 %v3637_v22, %s3356_s25 }
 0x2be   : > { %v954_v0 = vpop.permute.xlu1 %953 }
 0x2bf   : > { %951 = vrot.lane.b32.xlu0 %v3625_v14, %s3360_s30  ;;  %2716 = vmatmul.msk.bf16.vlgmr.msra.gmra.mxu2 %vm742_vm3, %v881_v58  ;;  %v959_v3 = vsel %vm742_vm3, %v954_v0, 0 }
 0x2e4   : > { %768 = vmax.xlane.f32.xlu2 %v767_v62 }
 0x2e9   : > { %v772_v27 = vpop.xlane.xlu1 %771 }
 0x2ea   : > { %v774_v33 = vsub.f32 %v3669_v44, %v772_v27 }
 0x2ec   : > { %v777_v34 = vmul.f32 1.442695, %v774_v33 }
 0x316   : > { %v850_v63 = vpop.xlane.xlu2 %849 }
 0x317   : > { %3193 = vrcp.f32 %v850_v63 }
 0x31d   : > { %v3194_v4 = vpop.eup %3193 }
 0x31e   : > { %v853_v1 = vpop.xlane.xlu0 %852  ;;  %v861_v2 = vpop.permute.xlu2 %860  ;;  %v856_v6 = vmul.f32 %v3194_v4, %v3190_v51 }
 0x31f   : > { %3195 = vrcp.f32 %v853_v1  ;;  %873 = vmatpush.bf16.msrb.mxu0 %v861_v2 }
 0x323   : > { %968 = vmatpush.bf16.xpose.msra.mxu0 %v959_v3 }
 0x325   : > { %v3196_v5 = vpop.eup %3195 }
 0x326   : > { %v857_v7 = vmul.f32 %v3196_v5, %v3192_v54 }
 0x328   : > { %v858_v8 = vpack.c.bf16 %v857_v7, %v856_v6 }
 0x32a   : > { %2715 = vmatmul.msk.bf16.vlgmr.msrb.gmra.mxu0 %vm742_vm3, %v858_v8 }
 0x331   : > { %v952_v9 = vpop.permute.xlu0 %951 }
 0x33a   : > { %2718 = vmatmul.msk.bf16.vlgmr.msra.gmra.mxu0 %vm742_vm3, %v952_v9 }
 0x342   : > { %v899_v10 = vpop.f32.mrf.mxu2 }
 0x343   : > { %v904_v11 = vmul.f32 0.25, %v899_v10 }
 0x345   : > { %v906_v12 = vsel %vm3649_vm7, -3.4028235e+38, %v904_v11 }
 0x346   : > { %v908_v14 = vsel %vm742_vm3, %v906_v12, -inf }
 0x347   : > { %909 = vmax.xlane.f32.xlu0 %v908_v14 }
 0x34a   : > { %v901_v15 = vpop.f32.mrf.mxu2 }
 0x34b   : > { %v905_v17 = vmul.f32 0.25, %v901_v15 }
 0x34d   : > { %v907_v18 = vsel %vm3656_vm9, -3.4028235e+38, %v905_v17 }
 0x34e   : > { %v911_v19 = vsel %vm742_vm3, %v907_v18, -inf }
 0x34f   : > { %912 = vmax.xlane.f32.xlu2 %v911_v19 }
 0x357   : > { %v769_v20 = vpop.xlane.xlu2 %768 }
 0x358   : > { %v773_v21 = vsub.f32 %v765_v60, %v769_v20 }
 0x35a   : > { %v775_v23 = vmul.f32 1.442695, %v773_v21 }
 0x35c   : > { %3197 = vpow2.f32 %v775_v23 }
 0x35d   : > { %3199 = vpow2.f32 %v777_v34 }
 0x362   : > { %v3198_v24 = vpop.eup %3197 }
 0x363   : > { %v779_v25 = vsel %vm742_vm3, %v3198_v24, 0.0  ;;  %v3200_v45 = vpop.eup %3199 }
 0x364   : > { %780 = vadd.xlane.f32.xlu2 %v779_v25  ;;  %v782_v49 = vsel %vm742_vm3, %v3200_v45, 0.0 }
 0x3a7   : > { %v3694_v26 = vpop.f32.mrf.mxu0 }
 0x3af   : > { %v3696_v28 = vpop.f32.mrf.mxu0 }
 0x3b0   : > { %v3143_v32 = vpack.i.bf16 %v3696_v28, %v3694_v26  ;;  %v3030_v26 = vld [vmem:[%s4314_s6 + $0x18] sm:$0xff]  ;;  %v3029_v28 = vld [vmem:[%s4314_s6 + $0x10] sm:$0xff] }
 0x3b1   : > { %1094 = vmatpush.bf16.msrb.mxu2 %v3030_v26  ;;  %v3034_v26 = vld [vmem:[%s4315_s7 + $0x14] sm:$0xf0] }
 0x3b5   : > { %1095 = vmatpush.bf16.msrb.mxu2 %v3029_v28  ;;  %v3033_v28 = vld [vmem:[%s4315_s7 + $0x14] sm:$0xf] }
 0x3b7   : > { %v970_v35 = vpop.f32.mrf.mxu0 }
 0x3b8   : > { %v975_v37 = vmul.f32 0.25, %v970_v35 }
 0x3ba   : > { %v910_v38 = vpop.xlane.xlu0 %909  ;;  %v977_v39 = vsel %vm3649_vm7, -3.4028235e+38, %v975_v37 }
 0x3bb   : > { %v914_v40 = vsub.f32 %v906_v12, %v910_v38  ;;  %v979_v41 = vsel %vm742_vm3, %v977_v39, -inf }
 0x3bc   : > { %980 = vmax.xlane.f32.xlu1 %v979_v41  ;;  %v3027_v41 = vld [vmem:[%s4314_s6] sm:$0xff] }
 0x3bd   : > { %v916_v42 = vmul.f32 1.442695, %v914_v40 }
 0x3bf   : > { %v972_v43 = vpop.f32.mrf.mxu0  ;;  %3201 = vpow2.f32 %v916_v42 }
 0x3c0   : > { %v976_v46 = vmul.f32 0.25, %v972_v43 }
 0x3c2   : > { %v913_v47 = vpop.xlane.xlu2 %912  ;;  %v978_v44 = vsel %vm3656_vm9, -3.4028235e+38, %v976_v46 }
 0x3c3   : > { %v915_v48 = vsub.f32 %v907_v18, %v913_v47  ;;  %v982_v50 = vsel %vm742_vm3, %v978_v44, -inf }
 0x3c4   : > { %783 = vadd.xlane.f32.xlu1 %v782_v49  ;;  %983 = vmax.xlane.f32.xlu0 %v982_v50 }
 0x3c5   : > { %v918_v31 = vmul.f32 1.442695, %v915_v48  ;;  %v3202_v51 = vpop.eup %3201 }
 0x3c6   : > { %v920_v52 = vsel %vm742_vm3, %v3202_v51, 0.0 }
 0x3c7   : > { %3203 = vpow2.f32 %v918_v31 }
 0x3cc   : > { %921 = vadd.xlane.f32.xlu0 %v920_v52 }
 0x3cd   : > { %v3204_v53 = vpop.eup %3203 }
 0x3ce   : > { %v923_v54 = vsel %vm742_vm3, %v3204_v53, 0.0 }
 0x3cf   : > { %924 = vadd.xlane.f32.xlu2 %v923_v54 }
 0x3d7   : > { %v781_v57 = vpop.xlane.xlu2 %780 }
 0x3e7   : > { %931 = vrot.lane.b32.xlu2 %v3637_v22, %s3357_s27  ;;  %s511_s27 = sand.u32 1, %s3343_s19  }
 0x3e8   : > { %s2554_s18 = scalar_lea.sflag [#allocation3], %s511_s27 }
 0x42f   : > { %v981_v36 = vpop.xlane.xlu1 %980 }
 0x430   : > { %v985_v55 = vsub.f32 %v977_v39, %v981_v36 }
 0x432   : > { %v987_v56 = vmul.f32 1.442695, %v985_v55 }
 0x434   : > { %3205 = vpow2.f32 %v987_v56 }
 0x435   : > { %3207 = vrcp.f32 %v781_v57 }
 0x437   : > { %v784_v58 = vpop.xlane.xlu1 %783  ;;  %v984_v59 = vpop.xlane.xlu0 %983 }
 0x438   : > { %3209 = vrcp.f32 %v784_v58  ;;  %v986_v60 = vsub.f32 %v978_v44, %v984_v59 }
 0x43a   : > { %v3206_v62 = vpop.eup %3205  ;;  %v989_v63 = vmul.f32 1.442695, %v986_v60 }
 0x43b   : > { %v991_v0 = vsel %vm742_vm3, %v3206_v62, 0.0  ;;  %v3208_v1 = vpop.eup %3207 }
 0x43c   : > { %3211 = vpow2.f32 %v989_v63  ;;  %992 = vadd.xlane.f32.xlu1 %v991_v0  ;;  %v787_v3 = vmul.f32 %v3208_v1, %v3198_v24  ;;  %v3361_v63 = vmov 64.0  }
 0x43e   : > { %v3210_v2 = vpop.eup %3209 }
 0x43f   : > { %v788_v4 = vmul.f32 %v3210_v2, %v3200_v45  ;;  %v922_v8 = vpop.xlane.xlu0 %921 }
 0x441   : > { %v789_v5 = vpack.c.bf16 %v788_v4, %v787_v3 }
 0x442   : > { %v3212_v6 = vpop.eup %3211  ;;  %v925_v7 = vpop.xlane.xlu2 %924 }
 0x443   : > { %2713 = vmatmul.msk.bf16.vlgmr.msrb.gmra.mxu3 %vm742_vm3, %v789_v5  ;;  %v994_v9 = vsel %vm742_vm3, %v3212_v6, 0.0  ;;  %3213 = vrcp.f32 %v925_v7 }
 0x444   : > { %995 = vadd.xlane.f32.xlu0 %v994_v9  ;;  %3215 = vrcp.f32 %v922_v8 }
 0x449   : > { %v3214_v10 = vpop.eup %3213 }
 0x44a   : > { %v932_v11 = vpop.permute.xlu2 %931  ;;  %v3216_v12 = vpop.eup %3215  ;;  %v929_v14 = vmul.f32 %v3214_v10, %v3204_v53 }
 0x44b   : > { %944 = vmatpush.bf16.msra.mxu3 %v932_v11  ;;  %v928_v15 = vmul.f32 %v3216_v12, %v3202_v51 }
 0x44d   : > { %v930_v17 = vpack.c.bf16 %v929_v14, %v928_v15  ;;  %v2763_v15 = vld [vmem:[%s4315_s7 + $0x30] sm:$0xf] }
 0x453   : > { %2717 = vmatmul.msk.bf16.vlgmr.msra.gmra.mxu3 %vm742_vm3, %v930_v17  ;;  %v3038_v17 = vld [vmem:[%s4315_s7 + $0x34] sm:$0xf0] }
 0x455   : > { %1002 = vrot.lane.b32.xlu1 %v3637_v22, %s3360_s30  ;;  %s3087_s30 = sshll.u32 %s3466_s22, 4 }
 0x456   : > { %s2565_s17 = scalar_lea.hbm %s4359_s16, %s3087_s30  ;;  %s3309_s30 = scalar_lea.hbm %s4359_s16, 32 }
 0x457   : > { %s2568_s22 = sshll.u32 %s2565_s17, 4  ;;  %s2569_s22 = int_to_ptr.hbm [resolvable:$true] %s2568_s22 }
 0x458   : > { %3144 = vrot.lane.b32.xlu0 %v3143_v32, %s3359_s29  ;;  %v3028_v32 = vld [vmem:[%s4314_s6 + $0x8] sm:$0xff]  ;;  %s2656_s29 = sshll.u32 %s511_s27, 4 }
 0x459   : > { %1096 = vmatpush.bf16.msrb.mxu2 %v3028_v32  ;;  %s513_s25 = scalar_lea.vmem [#allocation2], %s2656_s29 }
 0x45a   : > { %s2566_s20 = sshll.u32 %s513_s25, 4  ;;  %s2567_s20 = int_to_ptr.vmem [resolvable:$true] %s2566_s20 }
 0x45d   : > { %1097 = vmatpush.bf16.msrb.mxu2 %v3027_v41  ;;  %v2739_v41 = vld [vmem:[%s4315_s7] sm:$0xf] }
 0x4af   : > { %v993_v19 = vpop.xlane.xlu1 %992 }
 0x4b7   : > { %v996_v18 = vpop.xlane.xlu0 %995 }
 0x4b8   : > { %3217 = vrcp.f32 %v996_v18  ;;  %v3037_v18 = vld [vmem:[%s4315_s7 + $0x34] sm:$0xf] }
 0x4b9   : > { %3219 = vrcp.f32 %v993_v19  ;;  %v2764_v19 = vor.u32 %v3038_v17, %v2763_v15 }
 0x4ba   : > { %3221 = vrcp.f32 %v3361_v63 }
 0x4bb   : > { %1270 = vmatpush.bf16.msrb.mxu3 %v2764_v19  ;;  %v3046_v19 = vld [vmem:[%s4316_s8 + $0x38] sm:$0xff] }
 0x4be   : > { %v3218_v20 = vpop.eup %3217 }
 0x4bf   : > { %v3220_v21 = vpop.eup %3219  ;;  %v1000_v23 = vmul.f32 %v3218_v20, %v3212_v6  ;;  %v2765_v20 = vld [vmem:[%s4315_s7 + $0x38] sm:$0xf0] }
 0x4c0   : > { %v999_v25 = vmul.f32 %v3220_v21, %v3206_v62  ;;  %v3222_v0 = vpop.eup %3221  ;;  %v2768_v21 = vor.u32 %v3037_v18, %v2765_v20  ;;  %v3053_v18 = vld [vmem:[%s4316_s8 + $0x70] sm:$0xff]  ;;  %v3052_v20 = vld [vmem:[%s4316_s8 + $0x68] sm:$0xff] }
 0x4c1   : > { %v1161_v1 = vmul.f32 64.0, %v3222_v0  ;;  %vm1165_vm12 = vweird.f32 %v3222_v0 }
 0x4c2   : > { %v1001_v33 = vpack.c.bf16 %v1000_v23, %v999_v25  ;;  %1284 = vmatpush.bf16.msrb.mxu0 %v2768_v21  ;;  %v2755_v23 = vld [vmem:[%s4315_s7 + $0x20] sm:$0xf]  ;;  %v3035_v25 = vld [vmem:[%s4315_s7 + $0x24] sm:$0xf]  ;;  %v3045_v21 = vld [vmem:[%s4316_s8 + $0x30] sm:$0xff] }
 0x4c3   : > { %v1162_v2 = vsub.f32 1.0, %v1161_v1  ;;  %v3162_v1 = vld [vmem:[%s4321_s13 + $0x3] ss:$0 sm:$0xff] }
 0x4c5   : > { %v1163_v3 = vmul.f32 %v3222_v0, %v1162_v2 }
 0x4c6   : > { %v802_v24 = vpop.f32.mrf.mxu3 }
 0x4c7   : > { %v1003_v27 = vpop.permute.xlu1 %1002 }
 0x4c8   : > { %1015 = vmatpush.bf16.msrb.mxu1 %v1003_v27 }
 0x4ca   : > { %v3145_v42 = vpop.permute.xlu0 %3144 }
 0x4cb   : > { %2719 = vmatmul.msk.bf16.vlgmr.msrb.gmra.mxu1 %vm742_vm3, %v1001_v33  ;;  %v3146_v45 = vunpack.i.l.bf16 %v3145_v42  ;;  %v3147_v44 = vunpack.i.h.bf16 %v3145_v42  ;;  %v2757_v33 = vld [vmem:[%s4315_s7 + $0x28] sm:$0xf0]  ;;  %v3032_v42 = vld [vmem:[%s4315_s7 + $0x4] sm:$0xf0] }
 0x4cc   : > { %1472 = vmatpush.bf16.msra.mxu1 %v3046_v19 }
 0x4cd   : > { %v1046_v49 = vsel %vm742_vm3, %v802_v24, %v3146_v45  ;;  %v3036_v24 = vld [vmem:[%s4315_s7 + $0x24] sm:$0xf0]  ;;  %v2740_v45 = vor.u32 %v3032_v42, %v2739_v41 }
 0x4ce   : > { %v804_v22 = vpop.f32.mrf.mxu3  ;;  %v2756_v27 = vor.u32 %v3036_v24, %v2755_v23  ;;  %v3051_v23 = vld [vmem:[%s4316_s8 + $0x60] sm:$0xff] }
 0x4cf   : > { %v1047_v50 = vsel %vm742_vm3, %v804_v22, %v3147_v44  ;;  %v2760_v22 = vor.u32 %v3035_v25, %v2757_v33  ;;  %v1118_v24 = vld [vmem:[%s4322_s14] ss:$4 sm:$0x3]  ;;  %v3044_v25 = vld [vmem:[%s4316_s8 + $0x28] sm:$0xff] }
 0x4d0   : > { %1271 = vmatpush.bf16.msrb.mxu3 %v2756_v27  ;;  %1473 = vmatpush.bf16.msra.mxu1 %v3045_v21  ;;  %v3050_v27 = vld [vmem:[%s4316_s8 + $0x58] sm:$0xff]  ;;  %v1220_v33 = vperm.slane %v1118_v24, 1 }
 0x4d1   : > { %1285 = vmatpush.bf16.msrb.mxu0 %v2760_v22  ;;  %v3043_v22 = vld [vmem:[%s4316_s8 + $0x20] sm:$0xff] }
 0x4d4   : > { %1474 = vmatpush.bf16.msra.mxu1 %v3044_v25 }
 0x4d6   : > { %v946_v34 = vpop.f32.mrf.mxu3 }
 0x4d8   : > { %1475 = vmatpush.bf16.msra.mxu1 %v3043_v22 }
 0x4de   : > { %v948_v35 = vpop.f32.mrf.mxu3 }
 0x4df   : > { %v3148_v37 = vpack.i.bf16 %v948_v35, %v946_v34 }
 0x4e1   : > { %3149 = vrot.lane.b32.xlu2 %v3148_v37, %s3358_s21  ;;  %v2747_v37 = vld [vmem:[%s4315_s7 + $0x10] sm:$0xf] }
 0x4e2   : > { %v2748_v32 = vor.u32 %v3034_v26, %v2747_v37  ;;  %v3042_v26 = vld [vmem:[%s4316_s8 + $0x18] sm:$0xff] }
 0x4e3   : > { %1476 = vmatpush.bf16.msra.mxu1 %v3042_v26 }
 0x4e4   : > { %1272 = vmatpush.bf16.msrb.mxu3 %v2748_v32  ;;  %v1219_v32 = vperm.slane %v1118_v24, 0 }
 0x4e8   : > { %1273 = vmatpush.bf16.msrb.mxu3 %v2740_v45 }
 0x53b   : > { %v3150_v43 = vpop.permute.xlu2 %3149 }
 0x53c   : > { %v3152_v46 = vunpack.i.h.bf16 %v3150_v43  ;;  %v3151_v47 = vunpack.i.l.bf16 %v3150_v43  ;;  %v3031_v43 = vld [vmem:[%s4315_s7 + $0x4] sm:$0xf] }
 0x53e   : > { %v1050_v52 = vsel %vm1048_vm10, %v1047_v50, %v3152_v46  ;;  %v1049_v53 = vsel %vm1048_vm10, %v1046_v49, %v3151_v47  ;;  %v2741_v46 = vld [vmem:[%s4315_s7 + $0x8] sm:$0xf0] }
 0x53f   : > { %v2744_v47 = vor.u32 %v3031_v43, %v2741_v46  ;;  %v3047_v43 = vld [vmem:[%s4316_s8 + $0x40] sm:$0xff] }
 0x548   : > { %v1017_v38 = vpop.f32.mrf.mxu1 }
 0x550   : > { %v1019_v39 = vpop.f32.mrf.mxu1 }
 0x551   : > { %v3153_v40 = vpack.i.bf16 %v1019_v39, %v1017_v38  ;;  %v2749_v38 = vld [vmem:[%s4315_s7 + $0x18] sm:$0xf0] }
 0x553   : > { %3154 = vrot.lane.b32.xlu0 %v3153_v40, %s3355_s23  ;;  %v2752_v40 = vor.u32 %v3033_v28, %v2749_v38  ;;  %v3048_v38 = vld [vmem:[%s4316_s8 + $0x48] sm:$0xff]  ;;  %s3303_s23 = sshra.s32 %s2569_s22, 4  ;;  %s3304_s23 = int_to_ptr.hbm [resolvable:$true] %s3303_s23 }
 0x554   : > { %s3305_s21 = scalar_lea.hbm %s3304_s23, 16  ;;  %p3310_p0 = scmp.lt.s32.totalorder %s3304_s23, %s4359_s16 }
 0x555   : > { %1286 = vmatpush.bf16.msrb.mxu0 %v2752_v40  ;;  %v3041_v40 = vld [vmem:[%s4316_s8 + $0x10] sm:$0xff]  ;;  %p3306_p11 = scmp.ne.s32.totalorder %s3304_s23, %s3305_s21  ;;  %p3311_p1 = scmp.lt.s32.totalorder %s3309_s30, %s3305_s21 }
 0x556   : > { %1477 = vmatpush.bf16.msra.mxu1 %v3041_v40 }
 0x557   : > { %p3307_p12 = pnand %p3306_p11, %p3483_p5  ;;  %p3312_p2 = por %p3311_p1, %p3310_p0 }
 0x559   : > { %1287 = vmatpush.bf16.msrb.mxu0 %v2744_v47  ;;  %v3040_v47 = vld [vmem:[%s4316_s8 + $0x8] sm:$0xff]  ;;  %p3308_p13 = pneg %p3307_p12 }
 0x55a   : > { %1478 = vmatpush.bf16.msra.mxu1 %v3040_v47 }
 0x55b   : > { %p3313_p3 = pnand %p3312_p2, %p3308_p13 }
 0x5c5   : > { %v3155_v48 = vpop.permute.xlu0 %3154 }
 0x5c6   : > { %v3157_v31 = vunpack.i.h.bf16 %v3155_v48  ;;  %v3156_v51 = vunpack.i.l.bf16 %v3155_v48 }
 0x5c8   : > { %v1052_v54 = vsel %vm1051_vm11, %v1049_v53, %v3156_v51  ;;  %v1053_v36 = vsel %vm1051_vm11, %v1050_v52, %v3157_v31 }
 0x5c9   : > { %v1062_v55 = vpack.c.bf16 %v1053_v36, %v1052_v54 }
 0x5cb   : > { %2736 = vmatmul.msk.bf16.vlgmr.msrb.gmra.mxu2 %vm628_vm0, %v1062_v55 }
 0x64e   : > { %v1099_v56 = vpop.f32.mrf.mxu2 }
 0x64f   : > { %v3741_v57 = vadd.f32 %v1099_v56, %v3572_v29  ;;  %v1164_v29 = vadd.f32 %v3222_v0, %v1163_v3 }
 0x651   : > { %v1154_v58 = vsel %vm628_vm0, %v3741_v57, 0.0  ;;  %v3750_v4 = vsel %vm1165_vm12, %v3222_v0, %v1164_v29 }
 0x652   : > { %1155 = vadd.xlane.f32.xlu1 %v1154_v58 }
 0x656   : > { %v1101_v59 = vpop.f32.mrf.mxu2 }
 0x657   : > { %v3746_v60 = vadd.f32 %v1101_v59, %v3574_v30  ;;  %v3161_v59 = vld [vmem:[%s4321_s13 + $0x2] ss:$0 sm:$0xff] }
 0x659   : > { %v1157_v62 = vsel %vm628_vm0, %v3746_v60, 0.0 }
 0x65a   : > { %1158 = vadd.xlane.f32.xlu2 %v1157_v62 }
 0x6c5   : > { %v1156_v5 = vpop.xlane.xlu1 %1155 }
 0x6c6   : > { %v1167_v6 = vmul.f32 %v3750_v4, %v1156_v5  ;;  %v3163_v5 = vld [vmem:[%s4321_s13 + $0x4] ss:$0 sm:$0xff] }
 0x6c8   : > { %v3754_v30 = vsub.f32 %v3741_v57, %v1167_v6 }
 0x6ca   : > { %v1171_v7 = vmul.f32 %v3754_v30, %v3754_v30 }
 0x6cc   : > { %v1173_v8 = vsel %vm628_vm0, %v1171_v7, 0.0 }
 0x6cd   : > { %1174 = vadd.xlane.f32.xlu0 %v1173_v8  ;;  %v1159_v9 = vpop.xlane.xlu2 %1158 }
 0x6ce   : > { %v1168_v10 = vmul.f32 %v3750_v4, %v1159_v9 }
 0x6d0   : > { %v3761_v11 = vsub.f32 %v3746_v60, %v1168_v10  ;;  %v3164_v10 = vld [vmem:[%s4321_s13 + $0x5] ss:$0 sm:$0xff] }
 0x6d2   : > { %v1172_v12 = vmul.f32 %v3761_v11, %v3761_v11 }
 0x6d4   : > { %v1176_v14 = vsel %vm628_vm0, %v1172_v12, 0.0 }
 0x6d5   : > { %1177 = vadd.xlane.f32.xlu1 %v1176_v14 }
 0x740   : > { %v1175_v34 = vpop.xlane.xlu0 %1174 }
 0x741   : > { %v1179_v35 = vmul.f32 %v1175_v34, %v3750_v4 }
 0x743   : > { %v1181_v39 = vadd.f32 1e-05, %v1179_v35  ;;  %v3049_v35 = vld [vmem:[%s4316_s8 + $0x50] sm:$0xff] }
 0x745   : > { %3223 = vrsqrt.f32 %v1181_v39  ;;  %vm1189_vm14 = vweird.f32 %v1181_v39 }
 0x748   : > { %v1178_v44 = vpop.xlane.xlu1 %1177 }
 0x749   : > { %v1180_v48 = vmul.f32 %v1178_v44, %v3750_v4 }
 0x74b   : > { %v3224_v49 = vpop.eup %3223  ;;  %v1182_v50 = vadd.f32 1e-05, %v1180_v48 }
 0x74c   : > { %v1184_v31 = vmul.f32 %v3224_v49, %v1181_v39  ;;  %vm1190_vm13 = vweird.f32 %v3224_v49 }
 0x74d   : > { %3225 = vrsqrt.f32 %v1182_v50  ;;  %vm1191_vm15 = vmor %vm1189_vm14, %vm1190_vm13  ;;  %vm1199_vm2 = vweird.f32 %v1182_v50 }
 0x74e   : > { %v1185_v51 = vmul.f32 %v3224_v49, %v1184_v31  ;;  %v3039_v31 = vld [vmem:[%s4316_s8] sm:$0xff] }
 0x74f   : > { %1479 = vmatpush.bf16.msra.mxu1 %v3039_v31 }
 0x750   : > { %v1186_v52 = vmul.f32 0.5, %v1185_v51 }
 0x752   : > { %v1187_v53 = vsub.f32 1.5, %v1186_v52 }
 0x753   : > { %v3226_v54 = vpop.eup %3225 }
 0x754   : > { %v1188_v36 = vmul.f32 %v3224_v49, %v1187_v53  ;;  %v1194_v55 = vmul.f32 %v3226_v54, %v1182_v50  ;;  %vm1200_vm1 = vweird.f32 %v3226_v54 }
 0x755   : > { %vm1201_vm4 = vmor %vm1199_vm2, %vm1200_vm1 }
 0x756   : > { %v1192_v56 = vsel %vm1191_vm15, %v3224_v49, %v1188_v36  ;;  %v1195_v58 = vmul.f32 %v3226_v54, %v1194_v55 }
 0x757   : > { %v1203_v62 = vmul.f32 %v1192_v56, %v3754_v30 }
 0x758   : > { %v1196_v63 = vmul.f32 0.5, %v1195_v58 }
 0x759   : > { %v1206_v2 = vmul.f32 %v3161_v59, %v1203_v62 }
 0x75a   : > { %v1197_v0 = vsub.f32 1.5, %v1196_v63 }
 0x75b   : > { %v3826_v6 = vadd.f32 %v3162_v1, %v1206_v2 }
 0x75c   : > { %v1198_v3 = vmul.f32 %v3226_v54, %v1197_v0 }
 0x75d   : > { %v1212_v8 = vmul.f32 %v3163_v5, %v3826_v6 }
 0x75e   : > { %v1202_v29 = vsel %vm1201_vm4, %v3226_v54, %v1198_v3 }
 0x75f   : > { %v1204_v30 = vmul.f32 %v1202_v29, %v3761_v11  ;;  %v1215_v14 = vadd.f32 %v3164_v10, %v1212_v8  ;;  %v3054_v11 = vld [vmem:[%s4316_s8 + $0x78] sm:$0xff] }
 0x760   : > { %1486 = vmatpush.bf16.msra.mxu2 %v3054_v11 }
 0x761   : > { %v1207_v7 = vmul.f32 %v3161_v59, %v1204_v30 }
 0x763   : > { %v3830_v9 = vadd.f32 %v3162_v1, %v1207_v7 }
 0x764   : > { %1487 = vmatpush.bf16.msra.mxu2 %v3053_v18 }
 0x765   : > { %v1213_v12 = vmul.f32 %v3163_v5, %v3830_v9 }
 0x767   : > { %v1216_v15 = vadd.f32 %v3164_v10, %v1213_v12 }
 0x768   : > { %1488 = vmatpush.bf16.msra.mxu2 %v3052_v20 }
 0x769   : > { %v1217_v17 = vpack.c.bf16 %v1216_v15, %v1215_v14  ;;  %v3058_v14 = vld [vmem:[%s4319_s11 + $0x18] sm:$0xff] }
 0x76a   : > { %1619 = vmatpush.bf16.msra.mxu3 %v3058_v14 }
 0x76b   : > { %2769 = vmatmul.msk.bf16.vlgmr.msrb.gmra.mxu3 %vm628_vm0, %v1217_v17  ;;  %2770 = vmatmul.msk.bf16.vlgmr.msrb.gmra.mxu0 %vm628_vm0, %v1217_v17 }
 0x76c   : > { %1489 = vmatpush.bf16.msra.mxu2 %v3051_v23 }
 0x770   : > { %1490 = vmatpush.bf16.msra.mxu2 %v3050_v27 }
 0x774   : > { %1491 = vmatpush.bf16.msra.mxu2 %v3049_v35 }
 0x778   : > { %1492 = vmatpush.bf16.msra.mxu2 %v3048_v38 }
 0x77c   : > { %1493 = vmatpush.bf16.msra.mxu2 %v3047_v43 }
 0x7e8   : > { %v1289_v34 = vpop.f32.mrf.mxu0 }
 0x7e9   : > { %v3871_v37 = vadd.f32 %v1289_v34, %v1220_v33 }
 0x7eb   : > { %v2772_v28 = vmul.f32 -1.442695, %v3871_v37 }
 0x7ed   : > { %3227 = vpow2.f32 %v2772_v28 }
 0x7ee   : > { %v1275_v39 = vpop.f32.mrf.mxu3 }
 0x7ef   : > { %v3883_v41 = vadd.f32 %v1275_v39, %v1219_v32 }
 0x7f0   : > { %v1291_v42 = vpop.f32.mrf.mxu0 }
 0x7f1   : > { %v2771_v45 = vmul.f32 -1.442695, %v3883_v41  ;;  %v3889_v46 = vadd.f32 %v1291_v42, %v1220_v33 }
 0x7f3   : > { %v3228_v44 = vpop.eup %3227  ;;  %3229 = vpow2.f32 %v2771_v45  ;;  %v2774_v48 = vmul.f32 -1.442695, %v3889_v46 }
 0x7f4   : > { %v1307_v49 = vadd.f32 1.0, %v3228_v44 }
 0x7f5   : > { %3231 = vpow2.f32 %v2774_v48 }
 0x7f6   : > { %3233 = vrcp.f32 %v1307_v49  ;;  %v1277_v50 = vpop.f32.mrf.mxu3  ;;  %v1334_v29 = vand.u32 2147483647, %v1307_v49  ;;  %v1336_v8 = vand.u32 2147483648, %v1307_v49  ;;  %vm1330_vm6 = vweird.f32 %v1307_v49 }
 0x7f7   : > { %v3898_v51 = vadd.f32 %v1277_v50, %v1219_v32 }
 0x7f8   : > { %vm1335_vm8 = vcmp.eq.f32.partialorder %v1334_v29, 8.507059e+37  ;;  %v1337_v20 = vor.u32 1.1754944e-38, %v1336_v8 }
 0x7f9   : > { %v3230_v52 = vpop.eup %3229  ;;  %v2773_v53 = vmul.f32 -1.442695, %v3898_v51 }
 0x7fa   : > { %v1306_v54 = vadd.f32 1.0, %v3230_v52 }
 0x7fb   : > { %v3232_v36 = vpop.eup %3231  ;;  %3235 = vpow2.f32 %v2773_v53 }
 0x7fc   : > { %v3234_v55 = vpop.eup %3233  ;;  %3237 = vrcp.f32 %v1306_v54  ;;  %v1309_v58 = vadd.f32 1.0, %v3232_v36  ;;  %vm1315_vm11 = vweird.f32 %v1306_v54  ;;  %v1321_v24 = vand.u32 2147483648, %v1306_v54 }
 0x7fd   : > { %v1326_v56 = vmul.f32 %v3234_v55, %v1307_v49  ;;  %vm1331_vm5 = vweird.f32 %v3234_v55  ;;  %v1319_v33 = vand.u32 2147483647, %v1306_v54 }
 0x7fe   : > { %3239 = vrcp.f32 %v1309_v58  ;;  %vm3901_vm7 = vmor %vm1330_vm6, %vm1331_vm5  ;;  %v1366_v15 = vand.u32 2147483648, %v1309_v58  ;;  %v1364_v19 = vand.u32 2147483647, %v1309_v58  ;;  %vm1360_vm12 = vweird.f32 %v1309_v58 }
 0x7ff   : > { %v1327_v59 = vsub.f32 1.0, %v1326_v56  ;;  %v1322_v43 = vor.u32 1.1754944e-38, %v1321_v24  ;;  %vm1320_vm2 = vcmp.eq.f32.partialorder %v1319_v33, 8.507059e+37 }
 0x800   : > { %v1367_v22 = vor.u32 1.1754944e-38, %v1366_v15  ;;  %vm1365_vm15 = vcmp.eq.f32.partialorder %v1364_v19, 8.507059e+37 }
 0x801   : > { %v3236_v62 = vpop.eup %3235  ;;  %v1328_v0 = vmul.f32 %v3234_v55, %v1327_v59 }
 0x802   : > { %v3238_v63 = vpop.eup %3237  ;;  %v1308_v1 = vadd.f32 1.0, %v3236_v62 }
 0x803   : > { %v1311_v2 = vmul.f32 %v3238_v63, %v1306_v54  ;;  %v1329_v30 = vadd.f32 %v3234_v55, %v1328_v0  ;;  %vm1316_vm10 = vweird.f32 %v3238_v63 }
 0x804   : > { %3241 = vrcp.f32 %v1308_v1  ;;  %v3240_v3 = vpop.eup %3239  ;;  %vm3907_vm14 = vmor %vm1315_vm11, %vm1316_vm10  ;;  %v1349_v28 = vand.u32 2147483647, %v1308_v1  ;;  %v1351_v32 = vand.u32 2147483648, %v1308_v1  ;;  %vm1345_vm4 = vweird.f32 %v1308_v1 }
 0x805   : > { %v1312_v5 = vsub.f32 1.0, %v1311_v2  ;;  %v1356_v7 = vmul.f32 %v3240_v3, %v1309_v58  ;;  %v1333_v11 = vsel %vm3901_vm7, %v3234_v55, %v1329_v30  ;;  %vm1361_vm9 = vweird.f32 %v3240_v3  ;;  %v3165_v55 = vld [vmem:[%s4321_s13 + $0x6] ss:$0 sm:$0xff] }
 0x806   : > { %v1338_v27 = vsel %vm1335_vm8, %v1337_v20, %v1333_v11  ;;  %vm1362_vm13 = vmor %vm1360_vm12, %vm1361_vm9  ;;  %v1352_v49 = vor.u32 1.1754944e-38, %v1351_v32  ;;  %vm1350_vm6 = vcmp.eq.f32.partialorder %v1349_v28, 8.507059e+37  ;;  %vm533_vm7 = vcmp.gt.f32.partialorder %v3632_v16, 0.5  ;;  %v3057_v11 = vld [vmem:[%s4319_s11 + $0x10] sm:$0xff]  ;;  %v3055_v20 = vld [vmem:[%s4319_s11] sm:$0xff] }
 0x807   : > { %v1313_v10 = vmul.f32 %v3238_v63, %v1312_v5  ;;  %v1357_v12 = vsub.f32 1.0, %v1356_v7  ;;  %v1371_v42 = vmul.f32 %v1338_v27, %v3871_v37  ;;  %vm534_vm8 = vcmp.gt.f32.partialorder %v3622_v13, 0.5  ;;  %1620 = vmatpush.bf16.msra.mxu3 %v3057_v11 }
 0x808   : > { %v1556_v16 = vsel %vm534_vm8, 1, %v3354_v61 }
 0x809   : > { %v1358_v18 = vmul.f32 %v3240_v3, %v1357_v12  ;;  %v1314_v21 = vadd.f32 %v3238_v63, %v1313_v10 }
 0x80a   : > { %v3242_v17 = vpop.eup %3241 }
 0x80b   : > { %v1341_v23 = vmul.f32 %v3242_v17, %v1308_v1  ;;  %v1359_v25 = vadd.f32 %v3240_v3, %v1358_v18  ;;  %v1318_v38 = vsel %vm3907_vm14, %v3238_v63, %v1314_v21  ;;  %vm1346_vm1 = vweird.f32 %v3242_v17 }
 0x80c   : > { %v1323_v44 = vsel %vm1320_vm2, %v1322_v43, %v1318_v38  ;;  %vm1347_vm5 = vmor %vm1345_vm4, %vm1346_vm1 }
 0x80d   : > { %v1342_v34 = vsub.f32 1.0, %v1341_v23  ;;  %v1363_v26 = vsel %vm1362_vm13, %v3240_v3, %v1359_v25  ;;  %v1370_v52 = vmul.f32 %v1323_v44, %v3883_v41 }
 0x80e   : > { %v1368_v39 = vsel %vm1365_vm15, %v1367_v22, %v1363_v26  ;;  %v3166_v26 = vld [vmem:[%s4321_s13 + $0x7] ss:$0 sm:$0xff] }
 0x80f   : > { %v1343_v40 = vmul.f32 %v3242_v17, %v1342_v34  ;;  %v1373_v45 = vmul.f32 %v1368_v39, %v3889_v46  ;;  %v3167_v39 = vld [vmem:[%s4321_s13 + $0x8] ss:$0 sm:$0xff] }
 0x811   : > { %v1344_v47 = vadd.f32 %v3242_v17, %v1343_v40  ;;  %v1375_v48 = vpack.c.bf16 %v1373_v45, %v1371_v42 }
 0x813   : > { %v1348_v50 = vsel %vm1347_vm5, %v3242_v17, %v1344_v47  ;;  %1494 = vmatmul.bf16.vlgmr.msra.gmra.mxu2 %v1375_v48 }
 0x814   : > { %v1353_v31 = vsel %vm1350_vm6, %v1352_v49, %v1348_v50  ;;  %v3168_v49 = vld [vmem:[%s4321_s13 + $0x9] ss:$0 sm:$0xff] }
 0x815   : > { %v1372_v53 = vmul.f32 %v1353_v31, %v3898_v51 }
 0x817   : > { %v1374_v54 = vpack.c.bf16 %v1372_v53, %v1370_v52 }
 0x819   : > { %1480 = vmatmul.bf16.vlgmr.msra.gmra.mxu1 %v1374_v54  ;;  %v3169_v54 = vld [vmem:[%s4321_s13 + $0xa] ss:$0 sm:$0xff] }
 0x896   : > { %v1481_v37 = vpop.f32.mrf.mxu1  ;;  %v1495_v36 = vpop.f32.mrf.mxu2 }
 0x897   : > { %v1496_v46 = vadd.f32 %v1495_v36, %v1481_v37 }
 0x899   : > { %v1500_v56 = vadd.f32 %v1496_v46, %v3826_v6  ;;  %v1555_v6 = vsel %vm533_vm7, 1, %v3354_v61  ;;  %v3056_v61 = vld [vmem:[%s4319_s11 + $0x8] sm:$0xff] }
 0x89a   : > { %1621 = vmatpush.bf16.msra.mxu3 %v3056_v61 }
 0x89b   : > { %v1503_v58 = vadd.f32 %v3165_v55, %v1500_v56 }
 0x89d   : > { %v1505_v59 = vsel %vm628_vm0, %v1503_v58, 0.0 }
 0x89e   : > { %v1483_v62 = vpop.f32.mrf.mxu1  ;;  %v1497_v63 = vpop.f32.mrf.mxu2  ;;  %1506 = vadd.xlane.f32.xlu2 %v1505_v59  ;;  %1622 = vmatpush.bf16.msra.mxu3 %v3055_v20 }
 0x89f   : > { %v1498_v41 = vadd.f32 %v1497_v63, %v1483_v62  ;;  %v3170_v63 = vld [vmem:[%s4322_s14 + $0x2] ss:$0 sm:$0xff] }
 0x8a1   : > { %v1501_v51 = vadd.f32 %v1498_v41, %v3830_v9 }
 0x8a3   : > { %v1504_v0 = vadd.f32 %v3165_v55, %v1501_v51 }
 0x8a5   : > { %v1508_v1 = vsel %vm628_vm0, %v1504_v0, 0.0 }
 0x8a6   : > { %1509 = vadd.xlane.f32.xlu0 %v1508_v1 }
 0x8ba   : > { %1558 = vperm.xlu0 %3158, %v1555_v6  }
 0x911   : > { %v1507_v2 = vpop.xlane.xlu2 %1506 }
 0x912   : > { %v1511_v3 = vmul.f32 %v1507_v2, %v3750_v4 }
 0x914   : > { %v1513_v29 = vsub.f32 %v1503_v58, %v1511_v3 }
 0x916   : > { %v1515_v5 = vmul.f32 %v1513_v29, %v1513_v29 }
 0x918   : > { %v1517_v30 = vsel %vm628_vm0, %v1515_v5, 0.0 }
 0x919   : > { %1518 = vadd.xlane.f32.xlu1 %v1517_v30  ;;  %v1510_v7 = vpop.xlane.xlu0 %1509 }
 0x91a   : > { %v1512_v9 = vmul.f32 %v1510_v7, %v3750_v4 }
 0x91c   : > { %v1514_v8 = vsub.f32 %v1504_v0, %v1512_v9 }
 0x91e   : > { %v1516_v10 = vmul.f32 %v1514_v8, %v1514_v8 }
 0x920   : > { %v1520_v12 = vsel %vm628_vm0, %v1516_v10, 0.0 }
 0x921   : > { %1521 = vadd.xlane.f32.xlu2 %v1520_v12 }
 0x92c   : > { %v3952_v43 = vpop.permute.xlu0 %1558 }
 0x92d   : > { %vm1563_vm14 = vcmp.eq.s32.totalorder %v3952_v43, 1 }
 0x932   : > { %1561 = vperm.xlu1 %3141, %v1556_v16  }
 0x98c   : > { %v1519_v15 = vpop.xlane.xlu1 %1518 }
 0x98d   : > { %v1523_v17 = vmul.f32 %v1519_v15, %v3750_v4 }
 0x98f   : > { %v1525_v18 = vadd.f32 1e-05, %v1523_v17 }
 0x991   : > { %3243 = vrsqrt.f32 %v1525_v18  ;;  %vm1533_vm10 = vweird.f32 %v1525_v18 }
 0x994   : > { %v1522_v13 = vpop.xlane.xlu2 %1521 }
 0x995   : > { %v1524_v19 = vmul.f32 %v1522_v13, %v3750_v4 }
 0x997   : > { %v3244_v21 = vpop.eup %3243  ;;  %v1526_v23 = vadd.f32 1e-05, %v1524_v19 }
 0x998   : > { %v1528_v24 = vmul.f32 %v3244_v21, %v1525_v18  ;;  %vm1534_vm9 = vweird.f32 %v3244_v21 }
 0x999   : > { %3245 = vrsqrt.f32 %v1526_v23  ;;  %vm1535_vm11 = vmor %vm1533_vm10, %vm1534_vm9  ;;  %vm1543_vm13 = vweird.f32 %v1526_v23 }
 0x99a   : > { %v1529_v25 = vmul.f32 %v3244_v21, %v1528_v24 }
 0x99c   : > { %v1530_v27 = vmul.f32 0.5, %v1529_v25 }
 0x99e   : > { %v1531_v33 = vsub.f32 1.5, %v1530_v27  ;;  %v1677_v27 = vlaneseq }
 0x99f   : > { %v3246_v22 = vpop.eup %3245 }
 0x9a0   : > { %v1532_v34 = vmul.f32 %v3244_v21, %v1531_v33  ;;  %v1538_v35 = vmul.f32 %v3246_v22, %v1526_v23  ;;  %vm1544_vm12 = vweird.f32 %v3246_v22 }
 0x9a1   : > { %vm1545_vm15 = vmor %vm1543_vm13, %vm1544_vm12 }
 0x9a2   : > { %v1536_v28 = vsel %vm1535_vm11, %v3244_v21, %v1532_v34  ;;  %v1539_v32 = vmul.f32 %v3246_v22, %v1538_v35  ;;  %v1678_v34 = vshrl.u32 %v1677_v27, 7 }
 0x9a3   : > { %v1547_v38 = vmul.f32 %v1536_v28, %v1513_v29 }
 0x9a4   : > { %v1540_v40 = vmul.f32 0.5, %v1539_v32  ;;  %v3963_v53 = vpop.permute.xlu1 %1561  ;;  %v1679_v35 = vadd.s32 8, %v1678_v34  ;;  %v1682_v32 = vadd.s32 4294967293, %v1678_v34 }
 0x9a5   : > { %v1550_v42 = vmul.f32 %v3166_v26, %v1547_v38  ;;  %vm1564_vm1 = vcmp.eq.s32.totalorder %v3963_v53, 1  ;;  %v1852_v38 = vadd.s32 1, %v1678_v34 }
 0x9a6   : > { %v1541_v45 = vsub.f32 1.5, %v1540_v40  ;;  %v1683_v28 = vadd.s32 4294967293, %v1679_v35 }
 0x9a7   : > { %v1553_v47 = vadd.f32 %v3167_v39, %v1550_v42  ;;  %v3362_v42 = vmov 0.0  }
 0x9a8   : > { %v1542_v44 = vmul.f32 %v3246_v22, %v1541_v45 }
 0x9a9   : > { %v3961_v31 = vsel %vm1563_vm14, %v1553_v47, %v3741_v57 }
 0x9aa   : > { %v1546_v48 = vsel %vm1545_vm15, %v3246_v22, %v1542_v44  ;;  %v1569_v37 = vmul.f32 %v3168_v49, %v3961_v31  ;;  %v1725_v44 = vadd.s32 4294967294, %v1678_v34 }
 0x9ab   : > { %v1548_v50 = vmul.f32 %v1546_v48, %v1514_v8 }
 0x9ac   : > { %v1573_v55 = vadd.f32 %v3169_v54, %v1569_v37  ;;  %v1726_v37 = vadd.s32 4294967294, %v1679_v35 }
 0x9ad   : > { %v1551_v52 = vmul.f32 %v3166_v26, %v1548_v50  ;;  %v3986_v26 = vand.u32 127, %v1677_v27  ;;  %v1853_v50 = vadd.s32 1, %v1679_v35  ;;  %v3175_v27 = vld [vmem:[%s4321_s13 + $0x1b] ss:$0 sm:$0xff] }
 0x9ae   : > { %v1575_v59 = vsel %vm1563_vm14, %v1573_v55, 0.0  ;;  %v1769_v55 = vadd.s32 4294967295, %v1679_v35 }
 0x9af   : > { %v1554_v36 = vadd.f32 %v3167_v39, %v1551_v52  ;;  %vm1685_vm11 = vcmp.eq.s32.totalorder %v3986_v26, %v1683_v28  ;;  %vm1684_vm12 = vcmp.eq.s32.totalorder %v3986_v26, %v1682_v32  ;;  %vm1854_vm13 = vcmp.eq.s32.totalorder %v3986_v26, %v1852_v38 }
 0x9b0   : > { %v2859_v45 = vsel %vm1685_vm11, 1.0, %v3362_v42  ;;  %v2858_v47 = vsel %vm1684_vm12, 1.0, %v3362_v42  ;;  %vm1811_vm15 = vcmp.eq.s32.totalorder %v3986_v26, %v1678_v34  ;;  %v2874_v48 = vsel %vm1854_vm13, 1.0, %v3362_v42 }
 0x9b1   : > { %v3973_v46 = vsel %vm1564_vm1, %v1554_v36, %v3746_v60  ;;  %v2870_v52 = vsel %vm1811_vm15, 1.0, %v3362_v42 }
 0x9b2   : > { %v1570_v57 = vmul.f32 %v3168_v49, %v3973_v46  ;;  %v1768_v49 = vadd.s32 4294967295, %v1678_v34 }
 0x9b4   : > { %v1574_v56 = vadd.f32 %v3169_v54, %v1570_v57 }
 0x9b6   : > { %v1576_v58 = vsel %vm1564_vm1, %v1574_v56, 0.0 }
 0x9b7   : > { %v1585_v62 = vpack.c.bf16 %v1576_v58, %v1575_v59 }
 0x9b9   : > { %2855 = vmatmul.msk.bf16.vlgmr.msra.gmra.mxu3 %vm628_vm0, %v1585_v62  ;;  %v1895_v62 = vadd.s32 2, %v1678_v34 }
 0xa3c   : > { %v1624_v41 = vpop.f32.mrf.mxu3 }
 0xa3d   : > { %v1625_v60 = vadd.f32 %v3170_v63, %v1624_v41 }
 0xa3f   : > { %v2856_v51 = vmul.f32 -1.442695, %v1625_v60 }
 0xa41   : > { %3247 = vpow2.f32 %v2856_v51 }
 0xa44   : > { %v1626_v0 = vpop.f32.mrf.mxu3 }
 0xa45   : > { %v1627_v1 = vadd.f32 %v3170_v63, %v1626_v0  ;;  %v1938_v63 = vadd.s32 3, %v1678_v34  ;;  %v1939_v0 = vadd.s32 3, %v1679_v35 }
 0xa47   : > { %v3248_v2 = vpop.eup %3247  ;;  %v2857_v3 = vmul.f32 -1.442695, %v1627_v1  ;;  %vm1941_vm12 = vcmp.eq.s32.totalorder %v3986_v26, %v1939_v0 }
 0xa48   : > { %v1635_v6 = vadd.f32 1.0, %v3248_v2  ;;  %v2883_v2 = vsel %vm1941_vm12, 1.0, %v3362_v42 }
 0xa49   : > { %3249 = vpow2.f32 %v2857_v3  ;;  %v1985_v3 = vld [vmem:[%s4321_s13 + $0xe] sm:$0x1] }
 0xa4a   : > { %3251 = vrcp.f32 %v1635_v6  ;;  %v1648_v8 = vand.u32 2147483648, %v1635_v6  ;;  %v1646_v12 = vand.u32 2147483647, %v1635_v6  ;;  %vm1642_vm4 = vweird.f32 %v1635_v6 }
 0xa4c   : > { %v1649_v15 = vor.u32 1.1754944e-38, %v1648_v8  ;;  %vm1647_vm6 = vcmp.eq.f32.partialorder %v1646_v12, 8.507059e+37  ;;  %v3171_v12 = vld [vmem:[%s4321_s13 + $0x17] ss:$0 sm:$0xff] }
 0xa4f   : > { %v3250_v29 = vpop.eup %3249 }
 0xa50   : > { %v3252_v5 = vpop.eup %3251  ;;  %v1636_v30 = vadd.f32 1.0, %v3250_v29 }
 0xa51   : > { %v1638_v7 = vmul.f32 %v3252_v5, %v1635_v6  ;;  %vm1643_vm2 = vweird.f32 %v3252_v5  ;;  %v1986_v6 = vadd.f32 1e-05, %v1985_v3 }
 0xa52   : > { %3253 = vrcp.f32 %v1636_v30  ;;  %vm1644_vm5 = vmor %vm1642_vm4, %vm1643_vm2  ;;  %v1663_v13 = vand.u32 2147483648, %v1636_v30  ;;  %v1661_v20 = vand.u32 2147483647, %v1636_v30  ;;  %vm1657_vm8 = vweird.f32 %v1636_v30 }
 0xa53   : > { %v1639_v9 = vsub.f32 1.0, %v1638_v7  ;;  %vm1727_vm2 = vcmp.eq.s32.totalorder %v3986_v26, %v1725_v44  ;;  %vm1770_vm4 = vcmp.eq.s32.totalorder %v3986_v26, %v1768_v49  ;;  %3255 = vrsqrt.f32 %v1986_v6 }
 0xa54   : > { %v1664_v23 = vor.u32 1.1754944e-38, %v1663_v13  ;;  %vm1662_vm10 = vcmp.eq.f32.partialorder %v1661_v20, 8.507059e+37  ;;  %v2862_v54 = vsel %vm1727_vm2, 1.0, %v3362_v42  ;;  %v2866_v36 = vsel %vm1770_vm4, 1.0, %v3362_v42 }
 0xa55   : > { %v1640_v10 = vmul.f32 %v3252_v5, %v1639_v9  ;;  %v3172_v9 = vld [vmem:[%s4321_s13 + $0x18] ss:$0 sm:$0xff] }
 0xa57   : > { %v1641_v16 = vadd.f32 %v3252_v5, %v1640_v10 }
 0xa58   : > { %v3254_v14 = vpop.eup %3253 }
 0xa59   : > { %v1645_v17 = vsel %vm1644_vm5, %v3252_v5, %v1641_v16  ;;  %v1653_v11 = vmul.f32 %v3254_v14, %v1636_v30  ;;  %vm1658_vm7 = vweird.f32 %v3254_v14  ;;  %vm1855_vm5 = vcmp.eq.s32.totalorder %v3986_v26, %v1853_v50  ;;  %v3256_v30 = vpop.eup %3255 }
 0xa5a   : > { %v1650_v18 = vsel %vm1647_vm6, %v1649_v15, %v1645_v17  ;;  %vm1659_vm9 = vmor %vm1657_vm8, %vm1658_vm7  ;;  %vm1812_vm6 = vcmp.eq.s32.totalorder %v3986_v26, %v1679_v35  ;;  %v2875_v57 = vsel %vm1855_vm5, 1.0, %v3362_v42  ;;  %vm1728_vm7 = vcmp.eq.s32.totalorder %v3986_v26, %v1726_v37 }
 0xa5b   : > { %1669 = vrot.lane.b32.xlu1 %v1650_v18, %s3353_s26  ;;  %v1654_v61 = vsub.f32 1.0, %v1653_v11  ;;  %v2871_v56 = vsel %vm1812_vm6, 1.0, %v3362_v42  ;;  %vm1771_vm8 = vcmp.eq.s32.totalorder %v3986_v26, %v1769_v55  ;;  %v2863_v58 = vsel %vm1728_vm7, 1.0, %v3362_v42 }
 0xa5c   : > { %v2867_v59 = vsel %vm1771_vm8, 1.0, %v3362_v42  ;;  %v1988_v8 = vmul.f32 %v3256_v30, %v1986_v6  ;;  %vm1994_vm13 = vweird.f32 %v3256_v30 }
 0xa5d   : > { %v1655_v19 = vmul.f32 %v3254_v14, %v1654_v61 }
 0xa5e   : > { %v1989_v15 = vmul.f32 %v3256_v30, %v1988_v8 }
 0xa5f   : > { %v1656_v21 = vadd.f32 %v3254_v14, %v1655_v19  ;;  %v3174_v19 = vld [vmem:[%s4321_s13 + $0x1a] ss:$0 sm:$0xff] }
 0xa60   : > { %v1990_v20 = vmul.f32 0.5, %v1989_v15 }
 0xa61   : > { %v1660_v24 = vsel %vm1659_vm9, %v3254_v14, %v1656_v21  ;;  %vm1897_vm9 = vcmp.eq.s32.totalorder %v3986_v26, %v1895_v62  ;;  %v3173_v14 = vld [vmem:[%s4321_s13 + $0x19] ss:$0 sm:$0xff] }
 0xa62   : > { %v1665_v25 = vsel %vm1662_vm10, %v1664_v23, %v1660_v24  ;;  %vm1940_vm10 = vcmp.eq.s32.totalorder %v3986_v26, %v1938_v63  ;;  %v2878_v41 = vsel %vm1897_vm9, 1.0, %v3362_v42 }
 0xa63   : > { %1671 = vrot.lane.b32.xlu2 %v1665_v25, %s3353_s26  ;;  %v2882_v51 = vsel %vm1940_vm10, 1.0, %v3362_v42 }
 0xabd   : > { %v1672_v33 = vpop.permute.xlu2 %1671 }
 0xabe   : > { %v1676_v22 = vmul.f32 %v1672_v33, %v1627_v1 }
 0xac0   : > { %1710 = vmatpush.msra.mxu0 %v1676_v22  ;;  %3088 = vmatpush.msrb.mxu3 %v1676_v22 }
 0xac1   : > { %1837 = vmatpush.msrb.mxu1 %v1676_v22  ;;  %1880 = vmatpush.msrb.mxu2 %v1676_v22 }
 0xacd   : > { %v1670_v39 = vpop.permute.xlu1 %1669 }
 0xace   : > { %v1675_v40 = vmul.f32 %v1670_v39, %v1625_v60  ;;  %v1896_v60 = vadd.s32 2, %v1679_v35 }
 0xad0   : > { %1711 = vmatpush.msra.mxu0 %v1675_v40  ;;  %3089 = vmatpush.msrb.mxu3 %v1675_v40  ;;  %vm1898_vm11 = vcmp.eq.s32.totalorder %v3986_v26, %v1896_v60 }
 0xad1   : > { %1838 = vmatpush.msrb.mxu1 %v1675_v40  ;;  %1881 = vmatpush.msrb.mxu2 %v1675_v40  ;;  %v2879_v1 = vsel %vm1898_vm11, 1.0, %v3362_v42  ;;  %v3177_v42 = vld [vmem:[%s4321_s13 + $0x1d] ss:$0 sm:$0xff] }
 0xad2   : > { %2861 = vmatmul.msk.f32.vlgmr.msrb.gmra.mxu3 %vm742_vm3, %v2859_v45  ;;  %1796 = vmatpush.msrb.mxu0 %v1676_v22 }
 0xad3   : > { %1753 = vmatpush.msra.mxu3 %v1676_v22  ;;  %2860 = vmatmul.msk.f32.vlgmr.msra.gmra.mxu0 %vm742_vm3, %v2858_v47 }
 0xad4   : > { %1797 = vmatpush.msrb.mxu0 %v1675_v40  ;;  %2876 = vmatmul.msk.f32.vlgmr.msrb.gmra.mxu2 %vm742_vm3, %v2874_v48 }
 0xad5   : > { %1754 = vmatpush.msra.mxu3 %v1675_v40  ;;  %2872 = vmatmul.msk.f32.vlgmr.msrb.gmra.mxu1 %vm742_vm3, %v2870_v52 }
 0xad6   : > { %1966 = vmatpush.msra.mxu0 %v1676_v22 }
 0xad7   : > { %1923 = vmatpush.msrb.mxu3 %v1676_v22  ;;  %v1991_v22 = vsub.f32 1.5, %v1990_v20 }
 0xad8   : > { %1967 = vmatpush.msra.mxu0 %v1675_v40 }
 0xad9   : > { %1924 = vmatpush.msrb.mxu3 %v1675_v40  ;;  %v3176_v40 = vld [vmem:[%s4321_s13 + $0x1c] ss:$0 sm:$0xff]  ;;  %v1992_v45 = vmul.f32 %v3256_v30, %v1991_v22 }
 0xada   : > { %2864 = vmatmul.msk.f32.vlgmr.msra.gmra.mxu3 %vm742_vm3, %v2862_v54 }
 0xadb   : > { %2868 = vmatmul.msk.f32.vlgmr.msrb.gmra.mxu0 %vm742_vm3, %v2866_v36 }
 0xadc   : > { %2877 = vmatmul.msk.f32.gmra.mxu2 %vm742_vm3, %v2875_v57  ;;  %v3178_v57 = vld [vmem:[%s4321_s13 + $0xd] ss:$0 sm:$0xff] }
 0xadd   : > { %2873 = vmatmul.msk.f32.gmra.mxu1 %vm742_vm3, %v2871_v56 }
 0xae2   : > { %2865 = vmatmul.msk.f32.gmra.mxu3 %vm742_vm3, %v2863_v58 }
 0xae3   : > { %2869 = vmatmul.msk.f32.gmra.mxu0 %vm742_vm3, %v2867_v59 }
 0xaea   : > { %2880 = vmatmul.msk.f32.vlgmr.msrb.gmra.mxu3 %vm742_vm3, %v2878_v41  ;;  %v3179_v41 = vld [vmem:[%s4321_s13 + $0xb] ss:$0 sm:$0xff] }
 0xaeb   : > { %2884 = vmatmul.msk.f32.vlgmr.msra.gmra.mxu0 %vm742_vm3, %v2882_v51  ;;  %v3062_v51 = vld [vmem:[%s4320_s12 + $0x18] sm:$0xff] }
 0xaec   : > { %2092 = vmatpush.bf16.msra.mxu1 %v3062_v51 }
 0xaf2   : > { %2881 = vmatmul.msk.f32.gmra.mxu3 %vm742_vm3, %v2879_v1 }
 0xaf3   : > { %2885 = vmatmul.msk.f32.gmra.mxu0 %vm742_vm3, %v2883_v2  ;;  %vm1993_vm3 = vweird.f32 %v1986_v6  ;;  %v3180_v2 = vld [vmem:[%s4321_s13 + $0xc] ss:$0 sm:$0xff] }
 0xaf4   : > { %vm1995_vm15 = vmor %vm1993_vm3, %vm1994_vm13 }
 0xaf5   : > { %v1996_v37 = vsel %vm1995_vm15, %v3256_v30, %v1992_v45  ;;  %v3061_v30 = vld [vmem:[%s4320_s12 + $0x10] sm:$0xff] }
 0xaf6   : > { %v1997_v59 = vperm.slane %v1996_v37, 0  ;;  %2093 = vmatpush.bf16.msra.mxu1 %v3061_v30  ;;  %v3181_v37 = vld [vmem:[%s4321_s13 + $0xf] ss:$0 sm:$0xff]  ;;  %v2932_v30 = vld [vmem:[%s4317_s9 + $0x30] sm:$0xf] }
 0xb50   : > { %v1713_v29 = vpop.f32.mrf.mxu0 }
 0xb51   : > { %v1721_v17 = vmul.f32 %v3171_v12, %v1713_v29 }
 0xb52   : > { %v1840_v11 = vpop.f32.mrf.mxu1 }
 0xb53   : > { %v1848_v25 = vmul.f32 %v3174_v19, %v1840_v11 }
 0xb55   : > { %v1716_v5 = vpop.f32.mrf.mxu3 }
 0xb56   : > { %v1722_v34 = vmul.f32 %v3171_v12, %v1716_v5 }
 0xb57   : > { %v1883_v21 = vpop.f32.mrf.mxu2 }
 0xb58   : > { %v1799_v7 = vpop.f32.mrf.mxu0  ;;  %v1891_v28 = vmul.f32 %v3175_v27, %v1883_v21 }
 0xb59   : > { %v1807_v13 = vmul.f32 %v3173_v14, %v1799_v7 }
 0xb5a   : > { %v1843_v39 = vpop.f32.mrf.mxu1 }
 0xb5b   : > { %v1849_v47 = vmul.f32 %v3174_v19, %v1843_v39 }
 0xb5d   : > { %v1756_v10 = vpop.f32.mrf.mxu3 }
 0xb5e   : > { %v1764_v16 = vmul.f32 %v3172_v9, %v1756_v10 }
 0xb5f   : > { %v1886_v54 = vpop.f32.mrf.mxu2 }
 0xb60   : > { %v1802_v18 = vpop.f32.mrf.mxu0  ;;  %v1766_v61 = vadd.f32 %v1764_v16, %v1721_v17  ;;  %v1892_v56 = vmul.f32 %v3175_v27, %v1886_v54  ;;  %v3060_v16 = vld [vmem:[%s4320_s12 + $0x8] sm:$0xff]  ;;  %v3059_v17 = vld [vmem:[%s4320_s12] sm:$0xff] }
 0xb61   : > { %v1808_v38 = vmul.f32 %v3173_v14, %v1802_v18  ;;  %2094 = vmatpush.bf16.msra.mxu1 %v3060_v16  ;;  %v2924_v16 = vld [vmem:[%s4317_s9 + $0x20] sm:$0xf] }
 0xb62   : > { %v1809_v24 = vadd.f32 %v1807_v13, %v1766_v61 }
 0xb64   : > { %v1850_v26 = vadd.f32 %v1848_v25, %v1809_v24 }
 0xb65   : > { %v1759_v23 = vpop.f32.mrf.mxu3  ;;  %2095 = vmatpush.bf16.msra.mxu1 %v3059_v17 }
 0xb66   : > { %v1765_v33 = vmul.f32 %v3172_v9, %v1759_v23  ;;  %v1893_v48 = vadd.f32 %v1891_v28, %v1850_v26 }
 0xb68   : > { %v1969_v35 = vpop.f32.mrf.mxu0  ;;  %v1767_v32 = vadd.f32 %v1765_v33, %v1722_v34 }
 0xb69   : > { %v1977_v52 = vmul.f32 %v3177_v42, %v1969_v35 }
 0xb6a   : > { %v1810_v49 = vadd.f32 %v1808_v38, %v1767_v32 }
 0xb6c   : > { %v1851_v55 = vadd.f32 %v1849_v47, %v1810_v49 }
 0xb6d   : > { %v1926_v44 = vpop.f32.mrf.mxu3 }
 0xb6e   : > { %v1934_v50 = vmul.f32 %v3176_v40, %v1926_v44  ;;  %v1894_v0 = vadd.f32 %v1892_v56, %v1851_v55 }
 0xb70   : > { %v1936_v36 = vadd.f32 %v1934_v50, %v1893_v48  ;;  %v1972_v62 = vpop.f32.mrf.mxu0 }
 0xb71   : > { %v1978_v6 = vmul.f32 %v3177_v42, %v1972_v62 }
 0xb72   : > { %v1979_v58 = vadd.f32 %v1977_v52, %v1936_v36 }
 0xb74   : > { %v1983_v63 = vsub.f32 %v1979_v58, %v3178_v57 }
 0xb75   : > { %v1929_v60 = vpop.f32.mrf.mxu3 }
 0xb76   : > { %v1998_v1 = vmul.f32 %v1997_v59, %v1983_v63  ;;  %v1935_v3 = vmul.f32 %v3176_v40, %v1929_v60 }
 0xb78   : > { %v2002_v29 = vmul.f32 %v3179_v41, %v1998_v1  ;;  %v1937_v5 = vadd.f32 %v1935_v3, %v1894_v0 }
 0xb7a   : > { %v2006_v7 = vadd.f32 %v3180_v2, %v2002_v29  ;;  %v1980_v9 = vadd.f32 %v1978_v6, %v1937_v5 }
 0xb7c   : > { %v2008_v8 = vsel %vm1563_vm14, %v2006_v7, %v1979_v58  ;;  %v1984_v10 = vsub.f32 %v1980_v9, %v3178_v57  ;;  %v3070_v7 = vld [vmem:[%s4317_s9 + $0x34] sm:$0xf0] }
 0xb7d   : > { %v2886_v12 = vmul.f32 -1.442695, %v2008_v8 }
 0xb7e   : > { %v1999_v14 = vmul.f32 %v1997_v59, %v1984_v10  ;;  %v2934_v10 = vld [vmem:[%s4317_s9 + $0x38] sm:$0xf0] }
 0xb7f   : > { %3257 = vpow2.f32 %v2886_v12 }
 0xb80   : > { %v2003_v15 = vmul.f32 %v3179_v41, %v1999_v14  ;;  %v3068_v14 = vld [vmem:[%s4317_s9 + $0x24] sm:$0xf0] }
 0xb81   : > { %v2925_v17 = vor.u32 %v3068_v14, %v2924_v16  ;;  %v2905_v16 = vld [vmem:[%s4322_s14 + $0x1] ss:$4 sm:$0x3] }
 0xb82   : > { %v2007_v11 = vadd.f32 %v3180_v2, %v2003_v15  ;;  %v3067_v15 = vld [vmem:[%s4317_s9 + $0x24] sm:$0xf] }
 0xb83   : > { %v3075_v14 = vld [vmem:[%s4318_s10 + $0x20] sm:$0xff] }
 0xb84   : > { %v2009_v18 = vsel %vm1564_vm1, %v2007_v11, %v1980_v9  ;;  %v3069_v9 = vld [vmem:[%s4317_s9 + $0x34] sm:$0xf]  ;;  %v2926_v11 = vld [vmem:[%s4317_s9 + $0x28] sm:$0xf0] }
 0xb85   : > { %v3258_v61 = vpop.eup %3257  ;;  %v2887_v13 = vmul.f32 -1.442695, %v2009_v18  ;;  %v2937_v12 = vor.u32 %v3069_v9, %v2934_v10  ;;  %v3077_v9 = vld [vmem:[%s4318_s10 + $0x30] sm:$0xff]  ;;  %v3076_v10 = vld [vmem:[%s4318_s10 + $0x28] sm:$0xff] }
 0xb86   : > { %v2016_v19 = vadd.f32 1.0, %v3258_v61  ;;  %v2929_v61 = vor.u32 %v3067_v15, %v2926_v11  ;;  %v3083_v15 = vld [vmem:[%s4318_s10 + $0x60] sm:$0xff]  ;;  %v2214_v11 = vperm.slane %v2905_v16, 1 }
 0xb87   : > { %3259 = vpow2.f32 %v2887_v13  ;;  %2278 = vmatpush.bf16.msra.mxu3 %v2937_v12  ;;  %v3084_v12 = vld [vmem:[%s4318_s10 + $0x68] sm:$0xff] }
 0xb88   : > { %3261 = vrcp.f32 %v2016_v19  ;;  %v2029_v35 = vand.u32 2147483648, %v2016_v19  ;;  %vm2023_vm4 = vweird.f32 %v2016_v19  ;;  %v2027_v26 = vand.u32 2147483647, %v2016_v19 }
 0xb8a   : > { %v2030_v42 = vor.u32 1.1754944e-38, %v2029_v35  ;;  %vm2028_vm7 = vcmp.eq.f32.partialorder %v2027_v26, 8.507059e+37  ;;  %v2910_v26 = vld [vmem:[%s4317_s9 + $0x8] sm:$0xf0] }
 0xb8b   : > { %2279 = vmatpush.bf16.msra.mxu3 %v2929_v61  ;;  %v3082_v61 = vld [vmem:[%s4318_s10 + $0x58] sm:$0xff] }
 0xb8d   : > { %v3260_v20 = vpop.eup %3259 }
 0xb8e   : > { %v3262_v21 = vpop.eup %3261  ;;  %v2017_v23 = vadd.f32 1.0, %v3260_v20  ;;  %v3066_v20 = vld [vmem:[%s4317_s9 + $0x14] sm:$0xf0] }
 0xb8f   : > { %v2019_v24 = vmul.f32 %v3262_v21, %v2016_v19  ;;  %vm2024_vm2 = vweird.f32 %v3262_v21  ;;  %v2916_v19 = vld [vmem:[%s4317_s9 + $0x10] sm:$0xf] }
 0xb90   : > { %3263 = vrcp.f32 %v2017_v23  ;;  %vm2025_vm5 = vmor %vm2023_vm4, %vm2024_vm2  ;;  %v2044_v32 = vand.u32 2147483648, %v2017_v23  ;;  %v2042_v40 = vand.u32 2147483647, %v2017_v23  ;;  %vm2038_vm8 = vweird.f32 %v2017_v23 }
 0xb91   : > { %v2020_v25 = vsub.f32 1.0, %v2019_v24  ;;  %v2917_v24 = vor.u32 %v3066_v20, %v2916_v19 }
 0xb92   : > { %v2045_v44 = vor.u32 1.1754944e-38, %v2044_v32  ;;  %vm2043_vm10 = vcmp.eq.f32.partialorder %v2042_v40, 8.507059e+37 }
 0xb93   : > { %v2021_v27 = vmul.f32 %v3262_v21, %v2020_v25  ;;  %v2918_v25 = vld [vmem:[%s4317_s9 + $0x18] sm:$0xf0] }
 0xb95   : > { %v2022_v22 = vadd.f32 %v3262_v21, %v2021_v27 }
 0xb96   : > { %v3264_v33 = vpop.eup %3263 }
 0xb97   : > { %v2034_v34 = vmul.f32 %v3264_v33, %v2017_v23  ;;  %v2026_v38 = vsel %vm2025_vm5, %v3262_v21, %v2022_v22  ;;  %vm2039_vm6 = vweird.f32 %v3264_v33  ;;  %v3065_v21 = vld [vmem:[%s4317_s9 + $0x14] sm:$0xf]  ;;  %v3064_v22 = vld [vmem:[%s4317_s9 + $0x4] sm:$0xf0] }
 0xb98   : > { %v2031_v47 = vsel %vm2028_vm7, %v2030_v42, %v2026_v38  ;;  %vm2040_vm9 = vmor %vm2038_vm8, %vm2039_vm6  ;;  %v2921_v27 = vor.u32 %v3065_v21, %v2918_v25 }
 0xb99   : > { %v2035_v28 = vsub.f32 1.0, %v2034_v34  ;;  %v2048_v50 = vmul.f32 %v2031_v47, %v2008_v8  ;;  %v2933_v8 = vor.u32 %v3070_v7, %v2932_v30  ;;  %v3063_v34 = vld [vmem:[%s4317_s9 + $0x4] sm:$0xf]  ;;  %v3086_v7 = vld [vmem:[%s4318_s10 + $0x78] sm:$0xff] }
 0xb9a   : > { %2280 = vmatpush.bf16.msra.mxu3 %v2921_v27  ;;  %2480 = vmatpush.bf16.msrb.mxu1 %v3086_v7 }
 0xb9b   : > { %v2036_v39 = vmul.f32 %v3264_v33, %v2035_v28  ;;  %2264 = vmatpush.bf16.msra.mxu2 %v2933_v8  ;;  %v2913_v28 = vor.u32 %v3063_v34, %v2910_v26  ;;  %v3085_v8 = vld [vmem:[%s4318_s10 + $0x70] sm:$0xff] }
 0xb9d   : > { %v2037_v45 = vadd.f32 %v3264_v33, %v2036_v39 }
 0xb9e   : > { %2281 = vmatpush.bf16.msra.mxu3 %v2913_v28  ;;  %2481 = vmatpush.bf16.msrb.mxu1 %v3085_v8 }
 0xb9f   : > { %v2041_v48 = vsel %vm2040_vm9, %v3264_v33, %v2037_v45  ;;  %2265 = vmatpush.bf16.msra.mxu2 %v2925_v17  ;;  %v2908_v33 = vld [vmem:[%s4317_s9] sm:$0xf]  ;;  %v2213_v17 = vperm.slane %v2905_v16, 0 }
 0xba0   : > { %v2046_v49 = vsel %vm2043_vm10, %v2045_v44, %v2041_v48  ;;  %v2909_v35 = vor.u32 %v3064_v22, %v2908_v33  ;;  %v3072_v33 = vld [vmem:[%s4318_s10 + $0x8] sm:$0xff] }
 0xba1   : > { %v2049_v52 = vmul.f32 %v2046_v49, %v2009_v18  ;;  %v3080_v22 = vld [vmem:[%s4318_s10 + $0x48] sm:$0xff] }
 0xba2   : > { %2482 = vmatpush.bf16.msrb.mxu1 %v3084_v12 }
 0xba3   : > { %v2058_v54 = vpack.c.bf16 %v2049_v52, %v2048_v50  ;;  %2266 = vmatpush.bf16.msra.mxu2 %v2917_v24  ;;  %v3081_v24 = vld [vmem:[%s4318_s10 + $0x50] sm:$0xff] }
 0xba5   : > { %2904 = vmatmul.msk.bf16.vlgmr.msra.gmra.mxu1 %vm628_vm0, %v2058_v54 }
 0xba6   : > { %2483 = vmatpush.bf16.msrb.mxu1 %v3083_v15  ;;  %v3187_v15 = vld [vmem:[%s4321_s13 + $0x15] ss:$0 sm:$0xff] }
 0xba7   : > { %2267 = vmatpush.bf16.msra.mxu2 %v2909_v35 }
 0xbaa   : > { %2484 = vmatpush.bf16.msrb.mxu1 %v3082_v61 }
 0xbae   : > { %2485 = vmatpush.bf16.msrb.mxu1 %v3081_v24 }
 0xbb2   : > { %2486 = vmatpush.bf16.msrb.mxu1 %v3080_v22 }
 0xc22   : > { %v2097_v36 = vpop.f32.mrf.mxu1 }
 0xc23   : > { %v2098_v57 = vadd.f32 %v3181_v37, %v2097_v36 }
 0xc25   : > { %v2102_v55 = vsel %vm1563_vm14, %v2098_v57, 0.0 }
 0xc26   : > { %v4072_v56 = vadd.f32 %v2102_v55, %v3961_v31 }
 0xc28   : > { %v2155_v58 = vsel %vm628_vm0, %v4072_v56, 0.0 }
 0xc29   : > { %2156 = vadd.xlane.f32.xlu2 %v2155_v58  ;;  %v3183_v58 = vld [vmem:[%s4321_s13 + $0x11] ss:$0 sm:$0xff] }
 0xc2a   : > { %v2099_v59 = vpop.f32.mrf.mxu1 }
 0xc2b   : > { %v2100_v62 = vadd.f32 %v3181_v37, %v2099_v59  ;;  %v3182_v37 = vld [vmem:[%s4321_s13 + $0x10] ss:$0 sm:$0xff] }
 0xc2d   : > { %v2103_v63 = vsel %vm1564_vm1, %v2100_v62, 0.0 }
 0xc2e   : > { %v4079_v41 = vadd.f32 %v2103_v63, %v3973_v46 }
 0xc30   : > { %v2158_v60 = vsel %vm628_vm0, %v4079_v41, 0.0 }
 0xc31   : > { %2159 = vadd.xlane.f32.xlu1 %v2158_v60  ;;  %v3184_v60 = vld [vmem:[%s4321_s13 + $0x12] ss:$0 sm:$0xff] }
 0xc9c   : > { %v2157_v51 = vpop.xlane.xlu2 %2156 }
 0xc9d   : > { %v2161_v31 = vmul.f32 %v2157_v51, %v3750_v4 }
 0xc9f   : > { %v4085_v0 = vsub.f32 %v4072_v56, %v2161_v31 }
 0xca1   : > { %v2165_v1 = vmul.f32 %v4085_v0, %v4085_v0 }
 0xca3   : > { %v2167_v2 = vsel %vm628_vm0, %v2165_v1, 0.0 }
 0xca4   : > { %v2160_v3 = vpop.xlane.xlu1 %2159  ;;  %2168 = vadd.xlane.f32.xlu0 %v2167_v2 }
 0xca5   : > { %v2162_v46 = vmul.f32 %v2160_v3, %v3750_v4  ;;  %v3185_v3 = vld [vmem:[%s4321_s13 + $0x13] ss:$0 sm:$0xff] }
 0xca7   : > { %v4092_v6 = vsub.f32 %v4079_v41, %v2162_v46 }
 0xca9   : > { %v2166_v29 = vmul.f32 %v4092_v6, %v4092_v6 }
 0xcab   : > { %v2170_v5 = vsel %vm628_vm0, %v2166_v29, 0.0 }
 0xcac   : > { %2171 = vadd.xlane.f32.xlu2 %v2170_v5 }
 0xd17   : > { %v2169_v18 = vpop.xlane.xlu0 %2168 }
 0xd18   : > { %v2173_v13 = vmul.f32 %v2169_v18, %v3750_v4  ;;  %v3074_v18 = vld [vmem:[%s4318_s10 + $0x18] sm:$0xff] }
 0xd1a   : > { %v2175_v23 = vadd.f32 1e-05, %v2173_v13 }
 0xd1c   : > { %3265 = vrsqrt.f32 %v2175_v23  ;;  %vm2183_vm12 = vweird.f32 %v2175_v23 }
 0xd1f   : > { %v2172_v32 = vpop.xlane.xlu2 %2171 }
 0xd20   : > { %v2174_v38 = vmul.f32 %v2172_v32, %v3750_v4  ;;  %v3071_v32 = vld [vmem:[%s4318_s10] sm:$0xff] }
 0xd22   : > { %v3266_v39 = vpop.eup %3265  ;;  %v2176_v40 = vadd.f32 1e-05, %v2174_v38  ;;  %v3079_v38 = vld [vmem:[%s4318_s10 + $0x40] sm:$0xff] }
 0xd23   : > { %v2178_v42 = vmul.f32 %v3266_v39, %v2175_v23  ;;  %vm2184_vm11 = vweird.f32 %v3266_v39  ;;  %v3073_v23 = vld [vmem:[%s4318_s10 + $0x10] sm:$0xff]  ;;  %2487 = vmatpush.bf16.msrb.mxu1 %v3079_v38 }
 0xd24   : > { %3267 = vrsqrt.f32 %v2176_v40  ;;  %vm2185_vm3 = vmor %vm2183_vm12, %vm2184_vm11  ;;  %vm2193_vm15 = vweird.f32 %v2176_v40 }
 0xd25   : > { %v2179_v45 = vmul.f32 %v3266_v39, %v2178_v42 }
 0xd27   : > { %v2180_v47 = vmul.f32 0.5, %v2179_v45 }
 0xd29   : > { %v2181_v44 = vsub.f32 1.5, %v2180_v47 }
 0xd2a   : > { %v3268_v48 = vpop.eup %3267 }
 0xd2b   : > { %v2182_v49 = vmul.f32 %v3266_v39, %v2181_v44  ;;  %v2188_v50 = vmul.f32 %v3268_v48, %v2176_v40  ;;  %vm2194_vm13 = vweird.f32 %v3268_v48 }
 0xd2c   : > { %vm2195_vm2 = vmor %vm2193_vm15, %vm2194_vm13 }
 0xd2d   : > { %v2186_v52 = vsel %vm2185_vm3, %v3266_v39, %v2182_v49  ;;  %v2189_v54 = vmul.f32 %v3268_v48, %v2188_v50 }
 0xd2e   : > { %v2197_v36 = vmul.f32 %v2186_v52, %v4085_v0 }
 0xd2f   : > { %v2190_v57 = vmul.f32 0.5, %v2189_v54 }
 0xd30   : > { %v2200_v59 = vmul.f32 %v3182_v37, %v2197_v36 }
 0xd31   : > { %v2191_v55 = vsub.f32 1.5, %v2190_v57 }
 0xd32   : > { %v4157_v51 = vadd.f32 %v3183_v58, %v2200_v59 }
 0xd33   : > { %v2192_v62 = vmul.f32 %v3268_v48, %v2191_v55 }
 0xd34   : > { %v2206_v1 = vmul.f32 %v3184_v60, %v4157_v51 }
 0xd35   : > { %v2196_v63 = vsel %vm2195_vm2, %v3268_v48, %v2192_v62 }
 0xd36   : > { %v2198_v31 = vmul.f32 %v2196_v63, %v4092_v6  ;;  %v2209_v29 = vadd.f32 %v3185_v3, %v2206_v1  ;;  %v3078_v6 = vld [vmem:[%s4318_s10 + $0x38] sm:$0xff] }
 0xd37   : > { %2466 = vmatpush.bf16.msrb.mxu0 %v3078_v6 }
 0xd38   : > { %v2201_v0 = vmul.f32 %v3182_v37, %v2198_v31 }
 0xd3a   : > { %v4161_v2 = vadd.f32 %v3183_v58, %v2201_v0 }
 0xd3b   : > { %2467 = vmatpush.bf16.msrb.mxu0 %v3077_v9 }
 0xd3c   : > { %v2207_v46 = vmul.f32 %v3184_v60, %v4161_v2 }
 0xd3e   : > { %v2210_v5 = vadd.f32 %v3185_v3, %v2207_v46 }
 0xd3f   : > { %2468 = vmatpush.bf16.msrb.mxu0 %v3076_v10 }
 0xd40   : > { %v2211_v30 = vpack.c.bf16 %v2210_v5, %v2209_v29 }
 0xd42   : > { %2938 = vmatmul.msk.bf16.vlgmr.msra.gmra.mxu2 %vm628_vm0, %v2211_v30  ;;  %2939 = vmatmul.msk.bf16.vlgmr.msra.gmra.mxu3 %vm628_vm0, %v2211_v30 }
 0xd43   : > { %2469 = vmatpush.bf16.msrb.mxu0 %v3075_v14 }
 0xd47   : > { %2470 = vmatpush.bf16.msrb.mxu0 %v3074_v18 }
 0xd4b   : > { %2471 = vmatpush.bf16.msrb.mxu0 %v3073_v23 }
 0xd4f   : > { %2472 = vmatpush.bf16.msrb.mxu0 %v3072_v33 }
 0xd53   : > { %2473 = vmatpush.bf16.msrb.mxu0 %v3071_v32 }
 0xdc5   : > { %v2269_v13 = vpop.f32.mrf.mxu2  ;;  %v2283_v19 = vpop.f32.mrf.mxu3 }
 0xdc6   : > { %v4202_v20 = vadd.f32 %v2269_v13, %v2213_v17  ;;  %v4204_v21 = vadd.f32 %v2283_v19, %v2214_v11 }
 0xdc8   : > { %v2940_v25 = vmul.f32 -1.442695, %v4202_v20  ;;  %v2941_v27 = vmul.f32 -1.442695, %v4204_v21 }
 0xdca   : > { %3269 = vpow2.f32 %v2940_v25 }
 0xdcb   : > { %3271 = vpow2.f32 %v2941_v27 }
 0xdcd   : > { %v2271_v34 = vpop.f32.mrf.mxu2  ;;  %v2285_v35 = vpop.f32.mrf.mxu3 }
 0xdce   : > { %v4220_v26 = vadd.f32 %v2271_v34, %v2213_v17  ;;  %v4222_v28 = vadd.f32 %v2285_v35, %v2214_v11 }
 0xdd0   : > { %v3270_v39 = vpop.eup %3269  ;;  %v2942_v40 = vmul.f32 -1.442695, %v4220_v26  ;;  %v2943_v47 = vmul.f32 -1.442695, %v4222_v28 }
 0xdd1   : > { %v3272_v42 = vpop.eup %3271  ;;  %v2300_v45 = vadd.f32 1.0, %v3270_v39 }
 0xdd2   : > { %v2301_v44 = vadd.f32 1.0, %v3272_v42  ;;  %3273 = vpow2.f32 %v2942_v40 }
 0xdd3   : > { %3275 = vrcp.f32 %v2300_v45  ;;  %vm2309_vm5 = vweird.f32 %v2300_v45  ;;  %v2313_v0 = vand.u32 2147483647, %v2300_v45  ;;  %v2315_v1 = vand.u32 2147483648, %v2300_v45 }
 0xdd4   : > { %3277 = vrcp.f32 %v2301_v44  ;;  %vm2324_vm6 = vweird.f32 %v2301_v44  ;;  %v2328_v46 = vand.u32 2147483647, %v2301_v44  ;;  %v2330_v7 = vand.u32 2147483648, %v2301_v44 }
 0xdd5   : > { %3279 = vpow2.f32 %v2943_v47  ;;  %vm2314_vm10 = vcmp.eq.f32.partialorder %v2313_v0, 8.507059e+37  ;;  %v2316_v16 = vor.u32 1.1754944e-38, %v2315_v1 }
 0xdd6   : > { %v2331_v24 = vor.u32 1.1754944e-38, %v2330_v7  ;;  %vm2329_vm2 = vcmp.eq.f32.partialorder %v2328_v46, 8.507059e+37 }
 0xdd8   : > { %v3274_v48 = vpop.eup %3273 }
 0xdd9   : > { %v3276_v49 = vpop.eup %3275  ;;  %v2302_v50 = vadd.f32 1.0, %v3274_v48 }
 0xdda   : > { %v3278_v52 = vpop.eup %3277  ;;  %v2305_v54 = vmul.f32 %v3276_v49, %v2300_v45  ;;  %vm2310_vm4 = vweird.f32 %v3276_v49 }
 0xddb   : > { %v3280_v37 = vpop.eup %3279  ;;  %v2320_v36 = vmul.f32 %v3278_v52, %v2301_v44  ;;  %3281 = vrcp.f32 %v2302_v50  ;;  %v2345_v5 = vand.u32 2147483648, %v2302_v50  ;;  %vm4232_vm7 = vmor %vm2309_vm5, %vm2310_vm4  ;;  %vm2325_vm8 = vweird.f32 %v3278_v52 }
 0xddc   : > { %v2306_v57 = vsub.f32 1.0, %v2305_v54  ;;  %v2303_v55 = vadd.f32 1.0, %v3280_v37  ;;  %v2343_v12 = vand.u32 2147483647, %v2302_v50  ;;  %vm2339_vm11 = vweird.f32 %v2302_v50  ;;  %vm4239_vm12 = vmor %vm2324_vm6, %vm2325_vm8 }
 0xddd   : > { %v2321_v58 = vsub.f32 1.0, %v2320_v36  ;;  %v2346_v11 = vor.u32 1.1754944e-38, %v2345_v5 }
 0xdde   : > { %v2307_v59 = vmul.f32 %v3276_v49, %v2306_v57  ;;  %3283 = vrcp.f32 %v2303_v55  ;;  %v2358_v18 = vand.u32 2147483647, %v2303_v55  ;;  %v2360_v61 = vand.u32 2147483648, %v2303_v55 }
 0xddf   : > { %v2322_v63 = vmul.f32 %v3278_v52, %v2321_v58  ;;  %vm2344_vm15 = vcmp.eq.f32.partialorder %v2343_v12, 8.507059e+37  ;;  %vm2354_vm4 = vweird.f32 %v2303_v55 }
 0xde0   : > { %v2308_v60 = vadd.f32 %v3276_v49, %v2307_v59  ;;  %v2361_v32 = vor.u32 1.1754944e-38, %v2360_v61  ;;  %vm2359_vm6 = vcmp.eq.f32.partialorder %v2358_v18, 8.507059e+37 }
 0xde1   : > { %v3282_v62 = vpop.eup %3281  ;;  %v2323_v6 = vadd.f32 %v3278_v52, %v2322_v63 }
 0xde2   : > { %v2335_v31 = vmul.f32 %v3282_v62, %v2302_v50  ;;  %v2312_v8 = vsel %vm4232_vm7, %v3276_v49, %v2308_v60  ;;  %vm2340_vm9 = vweird.f32 %v3282_v62 }
 0xde3   : > { %v2317_v13 = vsel %vm2314_vm10, %v2316_v16, %v2312_v8  ;;  %v2327_v19 = vsel %vm4239_vm12, %v3278_v52, %v2323_v6  ;;  %vm2341_vm3 = vmor %vm2339_vm11, %vm2340_vm9 }
 0xde4   : > { %v3284_v3 = vpop.eup %3283  ;;  %v2336_v29 = vsub.f32 1.0, %v2335_v31  ;;  %v2364_v22 = vmul.f32 %v2317_v13, %v4202_v20  ;;  %v2332_v34 = vsel %vm2329_vm2, %v2331_v24, %v2327_v19  ;;  %v3186_v20 = vld [vmem:[%s4321_s13 + $0x14] ss:$0 sm:$0xff] }
 0xde5   : > { %v2350_v9 = vmul.f32 %v3284_v3, %v2303_v55  ;;  %vm2355_vm13 = vweird.f32 %v3284_v3  ;;  %v2365_v42 = vmul.f32 %v2332_v34, %v4204_v21 }
 0xde6   : > { %v2337_v10 = vmul.f32 %v3282_v62, %v2336_v29  ;;  %vm2356_vm5 = vmor %vm2354_vm4, %vm2355_vm13 }
 0xde7   : > { %v2351_v14 = vsub.f32 1.0, %v2350_v9 }
 0xde8   : > { %v2338_v17 = vadd.f32 %v3282_v62, %v2337_v10 }
 0xde9   : > { %v2352_v23 = vmul.f32 %v3284_v3, %v2351_v14 }
 0xdea   : > { %v2342_v25 = vsel %vm2341_vm3, %v3282_v62, %v2338_v17 }
 0xdeb   : > { %v2347_v27 = vsel %vm2344_vm15, %v2346_v11, %v2342_v25  ;;  %v2353_v33 = vadd.f32 %v3284_v3, %v2352_v23  ;;  %v3188_v11 = vld [vmem:[%s4321_s13 + $0x16] ss:$0 sm:$0xff] }
 0xdec   : > { %v2366_v35 = vmul.f32 %v2347_v27, %v4220_v26 }
 0xded   : > { %v2357_v38 = vsel %vm2356_vm5, %v3284_v3, %v2353_v33 }
 0xdee   : > { %v2368_v39 = vpack.c.bf16 %v2366_v35, %v2364_v22  ;;  %v2362_v40 = vsel %vm2359_vm6, %v2361_v32, %v2357_v38 }
 0xdef   : > { %v2367_v45 = vmul.f32 %v2362_v40, %v4222_v28 }
 0xdf0   : > { %2474 = vmatmul.bf16.vlgmr.msrb.gmra.mxu0 %v2368_v39 }
 0xdf1   : > { %v2369_v47 = vpack.c.bf16 %v2367_v45, %v2365_v42 }
 0xdf3   : > { %2488 = vmatmul.bf16.vlgmr.msrb.gmra.mxu1 %v2369_v47 }
 0xe6d   : > { %v2475_v44 = vpop.f32.mrf.mxu0 }
 0xe70   : > { %v2489_v48 = vpop.f32.mrf.mxu1 }
 0xe71   : > { %v2490_v49 = vadd.f32 %v2489_v48, %v2475_v44 }
 0xe73   : > { %v2494_v26 = vadd.f32 %v2490_v49, %v4157_v51 }
 0xe75   : > { %v2497_v50 = vadd.f32 %v3186_v20, %v2494_v26  ;;  %v2477_v52 = vpop.f32.mrf.mxu0 }
 0xe77   : > { %v2499_v54 = vsel %vm628_vm0, %v2497_v50, 0.0 }
 0xe78   : > { %v2491_v37 = vpop.f32.mrf.mxu1  ;;  %2500 = vadd.xlane.f32.xlu1 %v2499_v54 }
 0xe79   : > { %v2492_v21 = vadd.f32 %v2491_v37, %v2477_v52 }
 0xe7b   : > { %v2495_v28 = vadd.f32 %v2492_v21, %v4161_v2 }
 0xe7d   : > { %v2498_v36 = vadd.f32 %v3186_v20, %v2495_v28 }
 0xe7f   : > { %v2502_v57 = vsel %vm628_vm0, %v2498_v36, 0.0 }
 0xe80   : > { %2503 = vadd.xlane.f32.xlu2 %v2502_v57 }
 0xeeb   : > { %v2501_v55 = vpop.xlane.xlu1 %2500 }
 0xeec   : > { %v2505_v58 = vmul.f32 %v2501_v55, %v3750_v4 }
 0xeee   : > { %v2507_v59 = vsub.f32 %v2497_v50, %v2505_v58 }
 0xef0   : > { %v2509_v62 = vmul.f32 %v2507_v59, %v2507_v59 }
 0xef2   : > { %v2511_v51 = vsel %vm628_vm0, %v2509_v62, 0.0 }
 0xef3   : > { %2512 = vadd.xlane.f32.xlu0 %v2511_v51  ;;  %v2504_v63 = vpop.xlane.xlu2 %2503 }
 0xef4   : > { %v2506_v60 = vmul.f32 %v2504_v63, %v3750_v4 }
 0xef6   : > { %v2508_v31 = vsub.f32 %v2498_v36, %v2506_v60 }
 0xef8   : > { %v2510_v0 = vmul.f32 %v2508_v31, %v2508_v31 }
 0xefa   : > { %v2514_v1 = vsel %vm628_vm0, %v2510_v0, 0.0 }
 0xefb   : > { %2515 = vadd.xlane.f32.xlu1 %v2514_v1 }
 0xf66   : > { %v2513_v2 = vpop.xlane.xlu0 %2512 }
 0xf67   : > { %v2517_v3 = vmul.f32 %v2513_v2, %v3750_v4 }
 0xf69   : > { %v2519_v46 = vadd.f32 1e-05, %v2517_v3 }
 0xf6b   : > { %3285 = vrsqrt.f32 %v2519_v46  ;;  %vm2527_vm8 = vweird.f32 %v2519_v46 }
 0xf6e   : > { %v2516_v29 = vpop.xlane.xlu1 %2515 }
 0xf6f   : > { %v2518_v5 = vmul.f32 %v2516_v29, %v3750_v4 }
 0xf71   : > { %v3286_v30 = vpop.eup %3285  ;;  %v2520_v6 = vadd.f32 1e-05, %v2518_v5 }
 0xf72   : > { %v2522_v7 = vmul.f32 %v3286_v30, %v2519_v46  ;;  %vm2528_vm7 = vweird.f32 %v3286_v30 }
 0xf73   : > { %3287 = vrsqrt.f32 %v2520_v6  ;;  %vm2529_vm9 = vmor %vm2527_vm8, %vm2528_vm7  ;;  %vm2537_vm11 = vweird.f32 %v2520_v6 }
 0xf74   : > { %v2523_v9 = vmul.f32 %v3286_v30, %v2522_v7 }
 0xf76   : > { %v2524_v8 = vmul.f32 0.5, %v2523_v9 }
 0xf78   : > { %v2525_v10 = vsub.f32 1.5, %v2524_v8 }
 0xf79   : > { %v3288_v12 = vpop.eup %3287 }
 0xf7a   : > { %v2526_v16 = vmul.f32 %v3286_v30, %v2525_v10  ;;  %v2532_v14 = vmul.f32 %v3288_v12, %v2520_v6  ;;  %vm2538_vm10 = vweird.f32 %v3288_v12 }
 0xf7b   : > { %vm2539_vm12 = vmor %vm2537_vm11, %vm2538_vm10 }
 0xf7c   : > { %v2530_v4 = vsel %vm2529_vm9, %v3286_v30, %v2526_v16  ;;  %v2533_v17 = vmul.f32 %v3288_v12, %v2532_v14 }
 0xf7d   : > { %v2541_v18 = vmul.f32 %v2530_v4, %v2507_v59 }
 0xf7e   : > { %v2534_v61 = vmul.f32 0.5, %v2533_v17 }
 0xf7f   : > { %v2544_v13 = vmul.f32 %v3187_v15, %v2541_v18 }
 0xf80   : > { %v2535_v19 = vsub.f32 1.5, %v2534_v61 }
 0xf81   : > { %v2547_v23 = vadd.f32 %v3188_v11, %v2544_v13 }
 0xf82   : > { %v2536_v24 = vmul.f32 %v3288_v12, %v2535_v19 }
 0xf83   : > { %v2549_v25 = vsel %vm1563_vm14, %v2547_v23, %v4072_v56 }
 0xf84   : > { %v2540_v27 = vsel %vm2539_vm12, %v3288_v12, %v2536_v24  ;;  %2551 = vst.msk [vmem:[%s513_s25] sm:$0xff] %vm628_vm0, %v2549_v25 }
 0xf85   : > { %v2542_v33 = vmul.f32 %v2540_v27, %v2508_v31 }
 0xf87   : > { %v2545_v22 = vmul.f32 %v3187_v15, %v2542_v33 }
 0xf89   : > { %v2548_v34 = vadd.f32 %v3188_v11, %v2545_v22 }
 0xf8b   : > { %v2550_v43 = vsel %vm1564_vm1, %v2548_v34, %v4079_v41 }
 0xf8c   : > { %2552 = vst.msk [vmem:[%s513_s25 + $0x8] sm:$0xff] %vm628_vm0, %v2550_v43 }
 0xf8d   : > { %3316 = shalt.err (!%p3313_p3)
}
 0xf8e   : > { %s3363_s27 = smov 128   ;;  %s3364_s17 = smov 8  }
 0xf8f   : > { %3090 = dma.vmem_to_hbm [thread:$0]  (%p3483_p5), %s2567_s20, 256, %s2569_s22, %s2554_s18, %s3363_s27, %s3363_s27, %s3364_s17  }
 0xf90 PF: > { %s4361_s25 = sld [smem:[#allocation7_spill]] }
 0xf91   : > { %s4362_s0 = sld [smem:[#allocation5_spill]] }
 0xf96   : > { %p3096_p4 = scmp.ge.s32.totalorder %s4361_s25, 2 }
 0xf97   : > { %s2583_s26 = sand.u32 1, %s4362_s0  }
 0xf98   : > { %p3093_p7 = pnand %p3096_p4, %p3487_p6  ;;  %s2584_s29 = scalar_lea.sflag [#allocation3], %s2583_s26 }
 0xf9a   : > { %p3094_p8 = pneg %p3093_p7 }
 0xf9c   : > { %3334 = dma.done.wait (%p3094_p8), %s2584_s29, 256  }
 0xf9d   : > { %3336 = vsyncadd (%p3094_p8), %s2584_s29, 4294967040  ;;  %s4364_s21 = sld [smem:[#allocation8_spill]]  ;;  %s4367_s18 = smov %s3343_s19 }
 0xf9e   : > { %s4365_s23 = sld [smem:[#allocation6_spill]] }
 0xf9f   : > { %s4366_s20 = sld [smem:[#allocation9_spill]] }
 0xfa3   : > { %p25_p9 = scmp.ge.s32.totalorder %s4364_s21, 4  }
 0xfa4   : > { %s4368_s19 = smov %s4365_s23 }
 0xfa5   :  { %27 = sbr.rel (!%p25_p9) target bundleno = 7 (0x7), region = 122 }
 0xfaa   :  { %2590 = vsyncpa [#allocation3], 1 }
 0xfab   :  { %2592 = vsyncpa [#allocation3 + $0x1], 1 }

</bundles_post_ra>
